<compile_context>
chip_gen: v5e
topology: v5e:2x2
jax: 0.10.0
libtpu: 0.0.40
codegen_flags: <defaults>
</compile_context>

<pallas_src>
import jax
import jax.numpy as jnp
from jax.experimental import pallas as pl
from jax.experimental.pallas import tpu as pltpu


# ----------------------------- fused model kernel -----------------------------
def _make_fused_kernel(T, B, H, num_layers):
    """Build the fused kernel.

    Kernel ref layout (all full-array VMEM blocks):
      x_ref                      (T, B, D0)             time-major input
      w_ref[k], b_ref[k] k=0..L  (D_k+H, 4H), (1, 4H)   fused [W_ih^T; W_hh^T], b_ih+b_hh
      fcw_ref, fcb_ref           (H, O), (1, O)
      out_ref                    (B, O)
    """

    def kernel(*args):
        x_ref = args[0]
        w_refs = args[1:1 + 2 * num_layers:2]
        b_refs = args[2:2 + 2 * num_layers:2]
        fcw_ref = args[1 + 2 * num_layers]
        fcb_ref = args[2 + 2 * num_layers]
        out_ref = args[3 + 2 * num_layers]

        # Per-timestep inputs to the current layer, kept as values (never HBM).
        xs = [x_ref[t] for t in range(T)]

        for k in range(num_layers):
            w = w_refs[k][...]          # (D_k + H, 4H) fused weights (loop-invariant)
            b = b_refs[k][...]          # (1, 4H)
            h = jnp.zeros((B, H), jnp.float32)
            c = jnp.zeros((B, H), jnp.float32)
            ys = []
            for t in range(T):          # static unroll: recurrence over time
                # Single MXU dot per step: [x_t | h] @ [W_ih^T ; W_hh^T]
                xin = jnp.concatenate([xs[t], h], axis=-1)        # (B, D_k + H)
                gates = jnp.dot(xin, w, preferred_element_type=jnp.float32) + b
                i_g = jax.nn.sigmoid(gates[:, 0 * H:1 * H])
                f_g = jax.nn.sigmoid(gates[:, 1 * H:2 * H])
                g_g = jnp.tanh(gates[:, 2 * H:3 * H])
                o_g = jax.nn.sigmoid(gates[:, 3 * H:4 * H])
                c = f_g * c + i_g * g_g
                h = o_g * jnp.tanh(c)
                ys.append(h)
            xs = ys                     # feed next layer (stays on-chip)

        # Fused Linear epilogue on the last timestep of the last layer.
        out_ref[...] = (
            jnp.dot(xs[-1], fcw_ref[...], preferred_element_type=jnp.float32)
            + fcb_ref[...]
        )

    return kernel


def fused_lstm_model_pallas(x_tbd, layer_ws, layer_bs, fcw_t, fcb_row):
    """x_tbd: (T, B, D0); layer_ws[k]: (D_k+H, 4H); layer_bs[k]: (1, 4H);
    fcw_t: (H, O); fcb_row: (1, O). Returns (B, O)."""
    T, B, D0 = x_tbd.shape
    H, O = fcw_t.shape
    L = len(layer_ws)

    kernel = _make_fused_kernel(T, B, H, L)

    # All operands are tiny: full-array blocks, single grid step (no per-step
    # DMA / pipelining overhead; weight double-buffering is moot with grid=(1,)).
    in_specs = [pl.BlockSpec((T, B, D0), lambda i: (0, 0, 0))]
    operands = [x_tbd]
    for w, b in zip(layer_ws, layer_bs):
        in_specs.append(pl.BlockSpec(w.shape, lambda i: (0, 0)))
        in_specs.append(pl.BlockSpec(b.shape, lambda i: (0, 0)))
        operands.extend((w, b))
    in_specs.append(pl.BlockSpec((H, O), lambda i: (0, 0)))
    in_specs.append(pl.BlockSpec((1, O), lambda i: (0, 0)))
    operands.extend((fcw_t, fcb_row))

    return pl.pallas_call(
        kernel,
        out_shape=jax.ShapeDtypeStruct((B, O), jnp.float32),
        grid_spec=pltpu.PrefetchScalarGridSpec(
            num_scalar_prefetch=0,
            grid=(1,),                                  # whole model in one step
            in_specs=in_specs,
            out_specs=pl.BlockSpec((B, O), lambda i: (0, 0)),
        ),
        compiler_params=pltpu.CompilerParams(
            dimension_semantics=("arbitrary",),
        ),
    )(*operands)


# ------------------------------ Parameter setup --------------------------------
def init_lstm_stack(key, input_size, hidden_size, num_layers):
    """Deterministic PyTorch-style init: U(-1/sqrt(H), 1/sqrt(H))."""
    params = []
    bound = 1.0 / jnp.sqrt(jnp.float32(hidden_size))
    d_in = input_size
    for _ in range(num_layers):
        key, k1, k2, k3, k4 = jax.random.split(key, 5)
        wih = jax.random.uniform(k1, (4 * hidden_size, d_in), jnp.float32, -bound, bound)
        whh = jax.random.uniform(k2, (4 * hidden_size, hidden_size), jnp.float32, -bound, bound)
        bih = jax.random.uniform(k3, (4 * hidden_size,), jnp.float32, -bound, bound)
        bhh = jax.random.uniform(k4, (4 * hidden_size,), jnp.float32, -bound, bound)
        params.append((wih, whh, bih, bhh))
        d_in = hidden_size
    return key, params


def prepare_params(lstm1_params, lstm2_params, fc_w, fc_b):
    """One-time weight preprocessing, hoisted out of the forward path."""
    layer_ws, layer_bs = [], []
    for (wih, whh, bih, bhh) in list(lstm1_params) + list(lstm2_params):
        layer_ws.append(jnp.concatenate([wih.T, whh.T], axis=0))   # (D_in + H, 4H)
        layer_bs.append((bih + bhh).reshape(1, -1))                # (1, 4H)
    return tuple(layer_ws), tuple(layer_bs), jnp.transpose(fc_w), fc_b.reshape(1, -1)


@jax.jit
def lstm_model_forward(x_btd, prepared):
    layer_ws, layer_bs, fcw_t, fcb_row = prepared
    x_tbd = jnp.swapaxes(x_btd, 0, 1)   # batch_first -> time-major (tiny, fused under jit)
    return fused_lstm_model_pallas(x_tbd, layer_ws, layer_bs, fcw_t, fcb_row)


# ------------------------------ Pure-JAX reference ------------------------------
def _lstm_stack_ref(x_btd, params):
    out = x_btd
    for (wih, whh, bih, bhh) in params:
        B, T, _ = out.shape
        H = whh.shape[1]

        def step(carry, x_t):
            h, c = carry
            gates = x_t @ wih.T + h @ whh.T + bih + bhh
            i_g = jax.nn.sigmoid(gates[:, :H])
            f_g = jax.nn.sigmoid(gates[:, H:2 * H])
            g_g = jnp.tanh(gates[:, 2 * H:3 * H])
            o_g = jax.nn.sigmoid(gates[:, 3 * H:])
            c = f_g * c + i_g * g_g
            h = o_g * jnp.tanh(c)
            return (h, c), h

        init = (jnp.zeros((B, H), jnp.float32), jnp.zeros((B, H), jnp.float32))
        _, ys = jax.lax.scan(step, init, jnp.swapaxes(out, 0, 1))
        out = jnp.swapaxes(ys, 0, 1)
    return out


def _model_ref(x, lstm1_params, lstm2_params, fc_w, fc_b):
    out = _lstm_stack_ref(x, lstm1_params)
    out = _lstm_stack_ref(out, lstm2_params)
    return out[:, -1, :] @ fc_w.T + fc_b


# ------------------------------------ main ---------------------------------------
if __name__ == "__main__":
    batch, seq = 2, 8
    input_size, hidden_size1, hidden_size2 = 4, 32, 32
    num_layers, output_size = 2, 1

    key = jax.random.PRNGKey(0)
    key, params1 = init_lstm_stack(key, input_size, hidden_size1, num_layers)
    key, params2 = init_lstm_stack(key, hidden_size1, hidden_size2, num_layers)

    bound = 1.0 / jnp.sqrt(jnp.float32(hidden_size2))
    key, kw, kb, kx = jax.random.split(key, 4)
    fc_w = jax.random.uniform(kw, (output_size, hidden_size2), jnp.float32, -bound, bound)
    fc_b = jax.random.uniform(kb, (output_size,), jnp.float32, -bound, bound)

    x = jax.random.normal(kx, (batch, seq, input_size), jnp.float32)

    prepared = jax.tree_util.tree_map(jax.block_until_ready,
                                      prepare_params(params1, params2, fc_w, fc_b))

    out = lstm_model_forward(x, prepared)
    out = jax.block_until_ready(out)

    ref = jax.block_until_ready(_model_ref(x, params1, params2, fc_w, fc_b))
    assert out.shape == (batch, output_size), out.shape
    assert jnp.allclose(out, ref, atol=1e-5, rtol=1e-5), (out, ref)

    print("KERNEL_OK")
</pallas_src>

<mosaic_0001>
module attributes {stable_mosaic.version = 11 : i64} {
  func.func @kernel(%arg0: i32, %arg1: memref<8x2x4xf32, #tpu.memory_space<vmem>>, %arg2: memref<36x128xf32, #tpu.memory_space<vmem>>, %arg3: memref<1x128xf32, #tpu.memory_space<vmem>>, %arg4: memref<64x128xf32, #tpu.memory_space<vmem>>, %arg5: memref<1x128xf32, #tpu.memory_space<vmem>>, %arg6: memref<64x128xf32, #tpu.memory_space<vmem>>, %arg7: memref<1x128xf32, #tpu.memory_space<vmem>>, %arg8: memref<64x128xf32, #tpu.memory_space<vmem>>, %arg9: memref<1x128xf32, #tpu.memory_space<vmem>>, %arg10: memref<32x1xf32, #tpu.memory_space<vmem>>, %arg11: memref<1x1xf32, #tpu.memory_space<vmem>>, %arg12: memref<2x1xf32, #tpu.memory_space<vmem>>) attributes {dimension_semantics = [#tpu.dimension_semantics<arbitrary>], iteration_bounds = array<i64: 1>, scalar_prefetch = 0 : i64, scratch_operands = 0 : i64, tpu.core_type = #tpu.core_type<tc>, window_params = [{pipeline_mode = #tpu.pipeline_mode<synchronous>, transform_indices = @transform_0, window_bounds = array<i64: 8, 2, 4>}, {pipeline_mode = #tpu.pipeline_mode<synchronous>, transform_indices = @transform_1, window_bounds = array<i64: 36, 128>}, {pipeline_mode = #tpu.pipeline_mode<synchronous>, transform_indices = @transform_2, window_bounds = array<i64: 1, 128>}, {pipeline_mode = #tpu.pipeline_mode<synchronous>, transform_indices = @transform_3, window_bounds = array<i64: 64, 128>}, {pipeline_mode = #tpu.pipeline_mode<synchronous>, transform_indices = @transform_4, window_bounds = array<i64: 1, 128>}, {pipeline_mode = #tpu.pipeline_mode<synchronous>, transform_indices = @transform_5, window_bounds = array<i64: 64, 128>}, {pipeline_mode = #tpu.pipeline_mode<synchronous>, transform_indices = @transform_6, window_bounds = array<i64: 1, 128>}, {pipeline_mode = #tpu.pipeline_mode<synchronous>, transform_indices = @transform_7, window_bounds = array<i64: 64, 128>}, {pipeline_mode = #tpu.pipeline_mode<synchronous>, transform_indices = @transform_8, window_bounds = array<i64: 1, 128>}, {pipeline_mode = #tpu.pipeline_mode<synchronous>, transform_indices = @transform_9, window_bounds = array<i64: 32, 1>}, {pipeline_mode = #tpu.pipeline_mode<synchronous>, transform_indices = @transform_10, window_bounds = array<i64: 1, 1>}, {pipeline_mode = #tpu.pipeline_mode<synchronous>, transform_indices = @transform_11, window_bounds = array<i64: 2, 1>}]} {
    %c0 = arith.constant 0 : index
    %c0_0 = arith.constant 0 : index
    %c0_1 = arith.constant 0 : index
    %0 = vector.load %arg1[%c0, %c0_0, %c0_1] : memref<8x2x4xf32, #tpu.memory_space<vmem>>, vector<1x2x4xf32>
    %1 = vector.shape_cast %0 : vector<1x2x4xf32> to vector<2x4xf32>
    %c1 = arith.constant 1 : index
    %c0_2 = arith.constant 0 : index
    %c0_3 = arith.constant 0 : index
    %2 = vector.load %arg1[%c1, %c0_2, %c0_3] : memref<8x2x4xf32, #tpu.memory_space<vmem>>, vector<1x2x4xf32>
    %3 = vector.shape_cast %2 : vector<1x2x4xf32> to vector<2x4xf32>
    %c2 = arith.constant 2 : index
    %c0_4 = arith.constant 0 : index
    %c0_5 = arith.constant 0 : index
    %4 = vector.load %arg1[%c2, %c0_4, %c0_5] : memref<8x2x4xf32, #tpu.memory_space<vmem>>, vector<1x2x4xf32>
    %5 = vector.shape_cast %4 : vector<1x2x4xf32> to vector<2x4xf32>
    %c3 = arith.constant 3 : index
    %c0_6 = arith.constant 0 : index
    %c0_7 = arith.constant 0 : index
    %6 = vector.load %arg1[%c3, %c0_6, %c0_7] : memref<8x2x4xf32, #tpu.memory_space<vmem>>, vector<1x2x4xf32>
    %7 = vector.shape_cast %6 : vector<1x2x4xf32> to vector<2x4xf32>
    %c4 = arith.constant 4 : index
    %c0_8 = arith.constant 0 : index
    %c0_9 = arith.constant 0 : index
    %8 = vector.load %arg1[%c4, %c0_8, %c0_9] : memref<8x2x4xf32, #tpu.memory_space<vmem>>, vector<1x2x4xf32>
    %9 = vector.shape_cast %8 : vector<1x2x4xf32> to vector<2x4xf32>
    %c5 = arith.constant 5 : index
    %c0_10 = arith.constant 0 : index
    %c0_11 = arith.constant 0 : index
    %10 = vector.load %arg1[%c5, %c0_10, %c0_11] : memref<8x2x4xf32, #tpu.memory_space<vmem>>, vector<1x2x4xf32>
    %11 = vector.shape_cast %10 : vector<1x2x4xf32> to vector<2x4xf32>
    %c6 = arith.constant 6 : index
    %c0_12 = arith.constant 0 : index
    %c0_13 = arith.constant 0 : index
    %12 = vector.load %arg1[%c6, %c0_12, %c0_13] : memref<8x2x4xf32, #tpu.memory_space<vmem>>, vector<1x2x4xf32>
    %13 = vector.shape_cast %12 : vector<1x2x4xf32> to vector<2x4xf32>
    %c7 = arith.constant 7 : index
    %c0_14 = arith.constant 0 : index
    %c0_15 = arith.constant 0 : index
    %14 = vector.load %arg1[%c7, %c0_14, %c0_15] : memref<8x2x4xf32, #tpu.memory_space<vmem>>, vector<1x2x4xf32>
    %15 = vector.shape_cast %14 : vector<1x2x4xf32> to vector<2x4xf32>
    %c0_16 = arith.constant 0 : index
    %c0_17 = arith.constant 0 : index
    %16 = vector.load %arg2[%c0_16, %c0_17] : memref<36x128xf32, #tpu.memory_space<vmem>>, vector<36x128xf32>
    %c0_18 = arith.constant 0 : index
    %c0_19 = arith.constant 0 : index
    %17 = vector.load %arg3[%c0_18, %c0_19] : memref<1x128xf32, #tpu.memory_space<vmem>>, vector<1x128xf32>
    %cst = arith.constant 0.000000e+00 : f32
    %18 = vector.broadcast %cst : f32 to vector<2x32xf32>
    %cst_20 = arith.constant 0.000000e+00 : f32
    %19 = vector.broadcast %cst_20 : f32 to vector<2x32xf32>
    %20 = tpu.concatenate %1, %18 in 1 : vector<2x4xf32>, vector<2x32xf32> -> vector<2x36xf32>
    %cst_21 = arith.constant dense<0.000000e+00> : vector<2x128xf32>
    %21 = tpu.matmul %20, %16, %cst_21 {dimension_numbers = #tpu.dot_dimension_numbers<[1], [0], [0], [1], [0, 0, 1, 1], [], []>} : vector<2x36xf32>, vector<36x128xf32>, vector<2x128xf32> -> vector<2x128xf32>
    %22 = vector.broadcast %17 : vector<1x128xf32> to vector<2x128xf32>
    %23 = arith.addf %21, %22 : vector<2x128xf32>
    %24 = vector.extract_strided_slice %23 {offsets = [0, 0], sizes = [2, 32], strides = [1, 1]} : vector<2x128xf32> to vector<2x32xf32>
    %25 = arith.negf %24 : vector<2x32xf32>
    %26 = math.exp %25 : vector<2x32xf32>
    %cst_22 = arith.constant 1.000000e+00 : f32
    %27 = vector.broadcast %cst_22 : f32 to vector<2x32xf32>
    %28 = arith.addf %27, %26 : vector<2x32xf32>
    %29 = arith.divf %27, %28 : vector<2x32xf32>
    %30 = vector.extract_strided_slice %23 {offsets = [0, 32], sizes = [2, 32], strides = [1, 1]} : vector<2x128xf32> to vector<2x32xf32>
    %31 = arith.negf %30 : vector<2x32xf32>
    %32 = math.exp %31 : vector<2x32xf32>
    %cst_23 = arith.constant 1.000000e+00 : f32
    %33 = vector.broadcast %cst_23 : f32 to vector<2x32xf32>
    %34 = arith.addf %33, %32 : vector<2x32xf32>
    %35 = arith.divf %33, %34 : vector<2x32xf32>
    %36 = vector.extract_strided_slice %23 {offsets = [0, 64], sizes = [2, 32], strides = [1, 1]} : vector<2x128xf32> to vector<2x32xf32>
    %37 = math.tanh %36 : vector<2x32xf32>
    %38 = vector.extract_strided_slice %23 {offsets = [0, 96], sizes = [2, 32], strides = [1, 1]} : vector<2x128xf32> to vector<2x32xf32>
    %39 = arith.negf %38 : vector<2x32xf32>
    %40 = math.exp %39 : vector<2x32xf32>
    %cst_24 = arith.constant 1.000000e+00 : f32
    %41 = vector.broadcast %cst_24 : f32 to vector<2x32xf32>
    %42 = arith.addf %41, %40 : vector<2x32xf32>
    %43 = arith.divf %41, %42 : vector<2x32xf32>
    %44 = arith.mulf %35, %19 : vector<2x32xf32>
    %45 = arith.mulf %29, %37 : vector<2x32xf32>
    %46 = arith.addf %44, %45 : vector<2x32xf32>
    %47 = math.tanh %46 : vector<2x32xf32>
    %48 = arith.mulf %43, %47 : vector<2x32xf32>
    %49 = tpu.concatenate %3, %48 in 1 : vector<2x4xf32>, vector<2x32xf32> -> vector<2x36xf32>
    %cst_25 = arith.constant dense<0.000000e+00> : vector<2x128xf32>
    %50 = tpu.matmul %49, %16, %cst_25 {dimension_numbers = #tpu.dot_dimension_numbers<[1], [0], [0], [1], [0, 0, 1, 1], [], []>} : vector<2x36xf32>, vector<36x128xf32>, vector<2x128xf32> -> vector<2x128xf32>
    %51 = vector.broadcast %17 : vector<1x128xf32> to vector<2x128xf32>
    %52 = arith.addf %50, %51 : vector<2x128xf32>
    %53 = vector.extract_strided_slice %52 {offsets = [0, 0], sizes = [2, 32], strides = [1, 1]} : vector<2x128xf32> to vector<2x32xf32>
    %54 = arith.negf %53 : vector<2x32xf32>
    %55 = math.exp %54 : vector<2x32xf32>
    %cst_26 = arith.constant 1.000000e+00 : f32
    %56 = vector.broadcast %cst_26 : f32 to vector<2x32xf32>
    %57 = arith.addf %56, %55 : vector<2x32xf32>
    %58 = arith.divf %56, %57 : vector<2x32xf32>
    %59 = vector.extract_strided_slice %52 {offsets = [0, 32], sizes = [2, 32], strides = [1, 1]} : vector<2x128xf32> to vector<2x32xf32>
    %60 = arith.negf %59 : vector<2x32xf32>
    %61 = math.exp %60 : vector<2x32xf32>
    %cst_27 = arith.constant 1.000000e+00 : f32
    %62 = vector.broadcast %cst_27 : f32 to vector<2x32xf32>
    %63 = arith.addf %62, %61 : vector<2x32xf32>
    %64 = arith.divf %62, %63 : vector<2x32xf32>
    %65 = vector.extract_strided_slice %52 {offsets = [0, 64], sizes = [2, 32], strides = [1, 1]} : vector<2x128xf32> to vector<2x32xf32>
    %66 = math.tanh %65 : vector<2x32xf32>
    %67 = vector.extract_strided_slice %52 {offsets = [0, 96], sizes = [2, 32], strides = [1, 1]} : vector<2x128xf32> to vector<2x32xf32>
    %68 = arith.negf %67 : vector<2x32xf32>
    %69 = math.exp %68 : vector<2x32xf32>
    %cst_28 = arith.constant 1.000000e+00 : f32
    %70 = vector.broadcast %cst_28 : f32 to vector<2x32xf32>
    %71 = arith.addf %70, %69 : vector<2x32xf32>
    %72 = arith.divf %70, %71 : vector<2x32xf32>
    %73 = arith.mulf %64, %46 : vector<2x32xf32>
    %74 = arith.mulf %58, %66 : vector<2x32xf32>
    %75 = arith.addf %73, %74 : vector<2x32xf32>
    %76 = math.tanh %75 : vector<2x32xf32>
    %77 = arith.mulf %72, %76 : vector<2x32xf32>
    %78 = tpu.concatenate %5, %77 in 1 : vector<2x4xf32>, vector<2x32xf32> -> vector<2x36xf32>
    %cst_29 = arith.constant dense<0.000000e+00> : vector<2x128xf32>
    %79 = tpu.matmul %78, %16, %cst_29 {dimension_numbers = #tpu.dot_dimension_numbers<[1], [0], [0], [1], [0, 0, 1, 1], [], []>} : vector<2x36xf32>, vector<36x128xf32>, vector<2x128xf32> -> vector<2x128xf32>
    %80 = vector.broadcast %17 : vector<1x128xf32> to vector<2x128xf32>
    %81 = arith.addf %79, %80 : vector<2x128xf32>
    %82 = vector.extract_strided_slice %81 {offsets = [0, 0], sizes = [2, 32], strides = [1, 1]} : vector<2x128xf32> to vector<2x32xf32>
    %83 = arith.negf %82 : vector<2x32xf32>
    %84 = math.exp %83 : vector<2x32xf32>
    %cst_30 = arith.constant 1.000000e+00 : f32
    %85 = vector.broadcast %cst_30 : f32 to vector<2x32xf32>
    %86 = arith.addf %85, %84 : vector<2x32xf32>
    %87 = arith.divf %85, %86 : vector<2x32xf32>
    %88 = vector.extract_strided_slice %81 {offsets = [0, 32], sizes = [2, 32], strides = [1, 1]} : vector<2x128xf32> to vector<2x32xf32>
    %89 = arith.negf %88 : vector<2x32xf32>
    %90 = math.exp %89 : vector<2x32xf32>
    %cst_31 = arith.constant 1.000000e+00 : f32
    %91 = vector.broadcast %cst_31 : f32 to vector<2x32xf32>
    %92 = arith.addf %91, %90 : vector<2x32xf32>
    %93 = arith.divf %91, %92 : vector<2x32xf32>
    %94 = vector.extract_strided_slice %81 {offsets = [0, 64], sizes = [2, 32], strides = [1, 1]} : vector<2x128xf32> to vector<2x32xf32>
    %95 = math.tanh %94 : vector<2x32xf32>
    %96 = vector.extract_strided_slice %81 {offsets = [0, 96], sizes = [2, 32], strides = [1, 1]} : vector<2x128xf32> to vector<2x32xf32>
    %97 = arith.negf %96 : vector<2x32xf32>
    %98 = math.exp %97 : vector<2x32xf32>
    %cst_32 = arith.constant 1.000000e+00 : f32
    %99 = vector.broadcast %cst_32 : f32 to vector<2x32xf32>
    %100 = arith.addf %99, %98 : vector<2x32xf32>
    %101 = arith.divf %99, %100 : vector<2x32xf32>
    %102 = arith.mulf %93, %75 : vector<2x32xf32>
    %103 = arith.mulf %87, %95 : vector<2x32xf32>
    %104 = arith.addf %102, %103 : vector<2x32xf32>
    %105 = math.tanh %104 : vector<2x32xf32>
    %106 = arith.mulf %101, %105 : vector<2x32xf32>
    %107 = tpu.concatenate %7, %106 in 1 : vector<2x4xf32>, vector<2x32xf32> -> vector<2x36xf32>
    %cst_33 = arith.constant dense<0.000000e+00> : vector<2x128xf32>
    %108 = tpu.matmul %107, %16, %cst_33 {dimension_numbers = #tpu.dot_dimension_numbers<[1], [0], [0], [1], [0, 0, 1, 1], [], []>} : vector<2x36xf32>, vector<36x128xf32>, vector<2x128xf32> -> vector<2x128xf32>
    %109 = vector.broadcast %17 : vector<1x128xf32> to vector<2x128xf32>
    %110 = arith.addf %108, %109 : vector<2x128xf32>
    %111 = vector.extract_strided_slice %110 {offsets = [0, 0], sizes = [2, 32], strides = [1, 1]} : vector<2x128xf32> to vector<2x32xf32>
    %112 = arith.negf %111 : vector<2x32xf32>
    %113 = math.exp %112 : vector<2x32xf32>
    %cst_34 = arith.constant 1.000000e+00 : f32
    %114 = vector.broadcast %cst_34 : f32 to vector<2x32xf32>
    %115 = arith.addf %114, %113 : vector<2x32xf32>
    %116 = arith.divf %114, %115 : vector<2x32xf32>
    %117 = vector.extract_strided_slice %110 {offsets = [0, 32], sizes = [2, 32], strides = [1, 1]} : vector<2x128xf32> to vector<2x32xf32>
    %118 = arith.negf %117 : vector<2x32xf32>
    %119 = math.exp %118 : vector<2x32xf32>
    %cst_35 = arith.constant 1.000000e+00 : f32
    %120 = vector.broadcast %cst_35 : f32 to vector<2x32xf32>
    %121 = arith.addf %120, %119 : vector<2x32xf32>
    %122 = arith.divf %120, %121 : vector<2x32xf32>
    %123 = vector.extract_strided_slice %110 {offsets = [0, 64], sizes = [2, 32], strides = [1, 1]} : vector<2x128xf32> to vector<2x32xf32>
    %124 = math.tanh %123 : vector<2x32xf32>
    %125 = vector.extract_strided_slice %110 {offsets = [0, 96], sizes = [2, 32], strides = [1, 1]} : vector<2x128xf32> to vector<2x32xf32>
    %126 = arith.negf %125 : vector<2x32xf32>
    %127 = math.exp %126 : vector<2x32xf32>
    %cst_36 = arith.constant 1.000000e+00 : f32
    %128 = vector.broadcast %cst_36 : f32 to vector<2x32xf32>
    %129 = arith.addf %128, %127 : vector<2x32xf32>
    %130 = arith.divf %128, %129 : vector<2x32xf32>
    %131 = arith.mulf %122, %104 : vector<2x32xf32>
    %132 = arith.mulf %116, %124 : vector<2x32xf32>
    %133 = arith.addf %131, %132 : vector<2x32xf32>
    %134 = math.tanh %133 : vector<2x32xf32>
    %135 = arith.mulf %130, %134 : vector<2x32xf32>
    %136 = tpu.concatenate %9, %135 in 1 : vector<2x4xf32>, vector<2x32xf32> -> vector<2x36xf32>
    %cst_37 = arith.constant dense<0.000000e+00> : vector<2x128xf32>
    %137 = tpu.matmul %136, %16, %cst_37 {dimension_numbers = #tpu.dot_dimension_numbers<[1], [0], [0], [1], [0, 0, 1, 1], [], []>} : vector<2x36xf32>, vector<36x128xf32>, vector<2x128xf32> -> vector<2x128xf32>
    %138 = vector.broadcast %17 : vector<1x128xf32> to vector<2x128xf32>
    %139 = arith.addf %137, %138 : vector<2x128xf32>
    %140 = vector.extract_strided_slice %139 {offsets = [0, 0], sizes = [2, 32], strides = [1, 1]} : vector<2x128xf32> to vector<2x32xf32>
    %141 = arith.negf %140 : vector<2x32xf32>
    %142 = math.exp %141 : vector<2x32xf32>
    %cst_38 = arith.constant 1.000000e+00 : f32
    %143 = vector.broadcast %cst_38 : f32 to vector<2x32xf32>
    %144 = arith.addf %143, %142 : vector<2x32xf32>
    %145 = arith.divf %143, %144 : vector<2x32xf32>
    %146 = vector.extract_strided_slice %139 {offsets = [0, 32], sizes = [2, 32], strides = [1, 1]} : vector<2x128xf32> to vector<2x32xf32>
    %147 = arith.negf %146 : vector<2x32xf32>
    %148 = math.exp %147 : vector<2x32xf32>
    %cst_39 = arith.constant 1.000000e+00 : f32
    %149 = vector.broadcast %cst_39 : f32 to vector<2x32xf32>
    %150 = arith.addf %149, %148 : vector<2x32xf32>
    %151 = arith.divf %149, %150 : vector<2x32xf32>
    %152 = vector.extract_strided_slice %139 {offsets = [0, 64], sizes = [2, 32], strides = [1, 1]} : vector<2x128xf32> to vector<2x32xf32>
    %153 = math.tanh %152 : vector<2x32xf32>
    %154 = vector.extract_strided_slice %139 {offsets = [0, 96], sizes = [2, 32], strides = [1, 1]} : vector<2x128xf32> to vector<2x32xf32>
    %155 = arith.negf %154 : vector<2x32xf32>
    %156 = math.exp %155 : vector<2x32xf32>
    %cst_40 = arith.constant 1.000000e+00 : f32
    %157 = vector.broadcast %cst_40 : f32 to vector<2x32xf32>
    %158 = arith.addf %157, %156 : vector<2x32xf32>
    %159 = arith.divf %157, %158 : vector<2x32xf32>
    %160 = arith.mulf %151, %133 : vector<2x32xf32>
    %161 = arith.mulf %145, %153 : vector<2x32xf32>
    %162 = arith.addf %160, %161 : vector<2x32xf32>
    %163 = math.tanh %162 : vector<2x32xf32>
    %164 = arith.mulf %159, %163 : vector<2x32xf32>
    %165 = tpu.concatenate %11, %164 in 1 : vector<2x4xf32>, vector<2x32xf32> -> vector<2x36xf32>
    %cst_41 = arith.constant dense<0.000000e+00> : vector<2x128xf32>
    %166 = tpu.matmul %165, %16, %cst_41 {dimension_numbers = #tpu.dot_dimension_numbers<[1], [0], [0], [1], [0, 0, 1, 1], [], []>} : vector<2x36xf32>, vector<36x128xf32>, vector<2x128xf32> -> vector<2x128xf32>
    %167 = vector.broadcast %17 : vector<1x128xf32> to vector<2x128xf32>
    %168 = arith.addf %166, %167 : vector<2x128xf32>
    %169 = vector.extract_strided_slice %168 {offsets = [0, 0], sizes = [2, 32], strides = [1, 1]} : vector<2x128xf32> to vector<2x32xf32>
    %170 = arith.negf %169 : vector<2x32xf32>
    %171 = math.exp %170 : vector<2x32xf32>
    %cst_42 = arith.constant 1.000000e+00 : f32
    %172 = vector.broadcast %cst_42 : f32 to vector<2x32xf32>
    %173 = arith.addf %172, %171 : vector<2x32xf32>
    %174 = arith.divf %172, %173 : vector<2x32xf32>
    %175 = vector.extract_strided_slice %168 {offsets = [0, 32], sizes = [2, 32], strides = [1, 1]} : vector<2x128xf32> to vector<2x32xf32>
    %176 = arith.negf %175 : vector<2x32xf32>
    %177 = math.exp %176 : vector<2x32xf32>
    %cst_43 = arith.constant 1.000000e+00 : f32
    %178 = vector.broadcast %cst_43 : f32 to vector<2x32xf32>
    %179 = arith.addf %178, %177 : vector<2x32xf32>
    %180 = arith.divf %178, %179 : vector<2x32xf32>
    %181 = vector.extract_strided_slice %168 {offsets = [0, 64], sizes = [2, 32], strides = [1, 1]} : vector<2x128xf32> to vector<2x32xf32>
    %182 = math.tanh %181 : vector<2x32xf32>
    %183 = vector.extract_strided_slice %168 {offsets = [0, 96], sizes = [2, 32], strides = [1, 1]} : vector<2x128xf32> to vector<2x32xf32>
    %184 = arith.negf %183 : vector<2x32xf32>
    %185 = math.exp %184 : vector<2x32xf32>
    %cst_44 = arith.constant 1.000000e+00 : f32
    %186 = vector.broadcast %cst_44 : f32 to vector<2x32xf32>
    %187 = arith.addf %186, %185 : vector<2x32xf32>
    %188 = arith.divf %186, %187 : vector<2x32xf32>
    %189 = arith.mulf %180, %162 : vector<2x32xf32>
    %190 = arith.mulf %174, %182 : vector<2x32xf32>
    %191 = arith.addf %189, %190 : vector<2x32xf32>
    %192 = math.tanh %191 : vector<2x32xf32>
    %193 = arith.mulf %188, %192 : vector<2x32xf32>
    %194 = tpu.concatenate %13, %193 in 1 : vector<2x4xf32>, vector<2x32xf32> -> vector<2x36xf32>
    %cst_45 = arith.constant dense<0.000000e+00> : vector<2x128xf32>
    %195 = tpu.matmul %194, %16, %cst_45 {dimension_numbers = #tpu.dot_dimension_numbers<[1], [0], [0], [1], [0, 0, 1, 1], [], []>} : vector<2x36xf32>, vector<36x128xf32>, vector<2x128xf32> -> vector<2x128xf32>
    %196 = vector.broadcast %17 : vector<1x128xf32> to vector<2x128xf32>
    %197 = arith.addf %195, %196 : vector<2x128xf32>
    %198 = vector.extract_strided_slice %197 {offsets = [0, 0], sizes = [2, 32], strides = [1, 1]} : vector<2x128xf32> to vector<2x32xf32>
    %199 = arith.negf %198 : vector<2x32xf32>
    %200 = math.exp %199 : vector<2x32xf32>
    %cst_46 = arith.constant 1.000000e+00 : f32
    %201 = vector.broadcast %cst_46 : f32 to vector<2x32xf32>
    %202 = arith.addf %201, %200 : vector<2x32xf32>
    %203 = arith.divf %201, %202 : vector<2x32xf32>
    %204 = vector.extract_strided_slice %197 {offsets = [0, 32], sizes = [2, 32], strides = [1, 1]} : vector<2x128xf32> to vector<2x32xf32>
    %205 = arith.negf %204 : vector<2x32xf32>
    %206 = math.exp %205 : vector<2x32xf32>
    %cst_47 = arith.constant 1.000000e+00 : f32
    %207 = vector.broadcast %cst_47 : f32 to vector<2x32xf32>
    %208 = arith.addf %207, %206 : vector<2x32xf32>
    %209 = arith.divf %207, %208 : vector<2x32xf32>
    %210 = vector.extract_strided_slice %197 {offsets = [0, 64], sizes = [2, 32], strides = [1, 1]} : vector<2x128xf32> to vector<2x32xf32>
    %211 = math.tanh %210 : vector<2x32xf32>
    %212 = vector.extract_strided_slice %197 {offsets = [0, 96], sizes = [2, 32], strides = [1, 1]} : vector<2x128xf32> to vector<2x32xf32>
    %213 = arith.negf %212 : vector<2x32xf32>
    %214 = math.exp %213 : vector<2x32xf32>
    %cst_48 = arith.constant 1.000000e+00 : f32
    %215 = vector.broadcast %cst_48 : f32 to vector<2x32xf32>
    %216 = arith.addf %215, %214 : vector<2x32xf32>
    %217 = arith.divf %215, %216 : vector<2x32xf32>
    %218 = arith.mulf %209, %191 : vector<2x32xf32>
    %219 = arith.mulf %203, %211 : vector<2x32xf32>
    %220 = arith.addf %218, %219 : vector<2x32xf32>
    %221 = math.tanh %220 : vector<2x32xf32>
    %222 = arith.mulf %217, %221 : vector<2x32xf32>
    %223 = tpu.concatenate %15, %222 in 1 : vector<2x4xf32>, vector<2x32xf32> -> vector<2x36xf32>
    %cst_49 = arith.constant dense<0.000000e+00> : vector<2x128xf32>
    %224 = tpu.matmul %223, %16, %cst_49 {dimension_numbers = #tpu.dot_dimension_numbers<[1], [0], [0], [1], [0, 0, 1, 1], [], []>} : vector<2x36xf32>, vector<36x128xf32>, vector<2x128xf32> -> vector<2x128xf32>
    %225 = vector.broadcast %17 : vector<1x128xf32> to vector<2x128xf32>
    %226 = arith.addf %224, %225 : vector<2x128xf32>
    %227 = vector.extract_strided_slice %226 {offsets = [0, 0], sizes = [2, 32], strides = [1, 1]} : vector<2x128xf32> to vector<2x32xf32>
    %228 = arith.negf %227 : vector<2x32xf32>
    %229 = math.exp %228 : vector<2x32xf32>
    %cst_50 = arith.constant 1.000000e+00 : f32
    %230 = vector.broadcast %cst_50 : f32 to vector<2x32xf32>
    %231 = arith.addf %230, %229 : vector<2x32xf32>
    %232 = arith.divf %230, %231 : vector<2x32xf32>
    %233 = vector.extract_strided_slice %226 {offsets = [0, 32], sizes = [2, 32], strides = [1, 1]} : vector<2x128xf32> to vector<2x32xf32>
    %234 = arith.negf %233 : vector<2x32xf32>
    %235 = math.exp %234 : vector<2x32xf32>
    %cst_51 = arith.constant 1.000000e+00 : f32
    %236 = vector.broadcast %cst_51 : f32 to vector<2x32xf32>
    %237 = arith.addf %236, %235 : vector<2x32xf32>
    %238 = arith.divf %236, %237 : vector<2x32xf32>
    %239 = vector.extract_strided_slice %226 {offsets = [0, 64], sizes = [2, 32], strides = [1, 1]} : vector<2x128xf32> to vector<2x32xf32>
    %240 = math.tanh %239 : vector<2x32xf32>
    %241 = vector.extract_strided_slice %226 {offsets = [0, 96], sizes = [2, 32], strides = [1, 1]} : vector<2x128xf32> to vector<2x32xf32>
    %242 = arith.negf %241 : vector<2x32xf32>
    %243 = math.exp %242 : vector<2x32xf32>
    %cst_52 = arith.constant 1.000000e+00 : f32
    %244 = vector.broadcast %cst_52 : f32 to vector<2x32xf32>
    %245 = arith.addf %244, %243 : vector<2x32xf32>
    %246 = arith.divf %244, %245 : vector<2x32xf32>
    %247 = arith.mulf %238, %220 : vector<2x32xf32>
    %248 = arith.mulf %232, %240 : vector<2x32xf32>
    %249 = arith.addf %247, %248 : vector<2x32xf32>
    %250 = math.tanh %249 : vector<2x32xf32>
    %251 = arith.mulf %246, %250 : vector<2x32xf32>
    %c0_53 = arith.constant 0 : index
    %c0_54 = arith.constant 0 : index
    %252 = vector.load %arg4[%c0_53, %c0_54] : memref<64x128xf32, #tpu.memory_space<vmem>>, vector<64x128xf32>
    %c0_55 = arith.constant 0 : index
    %c0_56 = arith.constant 0 : index
    %253 = vector.load %arg5[%c0_55, %c0_56] : memref<1x128xf32, #tpu.memory_space<vmem>>, vector<1x128xf32>
    %cst_57 = arith.constant 0.000000e+00 : f32
    %254 = vector.broadcast %cst_57 : f32 to vector<2x32xf32>
    %cst_58 = arith.constant 0.000000e+00 : f32
    %255 = vector.broadcast %cst_58 : f32 to vector<2x32xf32>
    %256 = tpu.concatenate %48, %254 in 1 : vector<2x32xf32>, vector<2x32xf32> -> vector<2x64xf32>
    %cst_59 = arith.constant dense<0.000000e+00> : vector<2x128xf32>
    %257 = tpu.matmul %256, %252, %cst_59 {dimension_numbers = #tpu.dot_dimension_numbers<[1], [0], [0], [1], [0, 0, 1, 1], [], []>} : vector<2x64xf32>, vector<64x128xf32>, vector<2x128xf32> -> vector<2x128xf32>
    %258 = vector.broadcast %253 : vector<1x128xf32> to vector<2x128xf32>
    %259 = arith.addf %257, %258 : vector<2x128xf32>
    %260 = vector.extract_strided_slice %259 {offsets = [0, 0], sizes = [2, 32], strides = [1, 1]} : vector<2x128xf32> to vector<2x32xf32>
    %261 = arith.negf %260 : vector<2x32xf32>
    %262 = math.exp %261 : vector<2x32xf32>
    %cst_60 = arith.constant 1.000000e+00 : f32
    %263 = vector.broadcast %cst_60 : f32 to vector<2x32xf32>
    %264 = arith.addf %263, %262 : vector<2x32xf32>
    %265 = arith.divf %263, %264 : vector<2x32xf32>
    %266 = vector.extract_strided_slice %259 {offsets = [0, 32], sizes = [2, 32], strides = [1, 1]} : vector<2x128xf32> to vector<2x32xf32>
    %267 = arith.negf %266 : vector<2x32xf32>
    %268 = math.exp %267 : vector<2x32xf32>
    %cst_61 = arith.constant 1.000000e+00 : f32
    %269 = vector.broadcast %cst_61 : f32 to vector<2x32xf32>
    %270 = arith.addf %269, %268 : vector<2x32xf32>
    %271 = arith.divf %269, %270 : vector<2x32xf32>
    %272 = vector.extract_strided_slice %259 {offsets = [0, 64], sizes = [2, 32], strides = [1, 1]} : vector<2x128xf32> to vector<2x32xf32>
    %273 = math.tanh %272 : vector<2x32xf32>
    %274 = vector.extract_strided_slice %259 {offsets = [0, 96], sizes = [2, 32], strides = [1, 1]} : vector<2x128xf32> to vector<2x32xf32>
    %275 = arith.negf %274 : vector<2x32xf32>
    %276 = math.exp %275 : vector<2x32xf32>
    %cst_62 = arith.constant 1.000000e+00 : f32
    %277 = vector.broadcast %cst_62 : f32 to vector<2x32xf32>
    %278 = arith.addf %277, %276 : vector<2x32xf32>
    %279 = arith.divf %277, %278 : vector<2x32xf32>
    %280 = arith.mulf %271, %255 : vector<2x32xf32>
    %281 = arith.mulf %265, %273 : vector<2x32xf32>
    %282 = arith.addf %280, %281 : vector<2x32xf32>
    %283 = math.tanh %282 : vector<2x32xf32>
    %284 = arith.mulf %279, %283 : vector<2x32xf32>
    %285 = tpu.concatenate %77, %284 in 1 : vector<2x32xf32>, vector<2x32xf32> -> vector<2x64xf32>
    %cst_63 = arith.constant dense<0.000000e+00> : vector<2x128xf32>
    %286 = tpu.matmul %285, %252, %cst_63 {dimension_numbers = #tpu.dot_dimension_numbers<[1], [0], [0], [1], [0, 0, 1, 1], [], []>} : vector<2x64xf32>, vector<64x128xf32>, vector<2x128xf32> -> vector<2x128xf32>
    %287 = vector.broadcast %253 : vector<1x128xf32> to vector<2x128xf32>
    %288 = arith.addf %286, %287 : vector<2x128xf32>
    %289 = vector.extract_strided_slice %288 {offsets = [0, 0], sizes = [2, 32], strides = [1, 1]} : vector<2x128xf32> to vector<2x32xf32>
    %290 = arith.negf %289 : vector<2x32xf32>
    %291 = math.exp %290 : vector<2x32xf32>
    %cst_64 = arith.constant 1.000000e+00 : f32
    %292 = vector.broadcast %cst_64 : f32 to vector<2x32xf32>
    %293 = arith.addf %292, %291 : vector<2x32xf32>
    %294 = arith.divf %292, %293 : vector<2x32xf32>
    %295 = vector.extract_strided_slice %288 {offsets = [0, 32], sizes = [2, 32], strides = [1, 1]} : vector<2x128xf32> to vector<2x32xf32>
    %296 = arith.negf %295 : vector<2x32xf32>
    %297 = math.exp %296 : vector<2x32xf32>
    %cst_65 = arith.constant 1.000000e+00 : f32
    %298 = vector.broadcast %cst_65 : f32 to vector<2x32xf32>
    %299 = arith.addf %298, %297 : vector<2x32xf32>
    %300 = arith.divf %298, %299 : vector<2x32xf32>
    %301 = vector.extract_strided_slice %288 {offsets = [0, 64], sizes = [2, 32], strides = [1, 1]} : vector<2x128xf32> to vector<2x32xf32>
    %302 = math.tanh %301 : vector<2x32xf32>
    %303 = vector.extract_strided_slice %288 {offsets = [0, 96], sizes = [2, 32], strides = [1, 1]} : vector<2x128xf32> to vector<2x32xf32>
    %304 = arith.negf %303 : vector<2x32xf32>
    %305 = math.exp %304 : vector<2x32xf32>
    %cst_66 = arith.constant 1.000000e+00 : f32
    %306 = vector.broadcast %cst_66 : f32 to vector<2x32xf32>
    %307 = arith.addf %306, %305 : vector<2x32xf32>
    %308 = arith.divf %306, %307 : vector<2x32xf32>
    %309 = arith.mulf %300, %282 : vector<2x32xf32>
    %310 = arith.mulf %294, %302 : vector<2x32xf32>
    %311 = arith.addf %309, %310 : vector<2x32xf32>
    %312 = math.tanh %311 : vector<2x32xf32>
    %313 = arith.mulf %308, %312 : vector<2x32xf32>
    %314 = tpu.concatenate %106, %313 in 1 : vector<2x32xf32>, vector<2x32xf32> -> vector<2x64xf32>
    %cst_67 = arith.constant dense<0.000000e+00> : vector<2x128xf32>
    %315 = tpu.matmul %314, %252, %cst_67 {dimension_numbers = #tpu.dot_dimension_numbers<[1], [0], [0], [1], [0, 0, 1, 1], [], []>} : vector<2x64xf32>, vector<64x128xf32>, vector<2x128xf32> -> vector<2x128xf32>
    %316 = vector.broadcast %253 : vector<1x128xf32> to vector<2x128xf32>
    %317 = arith.addf %315, %316 : vector<2x128xf32>
    %318 = vector.extract_strided_slice %317 {offsets = [0, 0], sizes = [2, 32], strides = [1, 1]} : vector<2x128xf32> to vector<2x32xf32>
    %319 = arith.negf %318 : vector<2x32xf32>
    %320 = math.exp %319 : vector<2x32xf32>
    %cst_68 = arith.constant 1.000000e+00 : f32
    %321 = vector.broadcast %cst_68 : f32 to vector<2x32xf32>
    %322 = arith.addf %321, %320 : vector<2x32xf32>
    %323 = arith.divf %321, %322 : vector<2x32xf32>
    %324 = vector.extract_strided_slice %317 {offsets = [0, 32], sizes = [2, 32], strides = [1, 1]} : vector<2x128xf32> to vector<2x32xf32>
    %325 = arith.negf %324 : vector<2x32xf32>
    %326 = math.exp %325 : vector<2x32xf32>
    %cst_69 = arith.constant 1.000000e+00 : f32
    %327 = vector.broadcast %cst_69 : f32 to vector<2x32xf32>
    %328 = arith.addf %327, %326 : vector<2x32xf32>
    %329 = arith.divf %327, %328 : vector<2x32xf32>
    %330 = vector.extract_strided_slice %317 {offsets = [0, 64], sizes = [2, 32], strides = [1, 1]} : vector<2x128xf32> to vector<2x32xf32>
    %331 = math.tanh %330 : vector<2x32xf32>
    %332 = vector.extract_strided_slice %317 {offsets = [0, 96], sizes = [2, 32], strides = [1, 1]} : vector<2x128xf32> to vector<2x32xf32>
    %333 = arith.negf %332 : vector<2x32xf32>
    %334 = math.exp %333 : vector<2x32xf32>
    %cst_70 = arith.constant 1.000000e+00 : f32
    %335 = vector.broadcast %cst_70 : f32 to vector<2x32xf32>
    %336 = arith.addf %335, %334 : vector<2x32xf32>
    %337 = arith.divf %335, %336 : vector<2x32xf32>
    %338 = arith.mulf %329, %311 : vector<2x32xf32>
    %339 = arith.mulf %323, %331 : vector<2x32xf32>
    %340 = arith.addf %338, %339 : vector<2x32xf32>
    %341 = math.tanh %340 : vector<2x32xf32>
    %342 = arith.mulf %337, %341 : vector<2x32xf32>
    %343 = tpu.concatenate %135, %342 in 1 : vector<2x32xf32>, vector<2x32xf32> -> vector<2x64xf32>
    %cst_71 = arith.constant dense<0.000000e+00> : vector<2x128xf32>
    %344 = tpu.matmul %343, %252, %cst_71 {dimension_numbers = #tpu.dot_dimension_numbers<[1], [0], [0], [1], [0, 0, 1, 1], [], []>} : vector<2x64xf32>, vector<64x128xf32>, vector<2x128xf32> -> vector<2x128xf32>
    %345 = vector.broadcast %253 : vector<1x128xf32> to vector<2x128xf32>
    %346 = arith.addf %344, %345 : vector<2x128xf32>
    %347 = vector.extract_strided_slice %346 {offsets = [0, 0], sizes = [2, 32], strides = [1, 1]} : vector<2x128xf32> to vector<2x32xf32>
    %348 = arith.negf %347 : vector<2x32xf32>
    %349 = math.exp %348 : vector<2x32xf32>
    %cst_72 = arith.constant 1.000000e+00 : f32
    %350 = vector.broadcast %cst_72 : f32 to vector<2x32xf32>
    %351 = arith.addf %350, %349 : vector<2x32xf32>
    %352 = arith.divf %350, %351 : vector<2x32xf32>
    %353 = vector.extract_strided_slice %346 {offsets = [0, 32], sizes = [2, 32], strides = [1, 1]} : vector<2x128xf32> to vector<2x32xf32>
    %354 = arith.negf %353 : vector<2x32xf32>
    %355 = math.exp %354 : vector<2x32xf32>
    %cst_73 = arith.constant 1.000000e+00 : f32
    %356 = vector.broadcast %cst_73 : f32 to vector<2x32xf32>
    %357 = arith.addf %356, %355 : vector<2x32xf32>
    %358 = arith.divf %356, %357 : vector<2x32xf32>
    %359 = vector.extract_strided_slice %346 {offsets = [0, 64], sizes = [2, 32], strides = [1, 1]} : vector<2x128xf32> to vector<2x32xf32>
    %360 = math.tanh %359 : vector<2x32xf32>
    %361 = vector.extract_strided_slice %346 {offsets = [0, 96], sizes = [2, 32], strides = [1, 1]} : vector<2x128xf32> to vector<2x32xf32>
    %362 = arith.negf %361 : vector<2x32xf32>
    %363 = math.exp %362 : vector<2x32xf32>
    %cst_74 = arith.constant 1.000000e+00 : f32
    %364 = vector.broadcast %cst_74 : f32 to vector<2x32xf32>
    %365 = arith.addf %364, %363 : vector<2x32xf32>
    %366 = arith.divf %364, %365 : vector<2x32xf32>
    %367 = arith.mulf %358, %340 : vector<2x32xf32>
    %368 = arith.mulf %352, %360 : vector<2x32xf32>
    %369 = arith.addf %367, %368 : vector<2x32xf32>
    %370 = math.tanh %369 : vector<2x32xf32>
    %371 = arith.mulf %366, %370 : vector<2x32xf32>
    %372 = tpu.concatenate %164, %371 in 1 : vector<2x32xf32>, vector<2x32xf32> -> vector<2x64xf32>
    %cst_75 = arith.constant dense<0.000000e+00> : vector<2x128xf32>
    %373 = tpu.matmul %372, %252, %cst_75 {dimension_numbers = #tpu.dot_dimension_numbers<[1], [0], [0], [1], [0, 0, 1, 1], [], []>} : vector<2x64xf32>, vector<64x128xf32>, vector<2x128xf32> -> vector<2x128xf32>
    %374 = vector.broadcast %253 : vector<1x128xf32> to vector<2x128xf32>
    %375 = arith.addf %373, %374 : vector<2x128xf32>
    %376 = vector.extract_strided_slice %375 {offsets = [0, 0], sizes = [2, 32], strides = [1, 1]} : vector<2x128xf32> to vector<2x32xf32>
    %377 = arith.negf %376 : vector<2x32xf32>
    %378 = math.exp %377 : vector<2x32xf32>
    %cst_76 = arith.constant 1.000000e+00 : f32
    %379 = vector.broadcast %cst_76 : f32 to vector<2x32xf32>
    %380 = arith.addf %379, %378 : vector<2x32xf32>
    %381 = arith.divf %379, %380 : vector<2x32xf32>
    %382 = vector.extract_strided_slice %375 {offsets = [0, 32], sizes = [2, 32], strides = [1, 1]} : vector<2x128xf32> to vector<2x32xf32>
    %383 = arith.negf %382 : vector<2x32xf32>
    %384 = math.exp %383 : vector<2x32xf32>
    %cst_77 = arith.constant 1.000000e+00 : f32
    %385 = vector.broadcast %cst_77 : f32 to vector<2x32xf32>
    %386 = arith.addf %385, %384 : vector<2x32xf32>
    %387 = arith.divf %385, %386 : vector<2x32xf32>
    %388 = vector.extract_strided_slice %375 {offsets = [0, 64], sizes = [2, 32], strides = [1, 1]} : vector<2x128xf32> to vector<2x32xf32>
    %389 = math.tanh %388 : vector<2x32xf32>
    %390 = vector.extract_strided_slice %375 {offsets = [0, 96], sizes = [2, 32], strides = [1, 1]} : vector<2x128xf32> to vector<2x32xf32>
    %391 = arith.negf %390 : vector<2x32xf32>
    %392 = math.exp %391 : vector<2x32xf32>
    %cst_78 = arith.constant 1.000000e+00 : f32
    %393 = vector.broadcast %cst_78 : f32 to vector<2x32xf32>
    %394 = arith.addf %393, %392 : vector<2x32xf32>
    %395 = arith.divf %393, %394 : vector<2x32xf32>
    %396 = arith.mulf %387, %369 : vector<2x32xf32>
    %397 = arith.mulf %381, %389 : vector<2x32xf32>
    %398 = arith.addf %396, %397 : vector<2x32xf32>
    %399 = math.tanh %398 : vector<2x32xf32>
    %400 = arith.mulf %395, %399 : vector<2x32xf32>
    %401 = tpu.concatenate %193, %400 in 1 : vector<2x32xf32>, vector<2x32xf32> -> vector<2x64xf32>
    %cst_79 = arith.constant dense<0.000000e+00> : vector<2x128xf32>
    %402 = tpu.matmul %401, %252, %cst_79 {dimension_numbers = #tpu.dot_dimension_numbers<[1], [0], [0], [1], [0, 0, 1, 1], [], []>} : vector<2x64xf32>, vector<64x128xf32>, vector<2x128xf32> -> vector<2x128xf32>
    %403 = vector.broadcast %253 : vector<1x128xf32> to vector<2x128xf32>
    %404 = arith.addf %402, %403 : vector<2x128xf32>
    %405 = vector.extract_strided_slice %404 {offsets = [0, 0], sizes = [2, 32], strides = [1, 1]} : vector<2x128xf32> to vector<2x32xf32>
    %406 = arith.negf %405 : vector<2x32xf32>
    %407 = math.exp %406 : vector<2x32xf32>
    %cst_80 = arith.constant 1.000000e+00 : f32
    %408 = vector.broadcast %cst_80 : f32 to vector<2x32xf32>
    %409 = arith.addf %408, %407 : vector<2x32xf32>
    %410 = arith.divf %408, %409 : vector<2x32xf32>
    %411 = vector.extract_strided_slice %404 {offsets = [0, 32], sizes = [2, 32], strides = [1, 1]} : vector<2x128xf32> to vector<2x32xf32>
    %412 = arith.negf %411 : vector<2x32xf32>
    %413 = math.exp %412 : vector<2x32xf32>
    %cst_81 = arith.constant 1.000000e+00 : f32
    %414 = vector.broadcast %cst_81 : f32 to vector<2x32xf32>
    %415 = arith.addf %414, %413 : vector<2x32xf32>
    %416 = arith.divf %414, %415 : vector<2x32xf32>
    %417 = vector.extract_strided_slice %404 {offsets = [0, 64], sizes = [2, 32], strides = [1, 1]} : vector<2x128xf32> to vector<2x32xf32>
    %418 = math.tanh %417 : vector<2x32xf32>
    %419 = vector.extract_strided_slice %404 {offsets = [0, 96], sizes = [2, 32], strides = [1, 1]} : vector<2x128xf32> to vector<2x32xf32>
    %420 = arith.negf %419 : vector<2x32xf32>
    %421 = math.exp %420 : vector<2x32xf32>
    %cst_82 = arith.constant 1.000000e+00 : f32
    %422 = vector.broadcast %cst_82 : f32 to vector<2x32xf32>
    %423 = arith.addf %422, %421 : vector<2x32xf32>
    %424 = arith.divf %422, %423 : vector<2x32xf32>
    %425 = arith.mulf %416, %398 : vector<2x32xf32>
    %426 = arith.mulf %410, %418 : vector<2x32xf32>
    %427 = arith.addf %425, %426 : vector<2x32xf32>
    %428 = math.tanh %427 : vector<2x32xf32>
    %429 = arith.mulf %424, %428 : vector<2x32xf32>
    %430 = tpu.concatenate %222, %429 in 1 : vector<2x32xf32>, vector<2x32xf32> -> vector<2x64xf32>
    %cst_83 = arith.constant dense<0.000000e+00> : vector<2x128xf32>
    %431 = tpu.matmul %430, %252, %cst_83 {dimension_numbers = #tpu.dot_dimension_numbers<[1], [0], [0], [1], [0, 0, 1, 1], [], []>} : vector<2x64xf32>, vector<64x128xf32>, vector<2x128xf32> -> vector<2x128xf32>
    %432 = vector.broadcast %253 : vector<1x128xf32> to vector<2x128xf32>
    %433 = arith.addf %431, %432 : vector<2x128xf32>
    %434 = vector.extract_strided_slice %433 {offsets = [0, 0], sizes = [2, 32], strides = [1, 1]} : vector<2x128xf32> to vector<2x32xf32>
    %435 = arith.negf %434 : vector<2x32xf32>
    %436 = math.exp %435 : vector<2x32xf32>
    %cst_84 = arith.constant 1.000000e+00 : f32
    %437 = vector.broadcast %cst_84 : f32 to vector<2x32xf32>
    %438 = arith.addf %437, %436 : vector<2x32xf32>
    %439 = arith.divf %437, %438 : vector<2x32xf32>
    %440 = vector.extract_strided_slice %433 {offsets = [0, 32], sizes = [2, 32], strides = [1, 1]} : vector<2x128xf32> to vector<2x32xf32>
    %441 = arith.negf %440 : vector<2x32xf32>
    %442 = math.exp %441 : vector<2x32xf32>
    %cst_85 = arith.constant 1.000000e+00 : f32
    %443 = vector.broadcast %cst_85 : f32 to vector<2x32xf32>
    %444 = arith.addf %443, %442 : vector<2x32xf32>
    %445 = arith.divf %443, %444 : vector<2x32xf32>
    %446 = vector.extract_strided_slice %433 {offsets = [0, 64], sizes = [2, 32], strides = [1, 1]} : vector<2x128xf32> to vector<2x32xf32>
    %447 = math.tanh %446 : vector<2x32xf32>
    %448 = vector.extract_strided_slice %433 {offsets = [0, 96], sizes = [2, 32], strides = [1, 1]} : vector<2x128xf32> to vector<2x32xf32>
    %449 = arith.negf %448 : vector<2x32xf32>
    %450 = math.exp %449 : vector<2x32xf32>
    %cst_86 = arith.constant 1.000000e+00 : f32
    %451 = vector.broadcast %cst_86 : f32 to vector<2x32xf32>
    %452 = arith.addf %451, %450 : vector<2x32xf32>
    %453 = arith.divf %451, %452 : vector<2x32xf32>
    %454 = arith.mulf %445, %427 : vector<2x32xf32>
    %455 = arith.mulf %439, %447 : vector<2x32xf32>
    %456 = arith.addf %454, %455 : vector<2x32xf32>
    %457 = math.tanh %456 : vector<2x32xf32>
    %458 = arith.mulf %453, %457 : vector<2x32xf32>
    %459 = tpu.concatenate %251, %458 in 1 : vector<2x32xf32>, vector<2x32xf32> -> vector<2x64xf32>
    %cst_87 = arith.constant dense<0.000000e+00> : vector<2x128xf32>
    %460 = tpu.matmul %459, %252, %cst_87 {dimension_numbers = #tpu.dot_dimension_numbers<[1], [0], [0], [1], [0, 0, 1, 1], [], []>} : vector<2x64xf32>, vector<64x128xf32>, vector<2x128xf32> -> vector<2x128xf32>
    %461 = vector.broadcast %253 : vector<1x128xf32> to vector<2x128xf32>
    %462 = arith.addf %460, %461 : vector<2x128xf32>
    %463 = vector.extract_strided_slice %462 {offsets = [0, 0], sizes = [2, 32], strides = [1, 1]} : vector<2x128xf32> to vector<2x32xf32>
    %464 = arith.negf %463 : vector<2x32xf32>
    %465 = math.exp %464 : vector<2x32xf32>
    %cst_88 = arith.constant 1.000000e+00 : f32
    %466 = vector.broadcast %cst_88 : f32 to vector<2x32xf32>
    %467 = arith.addf %466, %465 : vector<2x32xf32>
    %468 = arith.divf %466, %467 : vector<2x32xf32>
    %469 = vector.extract_strided_slice %462 {offsets = [0, 32], sizes = [2, 32], strides = [1, 1]} : vector<2x128xf32> to vector<2x32xf32>
    %470 = arith.negf %469 : vector<2x32xf32>
    %471 = math.exp %470 : vector<2x32xf32>
    %cst_89 = arith.constant 1.000000e+00 : f32
    %472 = vector.broadcast %cst_89 : f32 to vector<2x32xf32>
    %473 = arith.addf %472, %471 : vector<2x32xf32>
    %474 = arith.divf %472, %473 : vector<2x32xf32>
    %475 = vector.extract_strided_slice %462 {offsets = [0, 64], sizes = [2, 32], strides = [1, 1]} : vector<2x128xf32> to vector<2x32xf32>
    %476 = math.tanh %475 : vector<2x32xf32>
    %477 = vector.extract_strided_slice %462 {offsets = [0, 96], sizes = [2, 32], strides = [1, 1]} : vector<2x128xf32> to vector<2x32xf32>
    %478 = arith.negf %477 : vector<2x32xf32>
    %479 = math.exp %478 : vector<2x32xf32>
    %cst_90 = arith.constant 1.000000e+00 : f32
    %480 = vector.broadcast %cst_90 : f32 to vector<2x32xf32>
    %481 = arith.addf %480, %479 : vector<2x32xf32>
    %482 = arith.divf %480, %481 : vector<2x32xf32>
    %483 = arith.mulf %474, %456 : vector<2x32xf32>
    %484 = arith.mulf %468, %476 : vector<2x32xf32>
    %485 = arith.addf %483, %484 : vector<2x32xf32>
    %486 = math.tanh %485 : vector<2x32xf32>
    %487 = arith.mulf %482, %486 : vector<2x32xf32>
    %c0_91 = arith.constant 0 : index
    %c0_92 = arith.constant 0 : index
    %488 = vector.load %arg6[%c0_91, %c0_92] : memref<64x128xf32, #tpu.memory_space<vmem>>, vector<64x128xf32>
    %c0_93 = arith.constant 0 : index
    %c0_94 = arith.constant 0 : index
    %489 = vector.load %arg7[%c0_93, %c0_94] : memref<1x128xf32, #tpu.memory_space<vmem>>, vector<1x128xf32>
    %cst_95 = arith.constant 0.000000e+00 : f32
    %490 = vector.broadcast %cst_95 : f32 to vector<2x32xf32>
    %cst_96 = arith.constant 0.000000e+00 : f32
    %491 = vector.broadcast %cst_96 : f32 to vector<2x32xf32>
    %492 = tpu.concatenate %284, %490 in 1 : vector<2x32xf32>, vector<2x32xf32> -> vector<2x64xf32>
    %cst_97 = arith.constant dense<0.000000e+00> : vector<2x128xf32>
    %493 = tpu.matmul %492, %488, %cst_97 {dimension_numbers = #tpu.dot_dimension_numbers<[1], [0], [0], [1], [0, 0, 1, 1], [], []>} : vector<2x64xf32>, vector<64x128xf32>, vector<2x128xf32> -> vector<2x128xf32>
    %494 = vector.broadcast %489 : vector<1x128xf32> to vector<2x128xf32>
    %495 = arith.addf %493, %494 : vector<2x128xf32>
    %496 = vector.extract_strided_slice %495 {offsets = [0, 0], sizes = [2, 32], strides = [1, 1]} : vector<2x128xf32> to vector<2x32xf32>
    %497 = arith.negf %496 : vector<2x32xf32>
    %498 = math.exp %497 : vector<2x32xf32>
    %cst_98 = arith.constant 1.000000e+00 : f32
    %499 = vector.broadcast %cst_98 : f32 to vector<2x32xf32>
    %500 = arith.addf %499, %498 : vector<2x32xf32>
    %501 = arith.divf %499, %500 : vector<2x32xf32>
    %502 = vector.extract_strided_slice %495 {offsets = [0, 32], sizes = [2, 32], strides = [1, 1]} : vector<2x128xf32> to vector<2x32xf32>
    %503 = arith.negf %502 : vector<2x32xf32>
    %504 = math.exp %503 : vector<2x32xf32>
    %cst_99 = arith.constant 1.000000e+00 : f32
    %505 = vector.broadcast %cst_99 : f32 to vector<2x32xf32>
    %506 = arith.addf %505, %504 : vector<2x32xf32>
    %507 = arith.divf %505, %506 : vector<2x32xf32>
    %508 = vector.extract_strided_slice %495 {offsets = [0, 64], sizes = [2, 32], strides = [1, 1]} : vector<2x128xf32> to vector<2x32xf32>
    %509 = math.tanh %508 : vector<2x32xf32>
    %510 = vector.extract_strided_slice %495 {offsets = [0, 96], sizes = [2, 32], strides = [1, 1]} : vector<2x128xf32> to vector<2x32xf32>
    %511 = arith.negf %510 : vector<2x32xf32>
    %512 = math.exp %511 : vector<2x32xf32>
    %cst_100 = arith.constant 1.000000e+00 : f32
    %513 = vector.broadcast %cst_100 : f32 to vector<2x32xf32>
    %514 = arith.addf %513, %512 : vector<2x32xf32>
    %515 = arith.divf %513, %514 : vector<2x32xf32>
    %516 = arith.mulf %507, %491 : vector<2x32xf32>
    %517 = arith.mulf %501, %509 : vector<2x32xf32>
    %518 = arith.addf %516, %517 : vector<2x32xf32>
    %519 = math.tanh %518 : vector<2x32xf32>
    %520 = arith.mulf %515, %519 : vector<2x32xf32>
    %521 = tpu.concatenate %313, %520 in 1 : vector<2x32xf32>, vector<2x32xf32> -> vector<2x64xf32>
    %cst_101 = arith.constant dense<0.000000e+00> : vector<2x128xf32>
    %522 = tpu.matmul %521, %488, %cst_101 {dimension_numbers = #tpu.dot_dimension_numbers<[1], [0], [0], [1], [0, 0, 1, 1], [], []>} : vector<2x64xf32>, vector<64x128xf32>, vector<2x128xf32> -> vector<2x128xf32>
    %523 = vector.broadcast %489 : vector<1x128xf32> to vector<2x128xf32>
    %524 = arith.addf %522, %523 : vector<2x128xf32>
    %525 = vector.extract_strided_slice %524 {offsets = [0, 0], sizes = [2, 32], strides = [1, 1]} : vector<2x128xf32> to vector<2x32xf32>
    %526 = arith.negf %525 : vector<2x32xf32>
    %527 = math.exp %526 : vector<2x32xf32>
    %cst_102 = arith.constant 1.000000e+00 : f32
    %528 = vector.broadcast %cst_102 : f32 to vector<2x32xf32>
    %529 = arith.addf %528, %527 : vector<2x32xf32>
    %530 = arith.divf %528, %529 : vector<2x32xf32>
    %531 = vector.extract_strided_slice %524 {offsets = [0, 32], sizes = [2, 32], strides = [1, 1]} : vector<2x128xf32> to vector<2x32xf32>
    %532 = arith.negf %531 : vector<2x32xf32>
    %533 = math.exp %532 : vector<2x32xf32>
    %cst_103 = arith.constant 1.000000e+00 : f32
    %534 = vector.broadcast %cst_103 : f32 to vector<2x32xf32>
    %535 = arith.addf %534, %533 : vector<2x32xf32>
    %536 = arith.divf %534, %535 : vector<2x32xf32>
    %537 = vector.extract_strided_slice %524 {offsets = [0, 64], sizes = [2, 32], strides = [1, 1]} : vector<2x128xf32> to vector<2x32xf32>
    %538 = math.tanh %537 : vector<2x32xf32>
    %539 = vector.extract_strided_slice %524 {offsets = [0, 96], sizes = [2, 32], strides = [1, 1]} : vector<2x128xf32> to vector<2x32xf32>
    %540 = arith.negf %539 : vector<2x32xf32>
    %541 = math.exp %540 : vector<2x32xf32>
    %cst_104 = arith.constant 1.000000e+00 : f32
    %542 = vector.broadcast %cst_104 : f32 to vector<2x32xf32>
    %543 = arith.addf %542, %541 : vector<2x32xf32>
    %544 = arith.divf %542, %543 : vector<2x32xf32>
    %545 = arith.mulf %536, %518 : vector<2x32xf32>
    %546 = arith.mulf %530, %538 : vector<2x32xf32>
    %547 = arith.addf %545, %546 : vector<2x32xf32>
    %548 = math.tanh %547 : vector<2x32xf32>
    %549 = arith.mulf %544, %548 : vector<2x32xf32>
    %550 = tpu.concatenate %342, %549 in 1 : vector<2x32xf32>, vector<2x32xf32> -> vector<2x64xf32>
    %cst_105 = arith.constant dense<0.000000e+00> : vector<2x128xf32>
    %551 = tpu.matmul %550, %488, %cst_105 {dimension_numbers = #tpu.dot_dimension_numbers<[1], [0], [0], [1], [0, 0, 1, 1], [], []>} : vector<2x64xf32>, vector<64x128xf32>, vector<2x128xf32> -> vector<2x128xf32>
    %552 = vector.broadcast %489 : vector<1x128xf32> to vector<2x128xf32>
    %553 = arith.addf %551, %552 : vector<2x128xf32>
    %554 = vector.extract_strided_slice %553 {offsets = [0, 0], sizes = [2, 32], strides = [1, 1]} : vector<2x128xf32> to vector<2x32xf32>
    %555 = arith.negf %554 : vector<2x32xf32>
    %556 = math.exp %555 : vector<2x32xf32>
    %cst_106 = arith.constant 1.000000e+00 : f32
    %557 = vector.broadcast %cst_106 : f32 to vector<2x32xf32>
    %558 = arith.addf %557, %556 : vector<2x32xf32>
    %559 = arith.divf %557, %558 : vector<2x32xf32>
    %560 = vector.extract_strided_slice %553 {offsets = [0, 32], sizes = [2, 32], strides = [1, 1]} : vector<2x128xf32> to vector<2x32xf32>
    %561 = arith.negf %560 : vector<2x32xf32>
    %562 = math.exp %561 : vector<2x32xf32>
    %cst_107 = arith.constant 1.000000e+00 : f32
    %563 = vector.broadcast %cst_107 : f32 to vector<2x32xf32>
    %564 = arith.addf %563, %562 : vector<2x32xf32>
    %565 = arith.divf %563, %564 : vector<2x32xf32>
    %566 = vector.extract_strided_slice %553 {offsets = [0, 64], sizes = [2, 32], strides = [1, 1]} : vector<2x128xf32> to vector<2x32xf32>
    %567 = math.tanh %566 : vector<2x32xf32>
    %568 = vector.extract_strided_slice %553 {offsets = [0, 96], sizes = [2, 32], strides = [1, 1]} : vector<2x128xf32> to vector<2x32xf32>
    %569 = arith.negf %568 : vector<2x32xf32>
    %570 = math.exp %569 : vector<2x32xf32>
    %cst_108 = arith.constant 1.000000e+00 : f32
    %571 = vector.broadcast %cst_108 : f32 to vector<2x32xf32>
    %572 = arith.addf %571, %570 : vector<2x32xf32>
    %573 = arith.divf %571, %572 : vector<2x32xf32>
    %574 = arith.mulf %565, %547 : vector<2x32xf32>
    %575 = arith.mulf %559, %567 : vector<2x32xf32>
    %576 = arith.addf %574, %575 : vector<2x32xf32>
    %577 = math.tanh %576 : vector<2x32xf32>
    %578 = arith.mulf %573, %577 : vector<2x32xf32>
    %579 = tpu.concatenate %371, %578 in 1 : vector<2x32xf32>, vector<2x32xf32> -> vector<2x64xf32>
    %cst_109 = arith.constant dense<0.000000e+00> : vector<2x128xf32>
    %580 = tpu.matmul %579, %488, %cst_109 {dimension_numbers = #tpu.dot_dimension_numbers<[1], [0], [0], [1], [0, 0, 1, 1], [], []>} : vector<2x64xf32>, vector<64x128xf32>, vector<2x128xf32> -> vector<2x128xf32>
    %581 = vector.broadcast %489 : vector<1x128xf32> to vector<2x128xf32>
    %582 = arith.addf %580, %581 : vector<2x128xf32>
    %583 = vector.extract_strided_slice %582 {offsets = [0, 0], sizes = [2, 32], strides = [1, 1]} : vector<2x128xf32> to vector<2x32xf32>
    %584 = arith.negf %583 : vector<2x32xf32>
    %585 = math.exp %584 : vector<2x32xf32>
    %cst_110 = arith.constant 1.000000e+00 : f32
    %586 = vector.broadcast %cst_110 : f32 to vector<2x32xf32>
    %587 = arith.addf %586, %585 : vector<2x32xf32>
    %588 = arith.divf %586, %587 : vector<2x32xf32>
    %589 = vector.extract_strided_slice %582 {offsets = [0, 32], sizes = [2, 32], strides = [1, 1]} : vector<2x128xf32> to vector<2x32xf32>
    %590 = arith.negf %589 : vector<2x32xf32>
    %591 = math.exp %590 : vector<2x32xf32>
    %cst_111 = arith.constant 1.000000e+00 : f32
    %592 = vector.broadcast %cst_111 : f32 to vector<2x32xf32>
    %593 = arith.addf %592, %591 : vector<2x32xf32>
    %594 = arith.divf %592, %593 : vector<2x32xf32>
    %595 = vector.extract_strided_slice %582 {offsets = [0, 64], sizes = [2, 32], strides = [1, 1]} : vector<2x128xf32> to vector<2x32xf32>
    %596 = math.tanh %595 : vector<2x32xf32>
    %597 = vector.extract_strided_slice %582 {offsets = [0, 96], sizes = [2, 32], strides = [1, 1]} : vector<2x128xf32> to vector<2x32xf32>
    %598 = arith.negf %597 : vector<2x32xf32>
    %599 = math.exp %598 : vector<2x32xf32>
    %cst_112 = arith.constant 1.000000e+00 : f32
    %600 = vector.broadcast %cst_112 : f32 to vector<2x32xf32>
    %601 = arith.addf %600, %599 : vector<2x32xf32>
    %602 = arith.divf %600, %601 : vector<2x32xf32>
    %603 = arith.mulf %594, %576 : vector<2x32xf32>
    %604 = arith.mulf %588, %596 : vector<2x32xf32>
    %605 = arith.addf %603, %604 : vector<2x32xf32>
    %606 = math.tanh %605 : vector<2x32xf32>
    %607 = arith.mulf %602, %606 : vector<2x32xf32>
    %608 = tpu.concatenate %400, %607 in 1 : vector<2x32xf32>, vector<2x32xf32> -> vector<2x64xf32>
    %cst_113 = arith.constant dense<0.000000e+00> : vector<2x128xf32>
    %609 = tpu.matmul %608, %488, %cst_113 {dimension_numbers = #tpu.dot_dimension_numbers<[1], [0], [0], [1], [0, 0, 1, 1], [], []>} : vector<2x64xf32>, vector<64x128xf32>, vector<2x128xf32> -> vector<2x128xf32>
    %610 = vector.broadcast %489 : vector<1x128xf32> to vector<2x128xf32>
    %611 = arith.addf %609, %610 : vector<2x128xf32>
    %612 = vector.extract_strided_slice %611 {offsets = [0, 0], sizes = [2, 32], strides = [1, 1]} : vector<2x128xf32> to vector<2x32xf32>
    %613 = arith.negf %612 : vector<2x32xf32>
    %614 = math.exp %613 : vector<2x32xf32>
    %cst_114 = arith.constant 1.000000e+00 : f32
    %615 = vector.broadcast %cst_114 : f32 to vector<2x32xf32>
    %616 = arith.addf %615, %614 : vector<2x32xf32>
    %617 = arith.divf %615, %616 : vector<2x32xf32>
    %618 = vector.extract_strided_slice %611 {offsets = [0, 32], sizes = [2, 32], strides = [1, 1]} : vector<2x128xf32> to vector<2x32xf32>
    %619 = arith.negf %618 : vector<2x32xf32>
    %620 = math.exp %619 : vector<2x32xf32>
    %cst_115 = arith.constant 1.000000e+00 : f32
    %621 = vector.broadcast %cst_115 : f32 to vector<2x32xf32>
    %622 = arith.addf %621, %620 : vector<2x32xf32>
    %623 = arith.divf %621, %622 : vector<2x32xf32>
    %624 = vector.extract_strided_slice %611 {offsets = [0, 64], sizes = [2, 32], strides = [1, 1]} : vector<2x128xf32> to vector<2x32xf32>
    %625 = math.tanh %624 : vector<2x32xf32>
    %626 = vector.extract_strided_slice %611 {offsets = [0, 96], sizes = [2, 32], strides = [1, 1]} : vector<2x128xf32> to vector<2x32xf32>
    %627 = arith.negf %626 : vector<2x32xf32>
    %628 = math.exp %627 : vector<2x32xf32>
    %cst_116 = arith.constant 1.000000e+00 : f32
    %629 = vector.broadcast %cst_116 : f32 to vector<2x32xf32>
    %630 = arith.addf %629, %628 : vector<2x32xf32>
    %631 = arith.divf %629, %630 : vector<2x32xf32>
    %632 = arith.mulf %623, %605 : vector<2x32xf32>
    %633 = arith.mulf %617, %625 : vector<2x32xf32>
    %634 = arith.addf %632, %633 : vector<2x32xf32>
    %635 = math.tanh %634 : vector<2x32xf32>
    %636 = arith.mulf %631, %635 : vector<2x32xf32>
    %637 = tpu.concatenate %429, %636 in 1 : vector<2x32xf32>, vector<2x32xf32> -> vector<2x64xf32>
    %cst_117 = arith.constant dense<0.000000e+00> : vector<2x128xf32>
    %638 = tpu.matmul %637, %488, %cst_117 {dimension_numbers = #tpu.dot_dimension_numbers<[1], [0], [0], [1], [0, 0, 1, 1], [], []>} : vector<2x64xf32>, vector<64x128xf32>, vector<2x128xf32> -> vector<2x128xf32>
    %639 = vector.broadcast %489 : vector<1x128xf32> to vector<2x128xf32>
    %640 = arith.addf %638, %639 : vector<2x128xf32>
    %641 = vector.extract_strided_slice %640 {offsets = [0, 0], sizes = [2, 32], strides = [1, 1]} : vector<2x128xf32> to vector<2x32xf32>
    %642 = arith.negf %641 : vector<2x32xf32>
    %643 = math.exp %642 : vector<2x32xf32>
    %cst_118 = arith.constant 1.000000e+00 : f32
    %644 = vector.broadcast %cst_118 : f32 to vector<2x32xf32>
    %645 = arith.addf %644, %643 : vector<2x32xf32>
    %646 = arith.divf %644, %645 : vector<2x32xf32>
    %647 = vector.extract_strided_slice %640 {offsets = [0, 32], sizes = [2, 32], strides = [1, 1]} : vector<2x128xf32> to vector<2x32xf32>
    %648 = arith.negf %647 : vector<2x32xf32>
    %649 = math.exp %648 : vector<2x32xf32>
    %cst_119 = arith.constant 1.000000e+00 : f32
    %650 = vector.broadcast %cst_119 : f32 to vector<2x32xf32>
    %651 = arith.addf %650, %649 : vector<2x32xf32>
    %652 = arith.divf %650, %651 : vector<2x32xf32>
    %653 = vector.extract_strided_slice %640 {offsets = [0, 64], sizes = [2, 32], strides = [1, 1]} : vector<2x128xf32> to vector<2x32xf32>
    %654 = math.tanh %653 : vector<2x32xf32>
    %655 = vector.extract_strided_slice %640 {offsets = [0, 96], sizes = [2, 32], strides = [1, 1]} : vector<2x128xf32> to vector<2x32xf32>
    %656 = arith.negf %655 : vector<2x32xf32>
    %657 = math.exp %656 : vector<2x32xf32>
    %cst_120 = arith.constant 1.000000e+00 : f32
    %658 = vector.broadcast %cst_120 : f32 to vector<2x32xf32>
    %659 = arith.addf %658, %657 : vector<2x32xf32>
    %660 = arith.divf %658, %659 : vector<2x32xf32>
    %661 = arith.mulf %652, %634 : vector<2x32xf32>
    %662 = arith.mulf %646, %654 : vector<2x32xf32>
    %663 = arith.addf %661, %662 : vector<2x32xf32>
    %664 = math.tanh %663 : vector<2x32xf32>
    %665 = arith.mulf %660, %664 : vector<2x32xf32>
    %666 = tpu.concatenate %458, %665 in 1 : vector<2x32xf32>, vector<2x32xf32> -> vector<2x64xf32>
    %cst_121 = arith.constant dense<0.000000e+00> : vector<2x128xf32>
    %667 = tpu.matmul %666, %488, %cst_121 {dimension_numbers = #tpu.dot_dimension_numbers<[1], [0], [0], [1], [0, 0, 1, 1], [], []>} : vector<2x64xf32>, vector<64x128xf32>, vector<2x128xf32> -> vector<2x128xf32>
    %668 = vector.broadcast %489 : vector<1x128xf32> to vector<2x128xf32>
    %669 = arith.addf %667, %668 : vector<2x128xf32>
    %670 = vector.extract_strided_slice %669 {offsets = [0, 0], sizes = [2, 32], strides = [1, 1]} : vector<2x128xf32> to vector<2x32xf32>
    %671 = arith.negf %670 : vector<2x32xf32>
    %672 = math.exp %671 : vector<2x32xf32>
    %cst_122 = arith.constant 1.000000e+00 : f32
    %673 = vector.broadcast %cst_122 : f32 to vector<2x32xf32>
    %674 = arith.addf %673, %672 : vector<2x32xf32>
    %675 = arith.divf %673, %674 : vector<2x32xf32>
    %676 = vector.extract_strided_slice %669 {offsets = [0, 32], sizes = [2, 32], strides = [1, 1]} : vector<2x128xf32> to vector<2x32xf32>
    %677 = arith.negf %676 : vector<2x32xf32>
    %678 = math.exp %677 : vector<2x32xf32>
    %cst_123 = arith.constant 1.000000e+00 : f32
    %679 = vector.broadcast %cst_123 : f32 to vector<2x32xf32>
    %680 = arith.addf %679, %678 : vector<2x32xf32>
    %681 = arith.divf %679, %680 : vector<2x32xf32>
    %682 = vector.extract_strided_slice %669 {offsets = [0, 64], sizes = [2, 32], strides = [1, 1]} : vector<2x128xf32> to vector<2x32xf32>
    %683 = math.tanh %682 : vector<2x32xf32>
    %684 = vector.extract_strided_slice %669 {offsets = [0, 96], sizes = [2, 32], strides = [1, 1]} : vector<2x128xf32> to vector<2x32xf32>
    %685 = arith.negf %684 : vector<2x32xf32>
    %686 = math.exp %685 : vector<2x32xf32>
    %cst_124 = arith.constant 1.000000e+00 : f32
    %687 = vector.broadcast %cst_124 : f32 to vector<2x32xf32>
    %688 = arith.addf %687, %686 : vector<2x32xf32>
    %689 = arith.divf %687, %688 : vector<2x32xf32>
    %690 = arith.mulf %681, %663 : vector<2x32xf32>
    %691 = arith.mulf %675, %683 : vector<2x32xf32>
    %692 = arith.addf %690, %691 : vector<2x32xf32>
    %693 = math.tanh %692 : vector<2x32xf32>
    %694 = arith.mulf %689, %693 : vector<2x32xf32>
    %695 = tpu.concatenate %487, %694 in 1 : vector<2x32xf32>, vector<2x32xf32> -> vector<2x64xf32>
    %cst_125 = arith.constant dense<0.000000e+00> : vector<2x128xf32>
    %696 = tpu.matmul %695, %488, %cst_125 {dimension_numbers = #tpu.dot_dimension_numbers<[1], [0], [0], [1], [0, 0, 1, 1], [], []>} : vector<2x64xf32>, vector<64x128xf32>, vector<2x128xf32> -> vector<2x128xf32>
    %697 = vector.broadcast %489 : vector<1x128xf32> to vector<2x128xf32>
    %698 = arith.addf %696, %697 : vector<2x128xf32>
    %699 = vector.extract_strided_slice %698 {offsets = [0, 0], sizes = [2, 32], strides = [1, 1]} : vector<2x128xf32> to vector<2x32xf32>
    %700 = arith.negf %699 : vector<2x32xf32>
    %701 = math.exp %700 : vector<2x32xf32>
    %cst_126 = arith.constant 1.000000e+00 : f32
    %702 = vector.broadcast %cst_126 : f32 to vector<2x32xf32>
    %703 = arith.addf %702, %701 : vector<2x32xf32>
    %704 = arith.divf %702, %703 : vector<2x32xf32>
    %705 = vector.extract_strided_slice %698 {offsets = [0, 32], sizes = [2, 32], strides = [1, 1]} : vector<2x128xf32> to vector<2x32xf32>
    %706 = arith.negf %705 : vector<2x32xf32>
    %707 = math.exp %706 : vector<2x32xf32>
    %cst_127 = arith.constant 1.000000e+00 : f32
    %708 = vector.broadcast %cst_127 : f32 to vector<2x32xf32>
    %709 = arith.addf %708, %707 : vector<2x32xf32>
    %710 = arith.divf %708, %709 : vector<2x32xf32>
    %711 = vector.extract_strided_slice %698 {offsets = [0, 64], sizes = [2, 32], strides = [1, 1]} : vector<2x128xf32> to vector<2x32xf32>
    %712 = math.tanh %711 : vector<2x32xf32>
    %713 = vector.extract_strided_slice %698 {offsets = [0, 96], sizes = [2, 32], strides = [1, 1]} : vector<2x128xf32> to vector<2x32xf32>
    %714 = arith.negf %713 : vector<2x32xf32>
    %715 = math.exp %714 : vector<2x32xf32>
    %cst_128 = arith.constant 1.000000e+00 : f32
    %716 = vector.broadcast %cst_128 : f32 to vector<2x32xf32>
    %717 = arith.addf %716, %715 : vector<2x32xf32>
    %718 = arith.divf %716, %717 : vector<2x32xf32>
    %719 = arith.mulf %710, %692 : vector<2x32xf32>
    %720 = arith.mulf %704, %712 : vector<2x32xf32>
    %721 = arith.addf %719, %720 : vector<2x32xf32>
    %722 = math.tanh %721 : vector<2x32xf32>
    %723 = arith.mulf %718, %722 : vector<2x32xf32>
    %c0_129 = arith.constant 0 : index
    %c0_130 = arith.constant 0 : index
    %724 = vector.load %arg8[%c0_129, %c0_130] : memref<64x128xf32, #tpu.memory_space<vmem>>, vector<64x128xf32>
    %c0_131 = arith.constant 0 : index
    %c0_132 = arith.constant 0 : index
    %725 = vector.load %arg9[%c0_131, %c0_132] : memref<1x128xf32, #tpu.memory_space<vmem>>, vector<1x128xf32>
    %cst_133 = arith.constant 0.000000e+00 : f32
    %726 = vector.broadcast %cst_133 : f32 to vector<2x32xf32>
    %cst_134 = arith.constant 0.000000e+00 : f32
    %727 = vector.broadcast %cst_134 : f32 to vector<2x32xf32>
    %728 = tpu.concatenate %520, %726 in 1 : vector<2x32xf32>, vector<2x32xf32> -> vector<2x64xf32>
    %cst_135 = arith.constant dense<0.000000e+00> : vector<2x128xf32>
    %729 = tpu.matmul %728, %724, %cst_135 {dimension_numbers = #tpu.dot_dimension_numbers<[1], [0], [0], [1], [0, 0, 1, 1], [], []>} : vector<2x64xf32>, vector<64x128xf32>, vector<2x128xf32> -> vector<2x128xf32>
    %730 = vector.broadcast %725 : vector<1x128xf32> to vector<2x128xf32>
    %731 = arith.addf %729, %730 : vector<2x128xf32>
    %732 = vector.extract_strided_slice %731 {offsets = [0, 0], sizes = [2, 32], strides = [1, 1]} : vector<2x128xf32> to vector<2x32xf32>
    %733 = arith.negf %732 : vector<2x32xf32>
    %734 = math.exp %733 : vector<2x32xf32>
    %cst_136 = arith.constant 1.000000e+00 : f32
    %735 = vector.broadcast %cst_136 : f32 to vector<2x32xf32>
    %736 = arith.addf %735, %734 : vector<2x32xf32>
    %737 = arith.divf %735, %736 : vector<2x32xf32>
    %738 = vector.extract_strided_slice %731 {offsets = [0, 32], sizes = [2, 32], strides = [1, 1]} : vector<2x128xf32> to vector<2x32xf32>
    %739 = arith.negf %738 : vector<2x32xf32>
    %740 = math.exp %739 : vector<2x32xf32>
    %cst_137 = arith.constant 1.000000e+00 : f32
    %741 = vector.broadcast %cst_137 : f32 to vector<2x32xf32>
    %742 = arith.addf %741, %740 : vector<2x32xf32>
    %743 = arith.divf %741, %742 : vector<2x32xf32>
    %744 = vector.extract_strided_slice %731 {offsets = [0, 64], sizes = [2, 32], strides = [1, 1]} : vector<2x128xf32> to vector<2x32xf32>
    %745 = math.tanh %744 : vector<2x32xf32>
    %746 = vector.extract_strided_slice %731 {offsets = [0, 96], sizes = [2, 32], strides = [1, 1]} : vector<2x128xf32> to vector<2x32xf32>
    %747 = arith.negf %746 : vector<2x32xf32>
    %748 = math.exp %747 : vector<2x32xf32>
    %cst_138 = arith.constant 1.000000e+00 : f32
    %749 = vector.broadcast %cst_138 : f32 to vector<2x32xf32>
    %750 = arith.addf %749, %748 : vector<2x32xf32>
    %751 = arith.divf %749, %750 : vector<2x32xf32>
    %752 = arith.mulf %743, %727 : vector<2x32xf32>
    %753 = arith.mulf %737, %745 : vector<2x32xf32>
    %754 = arith.addf %752, %753 : vector<2x32xf32>
    %755 = math.tanh %754 : vector<2x32xf32>
    %756 = arith.mulf %751, %755 : vector<2x32xf32>
    %757 = tpu.concatenate %549, %756 in 1 : vector<2x32xf32>, vector<2x32xf32> -> vector<2x64xf32>
    %cst_139 = arith.constant dense<0.000000e+00> : vector<2x128xf32>
    %758 = tpu.matmul %757, %724, %cst_139 {dimension_numbers = #tpu.dot_dimension_numbers<[1], [0], [0], [1], [0, 0, 1, 1], [], []>} : vector<2x64xf32>, vector<64x128xf32>, vector<2x128xf32> -> vector<2x128xf32>
    %759 = vector.broadcast %725 : vector<1x128xf32> to vector<2x128xf32>
    %760 = arith.addf %758, %759 : vector<2x128xf32>
    %761 = vector.extract_strided_slice %760 {offsets = [0, 0], sizes = [2, 32], strides = [1, 1]} : vector<2x128xf32> to vector<2x32xf32>
    %762 = arith.negf %761 : vector<2x32xf32>
    %763 = math.exp %762 : vector<2x32xf32>
    %cst_140 = arith.constant 1.000000e+00 : f32
    %764 = vector.broadcast %cst_140 : f32 to vector<2x32xf32>
    %765 = arith.addf %764, %763 : vector<2x32xf32>
    %766 = arith.divf %764, %765 : vector<2x32xf32>
    %767 = vector.extract_strided_slice %760 {offsets = [0, 32], sizes = [2, 32], strides = [1, 1]} : vector<2x128xf32> to vector<2x32xf32>
    %768 = arith.negf %767 : vector<2x32xf32>
    %769 = math.exp %768 : vector<2x32xf32>
    %cst_141 = arith.constant 1.000000e+00 : f32
    %770 = vector.broadcast %cst_141 : f32 to vector<2x32xf32>
    %771 = arith.addf %770, %769 : vector<2x32xf32>
    %772 = arith.divf %770, %771 : vector<2x32xf32>
    %773 = vector.extract_strided_slice %760 {offsets = [0, 64], sizes = [2, 32], strides = [1, 1]} : vector<2x128xf32> to vector<2x32xf32>
    %774 = math.tanh %773 : vector<2x32xf32>
    %775 = vector.extract_strided_slice %760 {offsets = [0, 96], sizes = [2, 32], strides = [1, 1]} : vector<2x128xf32> to vector<2x32xf32>
    %776 = arith.negf %775 : vector<2x32xf32>
    %777 = math.exp %776 : vector<2x32xf32>
    %cst_142 = arith.constant 1.000000e+00 : f32
    %778 = vector.broadcast %cst_142 : f32 to vector<2x32xf32>
    %779 = arith.addf %778, %777 : vector<2x32xf32>
    %780 = arith.divf %778, %779 : vector<2x32xf32>
    %781 = arith.mulf %772, %754 : vector<2x32xf32>
    %782 = arith.mulf %766, %774 : vector<2x32xf32>
    %783 = arith.addf %781, %782 : vector<2x32xf32>
    %784 = math.tanh %783 : vector<2x32xf32>
    %785 = arith.mulf %780, %784 : vector<2x32xf32>
    %786 = tpu.concatenate %578, %785 in 1 : vector<2x32xf32>, vector<2x32xf32> -> vector<2x64xf32>
    %cst_143 = arith.constant dense<0.000000e+00> : vector<2x128xf32>
    %787 = tpu.matmul %786, %724, %cst_143 {dimension_numbers = #tpu.dot_dimension_numbers<[1], [0], [0], [1], [0, 0, 1, 1], [], []>} : vector<2x64xf32>, vector<64x128xf32>, vector<2x128xf32> -> vector<2x128xf32>
    %788 = vector.broadcast %725 : vector<1x128xf32> to vector<2x128xf32>
    %789 = arith.addf %787, %788 : vector<2x128xf32>
    %790 = vector.extract_strided_slice %789 {offsets = [0, 0], sizes = [2, 32], strides = [1, 1]} : vector<2x128xf32> to vector<2x32xf32>
    %791 = arith.negf %790 : vector<2x32xf32>
    %792 = math.exp %791 : vector<2x32xf32>
    %cst_144 = arith.constant 1.000000e+00 : f32
    %793 = vector.broadcast %cst_144 : f32 to vector<2x32xf32>
    %794 = arith.addf %793, %792 : vector<2x32xf32>
    %795 = arith.divf %793, %794 : vector<2x32xf32>
    %796 = vector.extract_strided_slice %789 {offsets = [0, 32], sizes = [2, 32], strides = [1, 1]} : vector<2x128xf32> to vector<2x32xf32>
    %797 = arith.negf %796 : vector<2x32xf32>
    %798 = math.exp %797 : vector<2x32xf32>
    %cst_145 = arith.constant 1.000000e+00 : f32
    %799 = vector.broadcast %cst_145 : f32 to vector<2x32xf32>
    %800 = arith.addf %799, %798 : vector<2x32xf32>
    %801 = arith.divf %799, %800 : vector<2x32xf32>
    %802 = vector.extract_strided_slice %789 {offsets = [0, 64], sizes = [2, 32], strides = [1, 1]} : vector<2x128xf32> to vector<2x32xf32>
    %803 = math.tanh %802 : vector<2x32xf32>
    %804 = vector.extract_strided_slice %789 {offsets = [0, 96], sizes = [2, 32], strides = [1, 1]} : vector<2x128xf32> to vector<2x32xf32>
    %805 = arith.negf %804 : vector<2x32xf32>
    %806 = math.exp %805 : vector<2x32xf32>
    %cst_146 = arith.constant 1.000000e+00 : f32
    %807 = vector.broadcast %cst_146 : f32 to vector<2x32xf32>
    %808 = arith.addf %807, %806 : vector<2x32xf32>
    %809 = arith.divf %807, %808 : vector<2x32xf32>
    %810 = arith.mulf %801, %783 : vector<2x32xf32>
    %811 = arith.mulf %795, %803 : vector<2x32xf32>
    %812 = arith.addf %810, %811 : vector<2x32xf32>
    %813 = math.tanh %812 : vector<2x32xf32>
    %814 = arith.mulf %809, %813 : vector<2x32xf32>
    %815 = tpu.concatenate %607, %814 in 1 : vector<2x32xf32>, vector<2x32xf32> -> vector<2x64xf32>
    %cst_147 = arith.constant dense<0.000000e+00> : vector<2x128xf32>
    %816 = tpu.matmul %815, %724, %cst_147 {dimension_numbers = #tpu.dot_dimension_numbers<[1], [0], [0], [1], [0, 0, 1, 1], [], []>} : vector<2x64xf32>, vector<64x128xf32>, vector<2x128xf32> -> vector<2x128xf32>
    %817 = vector.broadcast %725 : vector<1x128xf32> to vector<2x128xf32>
    %818 = arith.addf %816, %817 : vector<2x128xf32>
    %819 = vector.extract_strided_slice %818 {offsets = [0, 0], sizes = [2, 32], strides = [1, 1]} : vector<2x128xf32> to vector<2x32xf32>
    %820 = arith.negf %819 : vector<2x32xf32>
    %821 = math.exp %820 : vector<2x32xf32>
    %cst_148 = arith.constant 1.000000e+00 : f32
    %822 = vector.broadcast %cst_148 : f32 to vector<2x32xf32>
    %823 = arith.addf %822, %821 : vector<2x32xf32>
    %824 = arith.divf %822, %823 : vector<2x32xf32>
    %825 = vector.extract_strided_slice %818 {offsets = [0, 32], sizes = [2, 32], strides = [1, 1]} : vector<2x128xf32> to vector<2x32xf32>
    %826 = arith.negf %825 : vector<2x32xf32>
    %827 = math.exp %826 : vector<2x32xf32>
    %cst_149 = arith.constant 1.000000e+00 : f32
    %828 = vector.broadcast %cst_149 : f32 to vector<2x32xf32>
    %829 = arith.addf %828, %827 : vector<2x32xf32>
    %830 = arith.divf %828, %829 : vector<2x32xf32>
    %831 = vector.extract_strided_slice %818 {offsets = [0, 64], sizes = [2, 32], strides = [1, 1]} : vector<2x128xf32> to vector<2x32xf32>
    %832 = math.tanh %831 : vector<2x32xf32>
    %833 = vector.extract_strided_slice %818 {offsets = [0, 96], sizes = [2, 32], strides = [1, 1]} : vector<2x128xf32> to vector<2x32xf32>
    %834 = arith.negf %833 : vector<2x32xf32>
    %835 = math.exp %834 : vector<2x32xf32>
    %cst_150 = arith.constant 1.000000e+00 : f32
    %836 = vector.broadcast %cst_150 : f32 to vector<2x32xf32>
    %837 = arith.addf %836, %835 : vector<2x32xf32>
    %838 = arith.divf %836, %837 : vector<2x32xf32>
    %839 = arith.mulf %830, %812 : vector<2x32xf32>
    %840 = arith.mulf %824, %832 : vector<2x32xf32>
    %841 = arith.addf %839, %840 : vector<2x32xf32>
    %842 = math.tanh %841 : vector<2x32xf32>
    %843 = arith.mulf %838, %842 : vector<2x32xf32>
    %844 = tpu.concatenate %636, %843 in 1 : vector<2x32xf32>, vector<2x32xf32> -> vector<2x64xf32>
    %cst_151 = arith.constant dense<0.000000e+00> : vector<2x128xf32>
    %845 = tpu.matmul %844, %724, %cst_151 {dimension_numbers = #tpu.dot_dimension_numbers<[1], [0], [0], [1], [0, 0, 1, 1], [], []>} : vector<2x64xf32>, vector<64x128xf32>, vector<2x128xf32> -> vector<2x128xf32>
    %846 = vector.broadcast %725 : vector<1x128xf32> to vector<2x128xf32>
    %847 = arith.addf %845, %846 : vector<2x128xf32>
    %848 = vector.extract_strided_slice %847 {offsets = [0, 0], sizes = [2, 32], strides = [1, 1]} : vector<2x128xf32> to vector<2x32xf32>
    %849 = arith.negf %848 : vector<2x32xf32>
    %850 = math.exp %849 : vector<2x32xf32>
    %cst_152 = arith.constant 1.000000e+00 : f32
    %851 = vector.broadcast %cst_152 : f32 to vector<2x32xf32>
    %852 = arith.addf %851, %850 : vector<2x32xf32>
    %853 = arith.divf %851, %852 : vector<2x32xf32>
    %854 = vector.extract_strided_slice %847 {offsets = [0, 32], sizes = [2, 32], strides = [1, 1]} : vector<2x128xf32> to vector<2x32xf32>
    %855 = arith.negf %854 : vector<2x32xf32>
    %856 = math.exp %855 : vector<2x32xf32>
    %cst_153 = arith.constant 1.000000e+00 : f32
    %857 = vector.broadcast %cst_153 : f32 to vector<2x32xf32>
    %858 = arith.addf %857, %856 : vector<2x32xf32>
    %859 = arith.divf %857, %858 : vector<2x32xf32>
    %860 = vector.extract_strided_slice %847 {offsets = [0, 64], sizes = [2, 32], strides = [1, 1]} : vector<2x128xf32> to vector<2x32xf32>
    %861 = math.tanh %860 : vector<2x32xf32>
    %862 = vector.extract_strided_slice %847 {offsets = [0, 96], sizes = [2, 32], strides = [1, 1]} : vector<2x128xf32> to vector<2x32xf32>
    %863 = arith.negf %862 : vector<2x32xf32>
    %864 = math.exp %863 : vector<2x32xf32>
    %cst_154 = arith.constant 1.000000e+00 : f32
    %865 = vector.broadcast %cst_154 : f32 to vector<2x32xf32>
    %866 = arith.addf %865, %864 : vector<2x32xf32>
    %867 = arith.divf %865, %866 : vector<2x32xf32>
    %868 = arith.mulf %859, %841 : vector<2x32xf32>
    %869 = arith.mulf %853, %861 : vector<2x32xf32>
    %870 = arith.addf %868, %869 : vector<2x32xf32>
    %871 = math.tanh %870 : vector<2x32xf32>
    %872 = arith.mulf %867, %871 : vector<2x32xf32>
    %873 = tpu.concatenate %665, %872 in 1 : vector<2x32xf32>, vector<2x32xf32> -> vector<2x64xf32>
    %cst_155 = arith.constant dense<0.000000e+00> : vector<2x128xf32>
    %874 = tpu.matmul %873, %724, %cst_155 {dimension_numbers = #tpu.dot_dimension_numbers<[1], [0], [0], [1], [0, 0, 1, 1], [], []>} : vector<2x64xf32>, vector<64x128xf32>, vector<2x128xf32> -> vector<2x128xf32>
    %875 = vector.broadcast %725 : vector<1x128xf32> to vector<2x128xf32>
    %876 = arith.addf %874, %875 : vector<2x128xf32>
    %877 = vector.extract_strided_slice %876 {offsets = [0, 0], sizes = [2, 32], strides = [1, 1]} : vector<2x128xf32> to vector<2x32xf32>
    %878 = arith.negf %877 : vector<2x32xf32>
    %879 = math.exp %878 : vector<2x32xf32>
    %cst_156 = arith.constant 1.000000e+00 : f32
    %880 = vector.broadcast %cst_156 : f32 to vector<2x32xf32>
    %881 = arith.addf %880, %879 : vector<2x32xf32>
    %882 = arith.divf %880, %881 : vector<2x32xf32>
    %883 = vector.extract_strided_slice %876 {offsets = [0, 32], sizes = [2, 32], strides = [1, 1]} : vector<2x128xf32> to vector<2x32xf32>
    %884 = arith.negf %883 : vector<2x32xf32>
    %885 = math.exp %884 : vector<2x32xf32>
    %cst_157 = arith.constant 1.000000e+00 : f32
    %886 = vector.broadcast %cst_157 : f32 to vector<2x32xf32>
    %887 = arith.addf %886, %885 : vector<2x32xf32>
    %888 = arith.divf %886, %887 : vector<2x32xf32>
    %889 = vector.extract_strided_slice %876 {offsets = [0, 64], sizes = [2, 32], strides = [1, 1]} : vector<2x128xf32> to vector<2x32xf32>
    %890 = math.tanh %889 : vector<2x32xf32>
    %891 = vector.extract_strided_slice %876 {offsets = [0, 96], sizes = [2, 32], strides = [1, 1]} : vector<2x128xf32> to vector<2x32xf32>
    %892 = arith.negf %891 : vector<2x32xf32>
    %893 = math.exp %892 : vector<2x32xf32>
    %cst_158 = arith.constant 1.000000e+00 : f32
    %894 = vector.broadcast %cst_158 : f32 to vector<2x32xf32>
    %895 = arith.addf %894, %893 : vector<2x32xf32>
    %896 = arith.divf %894, %895 : vector<2x32xf32>
    %897 = arith.mulf %888, %870 : vector<2x32xf32>
    %898 = arith.mulf %882, %890 : vector<2x32xf32>
    %899 = arith.addf %897, %898 : vector<2x32xf32>
    %900 = math.tanh %899 : vector<2x32xf32>
    %901 = arith.mulf %896, %900 : vector<2x32xf32>
    %902 = tpu.concatenate %694, %901 in 1 : vector<2x32xf32>, vector<2x32xf32> -> vector<2x64xf32>
    %cst_159 = arith.constant dense<0.000000e+00> : vector<2x128xf32>
    %903 = tpu.matmul %902, %724, %cst_159 {dimension_numbers = #tpu.dot_dimension_numbers<[1], [0], [0], [1], [0, 0, 1, 1], [], []>} : vector<2x64xf32>, vector<64x128xf32>, vector<2x128xf32> -> vector<2x128xf32>
    %904 = vector.broadcast %725 : vector<1x128xf32> to vector<2x128xf32>
    %905 = arith.addf %903, %904 : vector<2x128xf32>
    %906 = vector.extract_strided_slice %905 {offsets = [0, 0], sizes = [2, 32], strides = [1, 1]} : vector<2x128xf32> to vector<2x32xf32>
    %907 = arith.negf %906 : vector<2x32xf32>
    %908 = math.exp %907 : vector<2x32xf32>
    %cst_160 = arith.constant 1.000000e+00 : f32
    %909 = vector.broadcast %cst_160 : f32 to vector<2x32xf32>
    %910 = arith.addf %909, %908 : vector<2x32xf32>
    %911 = arith.divf %909, %910 : vector<2x32xf32>
    %912 = vector.extract_strided_slice %905 {offsets = [0, 32], sizes = [2, 32], strides = [1, 1]} : vector<2x128xf32> to vector<2x32xf32>
    %913 = arith.negf %912 : vector<2x32xf32>
    %914 = math.exp %913 : vector<2x32xf32>
    %cst_161 = arith.constant 1.000000e+00 : f32
    %915 = vector.broadcast %cst_161 : f32 to vector<2x32xf32>
    %916 = arith.addf %915, %914 : vector<2x32xf32>
    %917 = arith.divf %915, %916 : vector<2x32xf32>
    %918 = vector.extract_strided_slice %905 {offsets = [0, 64], sizes = [2, 32], strides = [1, 1]} : vector<2x128xf32> to vector<2x32xf32>
    %919 = math.tanh %918 : vector<2x32xf32>
    %920 = vector.extract_strided_slice %905 {offsets = [0, 96], sizes = [2, 32], strides = [1, 1]} : vector<2x128xf32> to vector<2x32xf32>
    %921 = arith.negf %920 : vector<2x32xf32>
    %922 = math.exp %921 : vector<2x32xf32>
    %cst_162 = arith.constant 1.000000e+00 : f32
    %923 = vector.broadcast %cst_162 : f32 to vector<2x32xf32>
    %924 = arith.addf %923, %922 : vector<2x32xf32>
    %925 = arith.divf %923, %924 : vector<2x32xf32>
    %926 = arith.mulf %917, %899 : vector<2x32xf32>
    %927 = arith.mulf %911, %919 : vector<2x32xf32>
    %928 = arith.addf %926, %927 : vector<2x32xf32>
    %929 = math.tanh %928 : vector<2x32xf32>
    %930 = arith.mulf %925, %929 : vector<2x32xf32>
    %931 = tpu.concatenate %723, %930 in 1 : vector<2x32xf32>, vector<2x32xf32> -> vector<2x64xf32>
    %cst_163 = arith.constant dense<0.000000e+00> : vector<2x128xf32>
    %932 = tpu.matmul %931, %724, %cst_163 {dimension_numbers = #tpu.dot_dimension_numbers<[1], [0], [0], [1], [0, 0, 1, 1], [], []>} : vector<2x64xf32>, vector<64x128xf32>, vector<2x128xf32> -> vector<2x128xf32>
    %933 = vector.broadcast %725 : vector<1x128xf32> to vector<2x128xf32>
    %934 = arith.addf %932, %933 : vector<2x128xf32>
    %935 = vector.extract_strided_slice %934 {offsets = [0, 0], sizes = [2, 32], strides = [1, 1]} : vector<2x128xf32> to vector<2x32xf32>
    %936 = arith.negf %935 : vector<2x32xf32>
    %937 = math.exp %936 : vector<2x32xf32>
    %cst_164 = arith.constant 1.000000e+00 : f32
    %938 = vector.broadcast %cst_164 : f32 to vector<2x32xf32>
    %939 = arith.addf %938, %937 : vector<2x32xf32>
    %940 = arith.divf %938, %939 : vector<2x32xf32>
    %941 = vector.extract_strided_slice %934 {offsets = [0, 32], sizes = [2, 32], strides = [1, 1]} : vector<2x128xf32> to vector<2x32xf32>
    %942 = arith.negf %941 : vector<2x32xf32>
    %943 = math.exp %942 : vector<2x32xf32>
    %cst_165 = arith.constant 1.000000e+00 : f32
    %944 = vector.broadcast %cst_165 : f32 to vector<2x32xf32>
    %945 = arith.addf %944, %943 : vector<2x32xf32>
    %946 = arith.divf %944, %945 : vector<2x32xf32>
    %947 = vector.extract_strided_slice %934 {offsets = [0, 64], sizes = [2, 32], strides = [1, 1]} : vector<2x128xf32> to vector<2x32xf32>
    %948 = math.tanh %947 : vector<2x32xf32>
    %949 = vector.extract_strided_slice %934 {offsets = [0, 96], sizes = [2, 32], strides = [1, 1]} : vector<2x128xf32> to vector<2x32xf32>
    %950 = arith.negf %949 : vector<2x32xf32>
    %951 = math.exp %950 : vector<2x32xf32>
    %cst_166 = arith.constant 1.000000e+00 : f32
    %952 = vector.broadcast %cst_166 : f32 to vector<2x32xf32>
    %953 = arith.addf %952, %951 : vector<2x32xf32>
    %954 = arith.divf %952, %953 : vector<2x32xf32>
    %955 = arith.mulf %946, %928 : vector<2x32xf32>
    %956 = arith.mulf %940, %948 : vector<2x32xf32>
    %957 = arith.addf %955, %956 : vector<2x32xf32>
    %958 = math.tanh %957 : vector<2x32xf32>
    %959 = arith.mulf %954, %958 : vector<2x32xf32>
    %c0_167 = arith.constant 0 : index
    %c0_168 = arith.constant 0 : index
    %960 = vector.load %arg10[%c0_167, %c0_168] : memref<32x1xf32, #tpu.memory_space<vmem>>, vector<32x1xf32>
    %cst_169 = arith.constant dense<0.000000e+00> : vector<2x1xf32>
    %961 = tpu.matmul %959, %960, %cst_169 {dimension_numbers = #tpu.dot_dimension_numbers<[1], [0], [0], [1], [0, 0, 1, 1], [], []>} : vector<2x32xf32>, vector<32x1xf32>, vector<2x1xf32> -> vector<2x1xf32>
    %c0_170 = arith.constant 0 : index
    %c0_171 = arith.constant 0 : index
    %962 = vector.load %arg11[%c0_170, %c0_171] : memref<1x1xf32, #tpu.memory_space<vmem>>, vector<1x1xf32>
    %963 = vector.broadcast %962 : vector<1x1xf32> to vector<2x1xf32>
    %964 = arith.addf %961, %963 : vector<2x1xf32>
    %c0_172 = arith.constant 0 : index
    %c0_173 = arith.constant 0 : index
    %965 = vector.load %arg12[%c0_172, %c0_173] : memref<2x1xf32, #tpu.memory_space<vmem>>, vector<2x1xf32>
    tpu.vector_store %arg12[%c0_172, %c0_173], %964 {strides = array<i32>} : memref<2x1xf32, #tpu.memory_space<vmem>>, vector<2x1xf32>,
    return
  }
  func.func @transform_0(%arg0: i32) -> (i32, i32, i32) {
    %c0_i32 = arith.constant 0 : i32
    %c0_i32_0 = arith.constant 0 : i32
    %c0_i32_1 = arith.constant 0 : i32
    %c0_i32_2 = arith.constant 0 : i32
    return %c0_i32, %c0_i32_0, %c0_i32_1 : i32, i32, i32
  }
  func.func @transform_1(%arg0: i32) -> (i32, i32) {
    %c0_i32 = arith.constant 0 : i32
    %c0_i32_0 = arith.constant 0 : i32
    %c0_i32_1 = arith.constant 0 : i32
    return %c0_i32, %c0_i32_0 : i32, i32
  }
  func.func @transform_2(%arg0: i32) -> (i32, i32) {
    %c0_i32 = arith.constant 0 : i32
    %c0_i32_0 = arith.constant 0 : i32
    %c0_i32_1 = arith.constant 0 : i32
    return %c0_i32, %c0_i32_0 : i32, i32
  }
  func.func @transform_3(%arg0: i32) -> (i32, i32) {
    %c0_i32 = arith.constant 0 : i32
    %c0_i32_0 = arith.constant 0 : i32
    %c0_i32_1 = arith.constant 0 : i32
    return %c0_i32, %c0_i32_0 : i32, i32
  }
  func.func @transform_4(%arg0: i32) -> (i32, i32) {
    %c0_i32 = arith.constant 0 : i32
    %c0_i32_0 = arith.constant 0 : i32
    %c0_i32_1 = arith.constant 0 : i32
    return %c0_i32, %c0_i32_0 : i32, i32
  }
  func.func @transform_5(%arg0: i32) -> (i32, i32) {
    %c0_i32 = arith.constant 0 : i32
    %c0_i32_0 = arith.constant 0 : i32
    %c0_i32_1 = arith.constant 0 : i32
    return %c0_i32, %c0_i32_0 : i32, i32
  }
  func.func @transform_6(%arg0: i32) -> (i32, i32) {
    %c0_i32 = arith.constant 0 : i32
    %c0_i32_0 = arith.constant 0 : i32
    %c0_i32_1 = arith.constant 0 : i32
    return %c0_i32, %c0_i32_0 : i32, i32
  }
  func.func @transform_7(%arg0: i32) -> (i32, i32) {
    %c0_i32 = arith.constant 0 : i32
    %c0_i32_0 = arith.constant 0 : i32
    %c0_i32_1 = arith.constant 0 : i32
    return %c0_i32, %c0_i32_0 : i32, i32
  }
  func.func @transform_8(%arg0: i32) -> (i32, i32) {
    %c0_i32 = arith.constant 0 : i32
    %c0_i32_0 = arith.constant 0 : i32
    %c0_i32_1 = arith.constant 0 : i32
    return %c0_i32, %c0_i32_0 : i32, i32
  }
  func.func @transform_9(%arg0: i32) -> (i32, i32) {
    %c0_i32 = arith.constant 0 : i32
    %c0_i32_0 = arith.constant 0 : i32
    %c0_i32_1 = arith.constant 0 : i32
    return %c0_i32, %c0_i32_0 : i32, i32
  }
  func.func @transform_10(%arg0: i32) -> (i32, i32) {
    %c0_i32 = arith.constant 0 : i32
    %c0_i32_0 = arith.constant 0 : i32
    %c0_i32_1 = arith.constant 0 : i32
    return %c0_i32, %c0_i32_0 : i32, i32
  }
  func.func @transform_11(%arg0: i32) -> (i32, i32) {
    %c0_i32 = arith.constant 0 : i32
    %c0_i32_0 = arith.constant 0 : i32
    %c0_i32_1 = arith.constant 0 : i32
    return %c0_i32, %c0_i32_0 : i32, i32
  }
}

</mosaic_0001>

<bundles_post_ra>
// kernel: lstm_model_forward.1
= control target key start
LH: loop header
LB: loop body
LE: loop exit
PB: predicated region body
PF: predicated region fallthrough
CT: control target
= control target key end

     0   :  { %s3592_s0 = inlined_call_operand.vmem [shape: f32[8,2,4], index: 0, kind: input, shape index: {}]   ;;  %s3593_s1 = inlined_call_operand.vmem [shape: f32[36,128], index: 1, kind: input, shape index: {}]   ;;  %s3594_s2 = inlined_call_operand.vmem [shape: f32[1,128], index: 2, kind: input, shape index: {}]   ;;  %s3595_s3 = inlined_call_operand.hbm [shape: f32[64,128], index: 3, kind: input, shape index: {}]   ;;  %s3596_s4 = inlined_call_operand.vmem [shape: f32[1,128], index: 4, kind: input, shape index: {}]   ;;  %s3597_s5 = inlined_call_operand.hbm [shape: f32[64,128], index: 5, kind: input, shape index: {}]   ;;  %s3598_s6 = inlined_call_operand.vmem [shape: f32[1,128], index: 6, kind: input, shape index: {}]   ;;  %s3599_s7 = inlined_call_operand.hbm [shape: f32[64,128], index: 7, kind: input, shape index: {}]   ;;  %s3600_s8 = inlined_call_operand.vmem [shape: f32[1,128], index: 8, kind: input, shape index: {}]   ;;  %s3601_s9 = inlined_call_operand.vmem [shape: f32[32,1], index: 9, kind: input, shape index: {}]   ;;  %s3602_s10 = inlined_call_operand.<no memory space> [shape: f32[1,1], index: 10, kind: input, shape index: {}]   ;;  %s3603_s11 = inlined_call_operand.vmem [shape: f32[2,1], index: 11, kind: output, shape index: {}]  }
   0x1   :  { %v16_v0 = vstv %s3602_s10 }
   0x2   :  { %17 = vst [vmem:[#allocation2] sm:$0x1] %v16_v0 }
   0x3   :  { %18 = vsyncpa [#allocation4], 0 }
   0x4   :  { %19 = vsyncpa [#allocation6], 0  ;;  %s45_s21 = sshll.u32 %s3597_s5, 4  ;;  %s2763_s22 = smov [#allocation5]   ;;  %s46_s21 = int_to_ptr.hbm [resolvable:$true] %s45_s21 }
   0x5   :  { %s47_s23 = sshll.u32 %s2763_s22, 4  ;;  %s30_s26 = sshll.u32 %s3595_s3, 4  ;;  %s48_s23 = int_to_ptr.vmem [resolvable:$true] %s47_s23  ;;  %s31_s26 = int_to_ptr.hbm [resolvable:$true] %s30_s26 }
   0x6   :  { %s2764_s27 = smov 128   ;;  %s2765_s28 = smov 8  }
   0x7   :  { %53 = dma.hbm_to_vmem [thread:$0]  %s46_s21, 1024, %s48_s23, [#allocation6], %s2764_s27, %s2764_s27, %s2765_s28  }
   0x8   :  { %s2766_s10 = smov [#allocation3]   ;;  %s60_s13 = sshll.u32 %s3599_s7, 4  ;;  %s61_s13 = int_to_ptr.hbm [resolvable:$true] %s60_s13 }
   0x9   :  { %s32_s29 = sshll.u32 %s2766_s10, 4  ;;  %s2767_s5 = smov [#allocation7]   ;;  %s33_s29 = int_to_ptr.vmem [resolvable:$true] %s32_s29 }
   0xa   :  { %38 = dma.hbm_to_vmem [thread:$0]  %s31_s26, 1024, %s33_s29, [#allocation4], %s2764_s27, %s2764_s27, %s2765_s28  }
   0xb   :  { %s62_s14 = sshll.u32 %s2767_s5, 4  ;;  %s63_s14 = int_to_ptr.vmem [resolvable:$true] %s62_s14 }
   0xc   :  { %68 = dma.hbm_to_vmem [thread:$0]  %s61_s13, 1024, %s63_s14, [#allocation6], %s2764_s27, %s2764_s27, %s2765_s28  }
   0xd   :  { %2759 = dma.done.wait [#allocation4], 1024  }
   0xe   :  { %2760 = vsyncadd [#allocation4], 4294966272 }
   0xf   :  { %2761 = dma.done.wait [#allocation6], 2048  }
  0x10   :  { %2762 = vsyncadd [#allocation6], 4294965248  ;;  %vm117_vm0 = vcmask 1043456   ;;  %v106_v1 = vld [vmem:[%s3593_s1 + $0x20] sm:$0xf]  ;;  %v105_v2 = vld [vmem:[%s3593_s1 + $0x18] sm:$0xff] }
  0x11   :  { %2342 = vmatpush.msk.msra.mxu0 %vm117_vm0, %v106_v1  ;;  %2345 = vmatpush.msk.msra.mxu1 %vm117_vm0, %v106_v1  ;;  %v104_v3 = vld [vmem:[%s3593_s1 + $0x10] sm:$0xff]  ;;  %v103_v4 = vld [vmem:[%s3593_s1 + $0x8] sm:$0xff]  ;;  %v87_v5 = vld [vmem:[%s3592_s0] sm:$0x3]  ;;  %vm108_vm1 = vcmask 31744   ;;  %vm113_vm2 = vcmask 293888  }
  0x12   :  { %2348 = vmatpush.msk.msra.mxu2 %vm117_vm0, %v106_v1  ;;  %2351 = vmatpush.msk.msra.mxu3 %vm117_vm0, %v106_v1  ;;  %v102_v6 = vld [vmem:[%s3593_s1] sm:$0xff]  ;;  %v109_v7 = vsel %vm108_vm1, %v87_v5, 0.0  ;;  %s2768_s26 = smov 64   ;;  %s2769_s27 = smov 32  }
  0x13   :  { %133 = vmatpush.msra.mxu0 %v105_v2  ;;  %198 = vmatpush.msra.mxu1 %v105_v2  ;;  %v2874_v8 = vld [vmem:[%s3594_s2] ss:$0 sm:$0xff]  ;;  %s2770_s28 = smov 36   ;;  %v2335_v33 = vld [vmem:[%s3592_s0 + $0x2] sm:$0x3] }
  0x14   :  { %263 = vmatpush.msra.mxu2 %v105_v2  ;;  %328 = vmatpush.msra.mxu3 %v105_v2  ;;  %v2336_v60 = vld [vmem:[%s3592_s0 + $0x4] sm:$0x3] }
  0x15   :  { %134 = vmatpush.msra.mxu0 %v104_v3  ;;  %199 = vmatpush.msra.mxu1 %v104_v3 }
  0x16   :  { %264 = vmatpush.msra.mxu2 %v104_v3  ;;  %329 = vmatpush.msra.mxu3 %v104_v3 }
  0x17   :  { %135 = vmatpush.msra.mxu0 %v103_v4  ;;  %200 = vmatpush.msra.mxu1 %v103_v4 }
  0x18   :  { %265 = vmatpush.msra.mxu2 %v103_v4  ;;  %330 = vmatpush.msra.mxu3 %v103_v4 }
  0x19   :  { %136 = vmatpush.msra.mxu0 %v102_v6  ;;  %201 = vmatpush.msra.mxu1 %v102_v6 }
  0x1a   :  { %2343 = vmatmul.msk.f32.vlgmr.msra.gmra.mxu0 %vm113_vm2, %v109_v7  ;;  %266 = vmatpush.msra.mxu2 %v102_v6 }
  0x1b   :  { %331 = vmatpush.msra.mxu3 %v102_v6  ;;  %2354 = vmatpush.msk.msrb.mxu0 %vm117_vm0, %v106_v1 }
  0x1c   :  { %2357 = vmatpush.msk.msrb.mxu1 %vm117_vm0, %v106_v1  ;;  %2360 = vmatpush.msk.msrb.mxu2 %vm117_vm0, %v106_v1 }
  0x1d   :  { %393 = vmatpush.msrb.mxu0 %v105_v2  ;;  %2363 = vmatpush.msk.msrb.mxu3 %vm117_vm0, %v106_v1 }
  0x1e   :  { %458 = vmatpush.msrb.mxu1 %v105_v2  ;;  %523 = vmatpush.msrb.mxu2 %v105_v2 }
  0x1f   :  { %394 = vmatpush.msrb.mxu0 %v104_v3  ;;  %588 = vmatpush.msrb.mxu3 %v105_v2 }
  0x20   :  { %459 = vmatpush.msrb.mxu1 %v104_v3  ;;  %524 = vmatpush.msrb.mxu2 %v104_v3 }
  0x21   :  { %395 = vmatpush.msrb.mxu0 %v103_v4  ;;  %589 = vmatpush.msrb.mxu3 %v104_v3 }
  0x22   :  { %460 = vmatpush.msrb.mxu1 %v103_v4  ;;  %525 = vmatpush.msrb.mxu2 %v103_v4 }
  0x23   :  { %396 = vmatpush.msrb.mxu0 %v102_v6  ;;  %590 = vmatpush.msrb.mxu3 %v103_v4 }
  0x24   :  { %461 = vmatpush.msrb.mxu1 %v102_v6  ;;  %526 = vmatpush.msrb.mxu2 %v102_v6 }
  0x25   :  { %591 = vmatpush.msrb.mxu3 %v102_v6 }
  0x97   :  { %v138_v9 = vpop.f32.mrf.mxu0 }
  0x98   :  { %v139_v10 = vadd.f32 %v2874_v8, %v138_v9 }
  0x9a   :  { %2428 = vtanh.f32 %v139_v10  ;;  %v2344_v12 = vmul.f32 -1.442695, %v139_v10 }
  0x9c   :  { %2430 = vpow2.f32 %v2344_v12 }
  0xa0   :  { %v2429_v11 = vpop.eup %2428 }
  0xa1   :  { %163 = vrot.lane.b32.xlu0 %v2429_v11, %s2768_s26 }
  0xa2   :  { %v2431_v13 = vpop.eup %2430 }
  0xa3   :  { %v144_v14 = vadd.f32 1.0, %v2431_v13 }
  0xa5   :  { %2432 = vrcp.f32 %v144_v14  ;;  %v156_v20 = vand.u32 2147483648, %v144_v14  ;;  %vm150_vm4 = vweird.f32 %v144_v14  ;;  %v154_v21 = vand.u32 2147483647, %v144_v14 }
  0xa7   :  { %v157_v23 = vor.u32 1.1754944e-38, %v156_v20  ;;  %vm155_vm6 = vcmp.eq.f32.partialorder %v154_v21, 8.507059e+37 }
  0xab   :  { %v2433_v15 = vpop.eup %2432 }
  0xac   :  { %v146_v16 = vmul.f32 %v2433_v15, %v144_v14  ;;  %vm151_vm3 = vweird.f32 %v2433_v15 }
  0xad   :  { %vm152_vm5 = vmor %vm150_vm4, %vm151_vm3 }
  0xae   :  { %v147_v17 = vsub.f32 1.0, %v146_v16 }
  0xb0   :  { %v148_v18 = vmul.f32 %v2433_v15, %v147_v17 }
  0xb2   :  { %v149_v19 = vadd.f32 %v2433_v15, %v148_v18 }
  0xb4   :  { %v153_v22 = vsel %vm152_vm5, %v2433_v15, %v149_v19  ;;  %vm645_vm5 = vcmask 261120  }
  0xb5   :  { %v158_v25 = vsel %vm155_vm6, %v157_v23, %v153_v22  ;;  %vm650_vm6 = vcmask 523264  }
  0xb6   :  { %v161_v27 = vmul.f32 0.0, %v158_v25 }
 0x113   :  { %v164_v24 = vpop.permute.xlu0 %163 }
 0x114   :  { %v166_v26 = vmul.f32 %v164_v24, %v158_v25  ;;  %v2337_v24 = vld [vmem:[%s3592_s0 + $0x6] sm:$0x3] }
 0x116   :  { %168 = vrot.lane.b32.xlu0 %v166_v26, %s2769_s27 }
 0x188   :  { %v169_v28 = vpop.permute.xlu0 %168 }
 0x189   :  { %v171_v29 = vadd.f32 %v169_v28, %v161_v27 }
 0x18b   :  { %2434 = vtanh.f32 %v171_v29 }
 0x191   :  { %v2435_v30 = vpop.eup %2434 }
 0x192   :  { %174 = vrot.lane.b32.xlu1 %v2435_v30, %s2768_s26 }
 0x204   :  { %v175_v31 = vpop.permute.xlu1 %174 }
 0x205   :  { %v2880_v32 = vmul.f32 %v175_v31, %v158_v25 }
 0x207   :  { %179 = vrot.lane.b32.xlu1 %v2880_v32, %s2770_s28 }
 0x279   :  { %v180_v34 = vpop.permute.xlu1 %179 }
 0x27a   :  { %v182_v35 = vsel %vm108_vm1, %v2335_v33, %v180_v34 }
 0x27b   :  { %2346 = vmatmul.msk.f32.vlgmr.msra.gmra.mxu1 %vm113_vm2, %v182_v35 }
 0x2f8   :  { %v203_v36 = vpop.f32.mrf.mxu1 }
 0x2f9   :  { %v204_v37 = vadd.f32 %v2874_v8, %v203_v36 }
 0x2fb   :  { %2436 = vtanh.f32 %v204_v37  ;;  %v2347_v39 = vmul.f32 -1.442695, %v204_v37 }
 0x2fd   :  { %2438 = vpow2.f32 %v2347_v39 }
 0x301   :  { %v2437_v38 = vpop.eup %2436 }
 0x302   :  { %228 = vrot.lane.b32.xlu2 %v2437_v38, %s2768_s26 }
 0x303   :  { %v2439_v40 = vpop.eup %2438 }
 0x304   :  { %v209_v41 = vadd.f32 1.0, %v2439_v40 }
 0x306   :  { %2440 = vrcp.f32 %v209_v41  ;;  %v221_v47 = vand.u32 2147483648, %v209_v41  ;;  %vm215_vm8 = vweird.f32 %v209_v41  ;;  %v219_v48 = vand.u32 2147483647, %v209_v41 }
 0x308   :  { %v222_v50 = vor.u32 1.1754944e-38, %v221_v47  ;;  %vm220_vm10 = vcmp.eq.f32.partialorder %v219_v48, 8.507059e+37 }
 0x30c   :  { %v2441_v42 = vpop.eup %2440 }
 0x30d   :  { %v211_v43 = vmul.f32 %v2441_v42, %v209_v41  ;;  %vm216_vm7 = vweird.f32 %v2441_v42 }
 0x30e   :  { %vm217_vm9 = vmor %vm215_vm8, %vm216_vm7 }
 0x30f   :  { %v212_v44 = vsub.f32 1.0, %v211_v43 }
 0x311   :  { %v213_v45 = vmul.f32 %v2441_v42, %v212_v44 }
 0x313   :  { %v214_v46 = vadd.f32 %v2441_v42, %v213_v45 }
 0x315   :  { %v218_v49 = vsel %vm217_vm9, %v2441_v42, %v214_v46 }
 0x316   :  { %v223_v52 = vsel %vm220_vm10, %v222_v50, %v218_v49  ;;  %v2924_v50 = vld [vmem:[#allocation3 + $0x38] sm:$0xff] }
 0x317   :  { %v226_v54 = vmul.f32 %v223_v52, %v171_v29  ;;  %662 = vmatpush.msra.mxu0 %v2924_v50  ;;  %730 = vmatpush.msra.mxu1 %v2924_v50 }
 0x35c   :  { %v229_v51 = vpop.permute.xlu2 %228 }
 0x35d   :  { %v231_v53 = vmul.f32 %v229_v51, %v223_v52  ;;  %v2926_v51 = vld [vmem:[#allocation3 + $0x30] sm:$0xff] }
 0x35e   :  { %663 = vmatpush.msra.mxu0 %v2926_v51  ;;  %731 = vmatpush.msra.mxu1 %v2926_v51 }
 0x35f   :  { %233 = vrot.lane.b32.xlu2 %v231_v53, %s2769_s27 }
 0x3b9   :  { %v234_v55 = vpop.permute.xlu2 %233 }
 0x3ba   :  { %v236_v56 = vadd.f32 %v234_v55, %v226_v54  ;;  %v2946_v54 = vld [vmem:[#allocation3 + $0x20] sm:$0xff]  ;;  %v2950_v55 = vld [vmem:[#allocation3 + $0x18] sm:$0xff] }
 0x3bc   :  { %2442 = vtanh.f32 %v236_v56 }
 0x3c2   :  { %v2443_v57 = vpop.eup %2442 }
 0x3c3   :  { %239 = vrot.lane.b32.xlu0 %v2443_v57, %s2768_s26  ;;  %v2958_v57 = vld [vmem:[#allocation3 + $0x8] sm:$0xff] }
 0x435   :  { %v240_v58 = vpop.permute.xlu0 %239 }
 0x436   :  { %v2893_v59 = vmul.f32 %v240_v58, %v223_v52  ;;  %v2930_v52 = vld [vmem:[#allocation3 + $0x28] sm:$0xff]  ;;  %v2964_v58 = vld [vmem:[#allocation3] sm:$0xff] }
 0x437   :  { %664 = vmatpush.msra.mxu0 %v2930_v52  ;;  %732 = vmatpush.msra.mxu1 %v2930_v52 }
 0x438   :  { %244 = vrot.lane.b32.xlu1 %v2893_v59, %s2770_s28 }
 0x439   :  { %665 = vmatpush.msra.mxu0 %v2946_v54  ;;  %733 = vmatpush.msra.mxu1 %v2946_v54 }
 0x43b   :  { %666 = vmatpush.msra.mxu0 %v2950_v55  ;;  %734 = vmatpush.msra.mxu1 %v2950_v55 }
 0x4aa   :  { %v245_v61 = vpop.permute.xlu1 %244 }
 0x4ab   :  { %v247_v62 = vsel %vm108_vm1, %v2336_v60, %v245_v61  ;;  %v2338_v60 = vld [vmem:[%s3592_s0 + $0x8] sm:$0x3] }
 0x4ac   :  { %2349 = vmatmul.msk.f32.vlgmr.msra.gmra.mxu2 %vm113_vm2, %v247_v62 }
 0x4ad   :  { %798 = vmatpush.msra.mxu2 %v2924_v50 }
 0x4af   :  { %799 = vmatpush.msra.mxu2 %v2926_v51 }
 0x4b1   :  { %800 = vmatpush.msra.mxu2 %v2930_v52 }
 0x4b3   :  { %801 = vmatpush.msra.mxu2 %v2946_v54 }
 0x4b5   :  { %802 = vmatpush.msra.mxu2 %v2950_v55 }
 0x52f   :  { %v268_v63 = vpop.f32.mrf.mxu2 }
 0x530   :  { %v269_v0 = vadd.f32 %v2874_v8, %v268_v63 }
 0x532   :  { %2444 = vtanh.f32 %v269_v0  ;;  %v2350_v2 = vmul.f32 -1.442695, %v269_v0 }
 0x534   :  { %2446 = vpow2.f32 %v2350_v2 }
 0x538   :  { %v2445_v1 = vpop.eup %2444 }
 0x539   :  { %293 = vrot.lane.b32.xlu2 %v2445_v1, %s2768_s26 }
 0x53a   :  { %v2447_v3 = vpop.eup %2446 }
 0x53b   :  { %v274_v4 = vadd.f32 1.0, %v2447_v3  ;;  %v2995_v3 = vld [vmem:[%s3596_s4] ss:$0 sm:$0xff] }
 0x53d   :  { %2448 = vrcp.f32 %v274_v4  ;;  %v286_v11 = vand.u32 2147483648, %v274_v4  ;;  %vm280_vm12 = vweird.f32 %v274_v4  ;;  %v284_v12 = vand.u32 2147483647, %v274_v4 }
 0x53f   :  { %v287_v14 = vor.u32 1.1754944e-38, %v286_v11  ;;  %vm285_vm14 = vcmp.eq.f32.partialorder %v284_v12, 8.507059e+37 }
 0x543   :  { %v2449_v5 = vpop.eup %2448 }
 0x544   :  { %v276_v6 = vmul.f32 %v2449_v5, %v274_v4  ;;  %vm281_vm11 = vweird.f32 %v2449_v5 }
 0x545   :  { %vm282_vm13 = vmor %vm280_vm12, %vm281_vm11 }
 0x546   :  { %v277_v7 = vsub.f32 1.0, %v276_v6 }
 0x548   :  { %v278_v9 = vmul.f32 %v2449_v5, %v277_v7 }
 0x54a   :  { %v279_v10 = vadd.f32 %v2449_v5, %v278_v9 }
 0x54c   :  { %v283_v13 = vsel %vm282_vm13, %v2449_v5, %v279_v10 }
 0x54d   :  { %v288_v16 = vsel %vm285_vm14, %v287_v14, %v283_v13 }
 0x54e   :  { %v291_v18 = vmul.f32 %v288_v16, %v236_v56  ;;  %v2952_v56 = vld [vmem:[#allocation3 + $0x10] sm:$0xff] }
 0x54f   :  { %667 = vmatpush.msra.mxu0 %v2952_v56  ;;  %735 = vmatpush.msra.mxu1 %v2952_v56 }
 0x550   :  { %803 = vmatpush.msra.mxu2 %v2952_v56 }
 0x551   :  { %668 = vmatpush.msra.mxu0 %v2958_v57  ;;  %736 = vmatpush.msra.mxu1 %v2958_v57 }
 0x552   :  { %804 = vmatpush.msra.mxu2 %v2958_v57 }
 0x553   :  { %669 = vmatpush.msra.mxu0 %v2964_v58  ;;  %737 = vmatpush.msra.mxu1 %v2964_v58 }
 0x554   :  { %805 = vmatpush.msra.mxu2 %v2964_v58 }
 0x593   :  { %v294_v15 = vpop.permute.xlu2 %293 }
 0x594   :  { %v296_v17 = vmul.f32 %v294_v15, %v288_v16 }
 0x596   :  { %298 = vrot.lane.b32.xlu0 %v296_v17, %s2769_s27 }
 0x608   :  { %v299_v19 = vpop.permute.xlu0 %298 }
 0x609   :  { %v301_v20 = vadd.f32 %v299_v19, %v291_v18 }
 0x60b   :  { %2450 = vtanh.f32 %v301_v20 }
 0x611   :  { %v2451_v21 = vpop.eup %2450 }
 0x612   :  { %304 = vrot.lane.b32.xlu1 %v2451_v21, %s2768_s26 }
 0x684   :  { %v305_v22 = vpop.permute.xlu1 %304 }
 0x685   :  { %v2906_v23 = vmul.f32 %v305_v22, %v288_v16 }
 0x687   :  { %309 = vrot.lane.b32.xlu2 %v2906_v23, %s2770_s28 }
 0x6e1   :  { %v310_v25 = vpop.permute.xlu2 %309 }
 0x6e2   :  { %v312_v26 = vsel %vm108_vm1, %v2337_v24, %v310_v25 }
 0x6e3   :  { %2352 = vmatmul.msk.f32.vlgmr.msra.gmra.mxu3 %vm113_vm2, %v312_v26 }
 0x6e4   :  { %866 = vmatpush.msra.mxu3 %v2924_v50 }
 0x6e6   :  { %867 = vmatpush.msra.mxu3 %v2926_v51 }
 0x6e8   :  { %868 = vmatpush.msra.mxu3 %v2930_v52 }
 0x6ea   :  { %869 = vmatpush.msra.mxu3 %v2946_v54 }
 0x6ec   :  { %870 = vmatpush.msra.mxu3 %v2950_v55 }
 0x6ee   :  { %871 = vmatpush.msra.mxu3 %v2952_v56 }
 0x6f0   :  { %872 = vmatpush.msra.mxu3 %v2958_v57 }
 0x6f2   :  { %873 = vmatpush.msra.mxu3 %v2964_v58 }
 0x766   :  { %v333_v27 = vpop.f32.mrf.mxu3 }
 0x767   :  { %v334_v28 = vadd.f32 %v2874_v8, %v333_v27 }
 0x769   :  { %2452 = vtanh.f32 %v334_v28  ;;  %v2353_v30 = vmul.f32 -1.442695, %v334_v28 }
 0x76b   :  { %2454 = vpow2.f32 %v2353_v30 }
 0x76f   :  { %v2453_v29 = vpop.eup %2452 }
 0x770   :  { %358 = vrot.lane.b32.xlu0 %v2453_v29, %s2768_s26 }
 0x771   :  { %v2455_v31 = vpop.eup %2454 }
 0x772   :  { %v339_v33 = vadd.f32 1.0, %v2455_v31 }
 0x774   :  { %2456 = vrcp.f32 %v339_v33  ;;  %v351_v39 = vand.u32 2147483648, %v339_v33  ;;  %vm345_vm0 = vweird.f32 %v339_v33  ;;  %v349_v40 = vand.u32 2147483647, %v339_v33 }
 0x776   :  { %v352_v42 = vor.u32 1.1754944e-38, %v351_v39  ;;  %vm350_vm4 = vcmp.eq.f32.partialorder %v349_v40, 8.507059e+37 }
 0x77a   :  { %v2457_v34 = vpop.eup %2456 }
 0x77b   :  { %v341_v35 = vmul.f32 %v2457_v34, %v339_v33  ;;  %vm346_vm15 = vweird.f32 %v2457_v34 }
 0x77c   :  { %vm347_vm3 = vmor %vm345_vm0, %vm346_vm15 }
 0x77d   :  { %v342_v36 = vsub.f32 1.0, %v341_v35 }
 0x77f   :  { %v343_v37 = vmul.f32 %v2457_v34, %v342_v36 }
 0x781   :  { %v344_v38 = vadd.f32 %v2457_v34, %v343_v37 }
 0x783   :  { %v348_v41 = vsel %vm347_vm3, %v2457_v34, %v344_v38 }
 0x784   :  { %v353_v44 = vsel %vm350_vm4, %v352_v42, %v348_v41 }
 0x785   :  { %v356_v46 = vmul.f32 %v353_v44, %v301_v20 }
 0x7e2   :  { %v359_v43 = vpop.permute.xlu0 %358 }
 0x7e3   :  { %v361_v45 = vmul.f32 %v359_v43, %v353_v44 }
 0x7e5   :  { %363 = vrot.lane.b32.xlu1 %v361_v45, %s2769_s27 }
 0x7ed   :  { %642 = vrot.lane.b32.xlu1 %v2880_v32, %s2769_s27 }
 0x857   :  { %v364_v47 = vpop.permute.xlu1 %363 }
 0x858   :  { %v2920_v48 = vadd.f32 %v364_v47, %v356_v46 }
 0x85a   :  { %2458 = vtanh.f32 %v2920_v48 }
 0x85f   :  { %v643_v63 = vpop.permute.xlu1 %642 }
 0x860   :  { %v2459_v49 = vpop.eup %2458  ;;  %v646_v0 = vsel %vm645_vm5, %v643_v63, 0.0 }
 0x861   :  { %369 = vrot.lane.b32.xlu2 %v2459_v49, %s2768_s26 }
 0x8bb   :  { %v370_v32 = vpop.permute.xlu2 %369 }
 0x8bc   :  { %v2942_v53 = vmul.f32 %v370_v32, %v353_v44 }
 0x8be   :  { %374 = vrot.lane.b32.xlu0 %v2942_v53, %s2770_s28 }
 0x930   :  { %v375_v61 = vpop.permute.xlu0 %374 }
 0x931   :  { %v377_v62 = vsel %vm108_vm1, %v2338_v60, %v375_v61 }
 0x932   :  { %2355 = vmatmul.msk.f32.vlgmr.msrb.gmra.mxu0 %vm113_vm2, %v377_v62  ;;  %v2339_v62 = vld [vmem:[%s3592_s0 + $0xa] sm:$0x3] }
 0x933   :  { %934 = vmatpush.msrb.mxu0 %v2924_v50 }
 0x935   :  { %935 = vmatpush.msrb.mxu0 %v2926_v51 }
 0x937   :  { %936 = vmatpush.msrb.mxu0 %v2930_v52 }
 0x939   :  { %937 = vmatpush.msrb.mxu0 %v2946_v54 }
 0x93a   :  { %2366 = vmatmul.msk.f32.vlgmr.msra.gmra.mxu0 %vm650_vm6, %v646_v0 }
 0x93b   :  { %938 = vmatpush.msrb.mxu0 %v2950_v55 }
 0x93d   :  { %939 = vmatpush.msrb.mxu0 %v2952_v56 }
 0x93f   :  { %940 = vmatpush.msrb.mxu0 %v2958_v57 }
 0x941   :  { %941 = vmatpush.msrb.mxu0 %v2964_v58 }
 0x9af   :  { %v398_v1 = vpop.f32.mrf.mxu0 }
 0x9b0   :  { %v399_v2 = vadd.f32 %v2874_v8, %v398_v1 }
 0x9b2   :  { %2460 = vtanh.f32 %v399_v2  ;;  %v2356_v9 = vmul.f32 -1.442695, %v399_v2 }
 0x9b7   :  { %v671_v4 = vpop.f32.mrf.mxu0 }
 0x9b8   :  { %v2461_v5 = vpop.eup %2460  ;;  %v672_v6 = vadd.f32 %v2995_v3, %v671_v4 }
 0x9b9   :  { %423 = vrot.lane.b32.xlu2 %v2461_v5, %s2768_s26 }
 0x9ba   :  { %2462 = vtanh.f32 %v672_v6  ;;  %v2367_v15 = vmul.f32 -1.442695, %v672_v6 }
 0x9bb   :  { %2464 = vpow2.f32 %v2356_v9 }
 0x9c0   :  { %v2463_v7 = vpop.eup %2462 }
 0x9c1   :  { %696 = vrot.lane.b32.xlu0 %v2463_v7, %s2768_s26  ;;  %v2465_v10 = vpop.eup %2464 }
 0x9c2   :  { %v404_v11 = vadd.f32 1.0, %v2465_v10 }
 0x9c4   :  { %2466 = vrcp.f32 %v404_v11  ;;  %v416_v18 = vand.u32 2147483648, %v404_v11  ;;  %vm410_vm8 = vweird.f32 %v404_v11  ;;  %v414_v19 = vand.u32 2147483647, %v404_v11 }
 0x9c5   :  { %2468 = vpow2.f32 %v2367_v15 }
 0x9c6   :  { %v417_v22 = vor.u32 1.1754944e-38, %v416_v18  ;;  %vm415_vm10 = vcmp.eq.f32.partialorder %v414_v19, 8.507059e+37 }
 0x9ca   :  { %v2467_v12 = vpop.eup %2466 }
 0x9cb   :  { %v406_v13 = vmul.f32 %v2467_v12, %v404_v11  ;;  %vm411_vm7 = vweird.f32 %v2467_v12  ;;  %v2469_v20 = vpop.eup %2468 }
 0x9cc   :  { %vm412_vm9 = vmor %vm410_vm8, %vm411_vm7  ;;  %v677_v24 = vadd.f32 1.0, %v2469_v20 }
 0x9cd   :  { %v407_v14 = vsub.f32 1.0, %v406_v13 }
 0x9ce   :  { %2470 = vrcp.f32 %v677_v24  ;;  %v689_v34 = vand.u32 2147483648, %v677_v24  ;;  %vm683_vm12 = vweird.f32 %v677_v24  ;;  %v687_v35 = vand.u32 2147483647, %v677_v24 }
 0x9cf   :  { %v408_v16 = vmul.f32 %v2467_v12, %v407_v14 }
 0x9d0   :  { %v690_v37 = vor.u32 1.1754944e-38, %v689_v34  ;;  %vm688_vm14 = vcmp.eq.f32.partialorder %v687_v35, 8.507059e+37 }
 0x9d1   :  { %v409_v17 = vadd.f32 %v2467_v12, %v408_v16 }
 0x9d3   :  { %v413_v21 = vsel %vm412_vm9, %v2467_v12, %v409_v17 }
 0x9d4   :  { %v418_v26 = vsel %vm415_vm10, %v417_v22, %v413_v21  ;;  %v2471_v28 = vpop.eup %2470 }
 0x9d5   :  { %v679_v29 = vmul.f32 %v2471_v28, %v677_v24  ;;  %vm684_vm11 = vweird.f32 %v2471_v28  ;;  %v421_v41 = vmul.f32 %v418_v26, %v2920_v48 }
 0x9d6   :  { %vm685_vm13 = vmor %vm683_vm12, %vm684_vm11 }
 0x9d7   :  { %v680_v30 = vsub.f32 1.0, %v679_v29 }
 0x9d9   :  { %v681_v31 = vmul.f32 %v2471_v28, %v680_v30 }
 0x9db   :  { %v682_v33 = vadd.f32 %v2471_v28, %v681_v31 }
 0x9dd   :  { %v686_v36 = vsel %vm685_vm13, %v2471_v28, %v682_v33 }
 0x9de   :  { %v691_v39 = vsel %vm688_vm14, %v690_v37, %v686_v36 }
 0x9df   :  { %v694_v44 = vmul.f32 0.0, %v691_v39 }
 0xa13   :  { %v424_v25 = vpop.permute.xlu2 %423 }
 0xa14   :  { %v426_v27 = vmul.f32 %v424_v25, %v418_v26 }
 0xa16   :  { %428 = vrot.lane.b32.xlu1 %v426_v27, %s2769_s27 }
 0xa33   :  { %v697_v38 = vpop.permute.xlu0 %696 }
 0xa34   :  { %v699_v40 = vmul.f32 %v697_v38, %v691_v39 }
 0xa36   :  { %701 = vrot.lane.b32.xlu2 %v699_v40, %s2769_s27 }
 0xa88   :  { %v429_v42 = vpop.permute.xlu1 %428 }
 0xa89   :  { %v3003_v43 = vadd.f32 %v429_v42, %v421_v41 }
 0xa8b   :  { %2472 = vtanh.f32 %v3003_v43 }
 0xa90   :  { %v702_v45 = vpop.permute.xlu2 %701 }
 0xa91   :  { %v2473_v46 = vpop.eup %2472  ;;  %v3006_v47 = vadd.f32 %v702_v45, %v694_v44 }
 0xa92   :  { %434 = vrot.lane.b32.xlu0 %v2473_v46, %s2768_s26 }
 0xa93   :  { %2474 = vtanh.f32 %v3006_v47 }
 0xa99   :  { %v2475_v49 = vpop.eup %2474 }
 0xa9a   :  { %707 = vrot.lane.b32.xlu1 %v2475_v49, %s2768_s26  ;;  %711 = vrot.lane.b32.xlu0 %v2893_v59, %s2769_s27 }
 0xb04   :  { %v435_v48 = vpop.permute.xlu0 %434 }
 0xb05   :  { %v3013_v32 = vmul.f32 %v435_v48, %v418_v26 }
 0xb07   :  { %439 = vrot.lane.b32.xlu2 %v3013_v32, %s2770_s28 }
 0xb0c   :  { %v708_v60 = vpop.permute.xlu1 %707  ;;  %v712_v59 = vpop.permute.xlu0 %711 }
 0xb0d   :  { %v3017_v61 = vmul.f32 %v708_v60, %v691_v39 }
 0xb0f   :  { %715 = vrot.lane.b32.xlu1 %v3017_v61, %s2768_s26 }
 0xb61   :  { %v440_v63 = vpop.permute.xlu2 %439 }
 0xb62   :  { %v442_v0 = vsel %vm108_vm1, %v2339_v62, %v440_v63 }
 0xb63   :  { %2358 = vmatmul.msk.f32.vlgmr.msrb.gmra.mxu1 %vm113_vm2, %v442_v0 }
 0xb64   :  { %1002 = vmatpush.msrb.mxu1 %v2924_v50 }
 0xb66   :  { %1003 = vmatpush.msrb.mxu1 %v2926_v51 }
 0xb68   :  { %1004 = vmatpush.msrb.mxu1 %v2930_v52 }
 0xb6a   :  { %1005 = vmatpush.msrb.mxu1 %v2946_v54 }
 0xb6c   :  { %1006 = vmatpush.msrb.mxu1 %v2950_v55 }
 0xb6e   :  { %1007 = vmatpush.msrb.mxu1 %v2952_v56 }
 0xb70   :  { %1008 = vmatpush.msrb.mxu1 %v2958_v57 }
 0xb72   :  { %1009 = vmatpush.msrb.mxu1 %v2964_v58 }
 0xb81   :  { %v716_v1 = vpop.permute.xlu1 %715 }
 0xb82   :  { %v718_v2 = vsel %vm645_vm5, %v712_v59, %v716_v1 }
 0xb83   :  { %2368 = vmatmul.msk.f32.vlgmr.msra.gmra.mxu1 %vm650_vm6, %v718_v2 }
 0xbe0   :  { %v463_v4 = vpop.f32.mrf.mxu1 }
 0xbe1   :  { %v464_v5 = vadd.f32 %v2874_v8, %v463_v4 }
 0xbe3   :  { %2476 = vtanh.f32 %v464_v5  ;;  %v2359_v11 = vmul.f32 -1.442695, %v464_v5 }
 0xbe9   :  { %v2477_v6 = vpop.eup %2476 }
 0xbea   :  { %488 = vrot.lane.b32.xlu2 %v2477_v6, %s2768_s26 }
 0xc00   :  { %v739_v7 = vpop.f32.mrf.mxu1 }
 0xc01   :  { %v740_v9 = vadd.f32 %v2995_v3, %v739_v7 }
 0xc03   :  { %2478 = vtanh.f32 %v740_v9  ;;  %v2369_v27 = vmul.f32 -1.442695, %v740_v9 }
 0xc04   :  { %2480 = vpow2.f32 %v2359_v11 }
 0xc09   :  { %v2479_v10 = vpop.eup %2478 }
 0xc0a   :  { %764 = vrot.lane.b32.xlu0 %v2479_v10, %s2768_s26  ;;  %v2481_v12 = vpop.eup %2480 }
 0xc0b   :  { %v469_v13 = vadd.f32 1.0, %v2481_v12 }
 0xc0d   :  { %2482 = vrcp.f32 %v469_v13  ;;  %v481_v19 = vand.u32 2147483648, %v469_v13  ;;  %vm475_vm0 = vweird.f32 %v469_v13  ;;  %v479_v20 = vand.u32 2147483647, %v469_v13 }
 0xc0e   :  { %2484 = vpow2.f32 %v2369_v27 }
 0xc0f   :  { %v482_v22 = vor.u32 1.1754944e-38, %v481_v19  ;;  %vm480_vm4 = vcmp.eq.f32.partialorder %v479_v20, 8.507059e+37 }
 0xc13   :  { %v2483_v14 = vpop.eup %2482 }
 0xc14   :  { %v471_v15 = vmul.f32 %v2483_v14, %v469_v13  ;;  %vm476_vm15 = vweird.f32 %v2483_v14  ;;  %v2485_v28 = vpop.eup %2484 }
 0xc15   :  { %vm477_vm3 = vmor %vm475_vm0, %vm476_vm15  ;;  %v745_v29 = vadd.f32 1.0, %v2485_v28 }
 0xc16   :  { %v472_v16 = vsub.f32 1.0, %v471_v15 }
 0xc17   :  { %2486 = vrcp.f32 %v745_v29  ;;  %v757_v36 = vand.u32 2147483648, %v745_v29  ;;  %vm751_vm8 = vweird.f32 %v745_v29  ;;  %v755_v37 = vand.u32 2147483647, %v745_v29 }
 0xc18   :  { %v473_v17 = vmul.f32 %v2483_v14, %v472_v16 }
 0xc19   :  { %v758_v39 = vor.u32 1.1754944e-38, %v757_v36  ;;  %vm756_vm10 = vcmp.eq.f32.partialorder %v755_v37, 8.507059e+37 }
 0xc1a   :  { %v474_v18 = vadd.f32 %v2483_v14, %v473_v17 }
 0xc1c   :  { %v478_v21 = vsel %vm477_vm3, %v2483_v14, %v474_v18 }
 0xc1d   :  { %v483_v25 = vsel %vm480_vm4, %v482_v22, %v478_v21  ;;  %v2487_v30 = vpop.eup %2486 }
 0xc1e   :  { %v747_v31 = vmul.f32 %v2487_v30, %v745_v29  ;;  %vm752_vm7 = vweird.f32 %v2487_v30  ;;  %v486_v44 = vmul.f32 %v483_v25, %v3003_v43 }
 0xc1f   :  { %vm753_vm9 = vmor %vm751_vm8, %vm752_vm7 }
 0xc20   :  { %v748_v33 = vsub.f32 1.0, %v747_v31 }
 0xc22   :  { %v749_v34 = vmul.f32 %v2487_v30, %v748_v33 }
 0xc24   :  { %v750_v35 = vadd.f32 %v2487_v30, %v749_v34 }
 0xc26   :  { %v754_v38 = vsel %vm753_vm9, %v2487_v30, %v750_v35 }
 0xc27   :  { %v759_v41 = vsel %vm756_vm10, %v758_v39, %v754_v38 }
 0xc28   :  { %v762_v48 = vmul.f32 %v759_v41, %v3006_v47 }
 0xc44   :  { %v489_v24 = vpop.permute.xlu2 %488 }
 0xc45   :  { %v491_v26 = vmul.f32 %v489_v24, %v483_v25 }
 0xc47   :  { %493 = vrot.lane.b32.xlu1 %v491_v26, %s2769_s27 }
 0xc7c   :  { %v765_v40 = vpop.permute.xlu0 %764 }
 0xc7d   :  { %v767_v42 = vmul.f32 %v765_v40, %v759_v41 }
 0xc7f   :  { %769 = vrot.lane.b32.xlu2 %v767_v42, %s2769_s27 }
 0xcb9   :  { %v494_v45 = vpop.permute.xlu1 %493 }
 0xcba   :  { %v3043_v46 = vadd.f32 %v494_v45, %v486_v44 }
 0xcbc   :  { %2488 = vtanh.f32 %v3043_v46 }
 0xcc2   :  { %v2489_v49 = vpop.eup %2488 }
 0xcc3   :  { %499 = vrot.lane.b32.xlu0 %v2489_v49, %s2768_s26 }
 0xccb   :  { %779 = vrot.lane.b32.xlu0 %v2906_v23, %s2769_s27  ;;  %v2340_v23 = vld [vmem:[%s3592_s0 + $0xc] sm:$0x3] }
 0xcd9   :  { %v770_v60 = vpop.permute.xlu2 %769 }
 0xcda   :  { %v3050_v62 = vadd.f32 %v770_v60, %v762_v48 }
 0xcdc   :  { %2490 = vtanh.f32 %v3050_v62 }
 0xce2   :  { %v2491_v63 = vpop.eup %2490 }
 0xce3   :  { %775 = vrot.lane.b32.xlu1 %v2491_v63, %s2768_s26 }
 0xd35   :  { %v500_v43 = vpop.permute.xlu0 %499 }
 0xd36   :  { %v3054_v0 = vmul.f32 %v500_v43, %v483_v25 }
 0xd38   :  { %504 = vrot.lane.b32.xlu2 %v3054_v0, %s2770_s28 }
 0xd3d   :  { %v780_v4 = vpop.permute.xlu0 %779 }
 0xd55   :  { %v776_v59 = vpop.permute.xlu1 %775 }
 0xd56   :  { %v3058_v1 = vmul.f32 %v776_v59, %v759_v41 }
 0xd58   :  { %783 = vrot.lane.b32.xlu1 %v3058_v1, %s2768_s26 }
 0xd92   :  { %v505_v47 = vpop.permute.xlu2 %504 }
 0xd93   :  { %v507_v2 = vsel %vm108_vm1, %v2340_v23, %v505_v47 }
 0xd94   :  { %2361 = vmatmul.msk.f32.vlgmr.msrb.gmra.mxu2 %vm113_vm2, %v507_v2 }
 0xd95   :  { %1070 = vmatpush.msrb.mxu2 %v2924_v50 }
 0xd97   :  { %1071 = vmatpush.msrb.mxu2 %v2926_v51 }
 0xd99   :  { %1072 = vmatpush.msrb.mxu2 %v2930_v52 }
 0xd9b   :  { %1073 = vmatpush.msrb.mxu2 %v2946_v54 }
 0xd9d   :  { %1074 = vmatpush.msrb.mxu2 %v2950_v55 }
 0xd9f   :  { %1075 = vmatpush.msrb.mxu2 %v2952_v56 }
 0xda1   :  { %1076 = vmatpush.msrb.mxu2 %v2958_v57 }
 0xda3   :  { %1077 = vmatpush.msrb.mxu2 %v2964_v58 }
 0xdca   :  { %v784_v5 = vpop.permute.xlu1 %783 }
 0xdcb   :  { %v786_v6 = vsel %vm645_vm5, %v780_v4, %v784_v5 }
 0xdcc   :  { %2370 = vmatmul.msk.f32.vlgmr.msra.gmra.mxu2 %vm650_vm6, %v786_v6 }
 0xe17   :  { %v528_v7 = vpop.f32.mrf.mxu2 }
 0xe18   :  { %v529_v9 = vadd.f32 %v2874_v8, %v528_v7 }
 0xe1a   :  { %2492 = vtanh.f32 %v529_v9  ;;  %v2362_v11 = vmul.f32 -1.442695, %v529_v9 }
 0xe1c   :  { %2494 = vpow2.f32 %v2362_v11 }
 0xe20   :  { %v2493_v10 = vpop.eup %2492 }
 0xe21   :  { %553 = vrot.lane.b32.xlu2 %v2493_v10, %s2768_s26 }
 0xe22   :  { %v2495_v14 = vpop.eup %2494 }
 0xe23   :  { %v534_v16 = vadd.f32 1.0, %v2495_v14 }
 0xe25   :  { %v546_v21 = vand.u32 2147483648, %v534_v16  ;;  %vm540_vm12 = vweird.f32 %v534_v16  ;;  %v544_v22 = vand.u32 2147483647, %v534_v16 }
 0xe27   :  { %v547_v25 = vor.u32 1.1754944e-38, %v546_v21  ;;  %vm545_vm14 = vcmp.eq.f32.partialorder %v544_v22, 8.507059e+37 }
 0xe4f   :  { %v807_v12 = vpop.f32.mrf.mxu2 }
 0xe50   :  { %v808_v13 = vadd.f32 %v2995_v3, %v807_v12 }
 0xe52   :  { %2496 = vtanh.f32 %v808_v13  ;;  %v2371_v29 = vmul.f32 -1.442695, %v808_v13 }
 0xe53   :  { %2498 = vrcp.f32 %v534_v16 }
 0xe54   :  { %2500 = vpow2.f32 %v2371_v29  ;;  %v3150_v29 = vld [vmem:[#allocation5 + $0x20] sm:$0xff] }
 0xe58   :  { %v2497_v15 = vpop.eup %2496 }
 0xe59   :  { %832 = vrot.lane.b32.xlu0 %v2497_v15, %s2768_s26  ;;  %v2499_v17 = vpop.eup %2498 }
 0xe5a   :  { %v536_v18 = vmul.f32 %v2499_v17, %v534_v16  ;;  %vm541_vm11 = vweird.f32 %v2499_v17  ;;  %v2501_v30 = vpop.eup %2500 }
 0xe5b   :  { %vm542_vm13 = vmor %vm540_vm12, %vm541_vm11  ;;  %v813_v31 = vadd.f32 1.0, %v2501_v30  ;;  %v3154_v30 = vld [vmem:[#allocation5 + $0x18] sm:$0xff] }
 0xe5c   :  { %v537_v19 = vsub.f32 1.0, %v536_v18 }
 0xe5d   :  { %2502 = vrcp.f32 %v813_v31  ;;  %v825_v38 = vand.u32 2147483648, %v813_v31  ;;  %vm819_vm0 = vweird.f32 %v813_v31  ;;  %v823_v39 = vand.u32 2147483647, %v813_v31 }
 0xe5e   :  { %v538_v8 = vmul.f32 %v2499_v17, %v537_v19 }
 0xe5f   :  { %v826_v41 = vor.u32 1.1754944e-38, %v825_v38  ;;  %vm824_vm4 = vcmp.eq.f32.partialorder %v823_v39, 8.507059e+37 }
 0xe60   :  { %v539_v20 = vadd.f32 %v2499_v17, %v538_v8 }
 0xe62   :  { %v543_v24 = vsel %vm542_vm13, %v2499_v17, %v539_v20 }
 0xe63   :  { %v548_v27 = vsel %vm545_vm14, %v547_v25, %v543_v24  ;;  %v2503_v33 = vpop.eup %2502  ;;  %v3128_v25 = vld [vmem:[#allocation5 + $0x38] sm:$0xff] }
 0xe64   :  { %v815_v34 = vmul.f32 %v2503_v33, %v813_v31  ;;  %vm820_vm15 = vweird.f32 %v2503_v33  ;;  %v551_v49 = vmul.f32 %v548_v27, %v3043_v46  ;;  %1215 = vmatpush.msra.mxu0 %v3128_v25  ;;  %1283 = vmatpush.msra.mxu1 %v3128_v25  ;;  %v3156_v31 = vld [vmem:[#allocation5 + $0x10] sm:$0xff] }
 0xe65   :  { %vm821_vm3 = vmor %vm819_vm0, %vm820_vm15  ;;  %1351 = vmatpush.msra.mxu2 %v3128_v25 }
 0xe66   :  { %v816_v35 = vsub.f32 1.0, %v815_v34  ;;  %v3168_v34 = vld [vmem:[#allocation5] sm:$0xff] }
 0xe68   :  { %v817_v36 = vmul.f32 %v2503_v33, %v816_v35 }
 0xe6a   :  { %v818_v37 = vadd.f32 %v2503_v33, %v817_v36 }
 0xe6c   :  { %v822_v40 = vsel %vm821_vm3, %v2503_v33, %v818_v37  ;;  %v3162_v33 = vld [vmem:[#allocation5 + $0x8] sm:$0xff] }
 0xe6d   :  { %v827_v44 = vsel %vm824_vm4, %v826_v41, %v822_v40 }
 0xe6e   :  { %v830_v43 = vmul.f32 %v827_v44, %v3050_v62 }
 0xe7b   :  { %v554_v26 = vpop.permute.xlu2 %553 }
 0xe7c   :  { %v556_v28 = vmul.f32 %v554_v26, %v548_v27  ;;  %v3130_v26 = vld [vmem:[#allocation5 + $0x30] sm:$0xff] }
 0xe7d   :  { %1216 = vmatpush.msra.mxu0 %v3130_v26  ;;  %1284 = vmatpush.msra.mxu1 %v3130_v26 }
 0xe7e   :  { %558 = vrot.lane.b32.xlu1 %v556_v28, %s2769_s27  ;;  %1352 = vmatpush.msra.mxu2 %v3130_v26 }
 0xecb   :  { %v833_v42 = vpop.permute.xlu0 %832 }
 0xecc   :  { %v835_v45 = vmul.f32 %v833_v42, %v827_v44  ;;  %v3196_v42 = vld [vmem:[%s3598_s6] ss:$0 sm:$0xff] }
 0xece   :  { %837 = vrot.lane.b32.xlu2 %v835_v45, %s2769_s27 }
 0xef0   :  { %v559_v48 = vpop.permute.xlu1 %558 }
 0xef1   :  { %v3084_v60 = vadd.f32 %v559_v48, %v551_v49 }
 0xef3   :  { %2504 = vtanh.f32 %v3084_v60 }
 0xef9   :  { %v2505_v63 = vpop.eup %2504 }
 0xefa   :  { %564 = vrot.lane.b32.xlu0 %v2505_v63, %s2768_s26 }
 0xf02   :  { %847 = vrot.lane.b32.xlu0 %v2942_v53, %s2769_s27  ;;  %v2341_v53 = vld [vmem:[%s3592_s0 + $0xe] sm:$0x3] }
 0xf28   :  { %v838_v59 = vpop.permute.xlu2 %837 }
 0xf29   :  { %v840_v23 = vadd.f32 %v838_v59, %v830_v43 }
 0xf2b   :  { %2506 = vtanh.f32 %v840_v23 }
 0xf31   :  { %v2507_v47 = vpop.eup %2506 }
 0xf32   :  { %843 = vrot.lane.b32.xlu1 %v2507_v47, %s2768_s26 }
 0xf6c   :  { %v565_v46 = vpop.permute.xlu0 %564 }
 0xf6d   :  { %v3092_v2 = vmul.f32 %v565_v46, %v548_v27  ;;  %v3134_v27 = vld [vmem:[#allocation5 + $0x28] sm:$0xff] }
 0xf6e   :  { %1217 = vmatpush.msra.mxu0 %v3134_v27  ;;  %1285 = vmatpush.msra.mxu1 %v3134_v27 }
 0xf6f   :  { %569 = vrot.lane.b32.xlu2 %v3092_v2, %s2770_s28  ;;  %1353 = vmatpush.msra.mxu2 %v3134_v27 }
 0xf70   :  { %1218 = vmatpush.msra.mxu0 %v3150_v29  ;;  %1286 = vmatpush.msra.mxu1 %v3150_v29 }
 0xf71   :  { %1354 = vmatpush.msra.mxu2 %v3150_v29 }
 0xf72   :  { %1219 = vmatpush.msra.mxu0 %v3154_v30  ;;  %1287 = vmatpush.msra.mxu1 %v3154_v30 }
 0xf73   :  { %1355 = vmatpush.msra.mxu2 %v3154_v30 }
 0xf74   :  { %v848_v7 = vpop.permute.xlu0 %847  ;;  %1220 = vmatpush.msra.mxu0 %v3156_v31  ;;  %1288 = vmatpush.msra.mxu1 %v3156_v31 }
 0xf75   :  { %1356 = vmatpush.msra.mxu2 %v3156_v31 }
 0xf76   :  { %1221 = vmatpush.msra.mxu0 %v3162_v33  ;;  %1289 = vmatpush.msra.mxu1 %v3162_v33 }
 0xf77   :  { %1357 = vmatpush.msra.mxu2 %v3162_v33 }
 0xf78   :  { %1222 = vmatpush.msra.mxu0 %v3168_v34  ;;  %1290 = vmatpush.msra.mxu1 %v3168_v34 }
 0xf79   :  { %1358 = vmatpush.msra.mxu2 %v3168_v34 }
 0xfa4   :  { %v844_v4 = vpop.permute.xlu1 %843 }
 0xfa5   :  { %v3096_v5 = vmul.f32 %v844_v4, %v827_v44 }
 0xfa7   :  { %851 = vrot.lane.b32.xlu1 %v3096_v5, %s2768_s26 }
 0xfc9   :  { %v570_v62 = vpop.permute.xlu2 %569 }
 0xfca   :  { %v572_v6 = vsel %vm108_vm1, %v2341_v53, %v570_v62 }
 0xfcb   :  { %2364 = vmatmul.msk.f32.vlgmr.msrb.gmra.mxu3 %vm113_vm2, %v572_v6 }
 0xfcc   :  { %1139 = vmatpush.msrb.mxu3 %v2924_v50 }
 0xfce   :  { %1140 = vmatpush.msrb.mxu3 %v2926_v51 }
 0xfd0   :  { %1141 = vmatpush.msrb.mxu3 %v2930_v52 }
 0xfd2   :  { %1142 = vmatpush.msrb.mxu3 %v2946_v54 }
 0xfd4   :  { %1143 = vmatpush.msrb.mxu3 %v2950_v55 }
 0xfd6   :  { %1144 = vmatpush.msrb.mxu3 %v2952_v56 }
 0xfd8   :  { %1145 = vmatpush.msrb.mxu3 %v2958_v57 }
 0xfda   :  { %1146 = vmatpush.msrb.mxu3 %v2964_v58 }
0x1019   :  { %v852_v9 = vpop.permute.xlu1 %851 }
0x101a   :  { %v854_v10 = vsel %vm645_vm5, %v848_v7, %v852_v9 }
0x101b   :  { %2372 = vmatmul.msk.f32.vlgmr.msra.gmra.mxu3 %vm650_vm6, %v854_v10 }
0x101c   :  { %1419 = vmatpush.msra.mxu3 %v3128_v25 }
0x101e   :  { %1420 = vmatpush.msra.mxu3 %v3130_v26 }
0x1020   :  { %1421 = vmatpush.msra.mxu3 %v3134_v27 }
0x1022   :  { %1422 = vmatpush.msra.mxu3 %v3150_v29 }
0x1024   :  { %1423 = vmatpush.msra.mxu3 %v3154_v30 }
0x1026   :  { %1424 = vmatpush.msra.mxu3 %v3156_v31 }
0x1028   :  { %1425 = vmatpush.msra.mxu3 %v3162_v33 }
0x102a   :  { %1426 = vmatpush.msra.mxu3 %v3168_v34 }
0x104e   :  { %v3115_v50 = vpop.f32.mrf.mxu3 }
0x109e   :  { %v875_v51 = vpop.f32.mrf.mxu3 }
0x109f   :  { %v876_v52 = vadd.f32 %v2995_v3, %v875_v51 }
0x10a1   :  { %2508 = vtanh.f32 %v876_v52  ;;  %v2373_v55 = vmul.f32 -1.442695, %v876_v52 }
0x10a3   :  { %2510 = vpow2.f32 %v2373_v55 }
0x10a7   :  { %v2509_v54 = vpop.eup %2508 }
0x10a8   :  { %900 = vrot.lane.b32.xlu2 %v2509_v54, %s2768_s26 }
0x10a9   :  { %v2511_v56 = vpop.eup %2510 }
0x10aa   :  { %v881_v57 = vadd.f32 1.0, %v2511_v56 }
0x10ac   :  { %2512 = vrcp.f32 %v881_v57  ;;  %v893_v15 = vand.u32 2147483648, %v881_v57  ;;  %vm887_vm2 = vweird.f32 %v881_v57  ;;  %v891_v16 = vand.u32 2147483647, %v881_v57 }
0x10ae   :  { %v894_v18 = vor.u32 1.1754944e-38, %v893_v15  ;;  %vm892_vm8 = vcmp.eq.f32.partialorder %v891_v16, 8.507059e+37 }
0x10b0   :  { %915 = vrot.lane.b32.xlu2 %v3013_v32, %s2769_s27 }
0x10b2   :  { %v2513_v58 = vpop.eup %2512 }
0x10b3   :  { %v883_v11 = vmul.f32 %v2513_v58, %v881_v57  ;;  %vm888_vm1 = vweird.f32 %v2513_v58 }
0x10b4   :  { %vm889_vm7 = vmor %vm887_vm2, %vm888_vm1 }
0x10b5   :  { %v884_v12 = vsub.f32 1.0, %v883_v11 }
0x10b7   :  { %v885_v13 = vmul.f32 %v2513_v58, %v884_v12 }
0x10b9   :  { %v886_v14 = vadd.f32 %v2513_v58, %v885_v13 }
0x10bb   :  { %v890_v17 = vsel %vm889_vm7, %v2513_v58, %v886_v14 }
0x10bc   :  { %v895_v32 = vsel %vm892_vm8, %v894_v18, %v890_v17 }
0x10bd   :  { %v898_v20 = vmul.f32 %v895_v32, %v840_v23 }
0x1102   :  { %v901_v19 = vpop.permute.xlu2 %900 }
0x1103   :  { %v903_v8 = vmul.f32 %v901_v19, %v895_v32 }
0x1105   :  { %905 = vrot.lane.b32.xlu0 %v903_v8, %s2769_s27 }
0x110a   :  { %v916_v35 = vpop.permute.xlu2 %915 }
0x1177   :  { %v906_v21 = vpop.permute.xlu0 %905 }
0x1178   :  { %v3122_v22 = vadd.f32 %v906_v21, %v898_v20 }
0x117a   :  { %2514 = vtanh.f32 %v3122_v22 }
0x1180   :  { %v2515_v24 = vpop.eup %2514 }
0x1181   :  { %911 = vrot.lane.b32.xlu1 %v2515_v24, %s2768_s26 }
0x1189   :  { %1197 = vrot.lane.b32.xlu1 %v3017_v61, %s2769_s27 }
0x11f3   :  { %v912_v61 = vpop.permute.xlu1 %911 }
0x11f4   :  { %v3146_v28 = vmul.f32 %v912_v61, %v895_v32 }
0x11f6   :  { %919 = vrot.lane.b32.xlu0 %v3146_v28, %s2768_s26 }
0x11fb   :  { %v1198_v38 = vpop.permute.xlu1 %1197 }
0x11fc   :  { %v1200_v39 = vsel %vm645_vm5, %v1198_v38, 0.0 }
0x1268   :  { %v920_v36 = vpop.permute.xlu0 %919 }
0x1269   :  { %v922_v37 = vsel %vm645_vm5, %v916_v35, %v920_v36 }
0x126a   :  { %2374 = vmatmul.msk.f32.vlgmr.msrb.gmra.mxu0 %vm650_vm6, %v922_v37 }
0x126b   :  { %1487 = vmatpush.msrb.mxu0 %v3128_v25 }
0x126d   :  { %1488 = vmatpush.msrb.mxu0 %v3130_v26 }
0x126f   :  { %1489 = vmatpush.msrb.mxu0 %v3134_v27 }
0x1271   :  { %1490 = vmatpush.msrb.mxu0 %v3150_v29 }
0x1272   :  { %2382 = vmatmul.msk.f32.vlgmr.msra.gmra.mxu0 %vm650_vm6, %v1200_v39 }
0x1273   :  { %1491 = vmatpush.msrb.mxu0 %v3154_v30 }
0x1275   :  { %1492 = vmatpush.msrb.mxu0 %v3156_v31 }
0x1277   :  { %1493 = vmatpush.msrb.mxu0 %v3162_v33 }
0x1279   :  { %1494 = vmatpush.msrb.mxu0 %v3168_v34 }
0x12e7   :  { %v943_v40 = vpop.f32.mrf.mxu0 }
0x12e8   :  { %v944_v41 = vadd.f32 %v2995_v3, %v943_v40 }
0x12ea   :  { %2516 = vtanh.f32 %v944_v41  ;;  %v2375_v63 = vmul.f32 -1.442695, %v944_v41 }
0x12ef   :  { %v1224_v44 = vpop.f32.mrf.mxu0 }
0x12f0   :  { %v2517_v45 = vpop.eup %2516  ;;  %v1225_v49 = vadd.f32 %v3196_v42, %v1224_v44 }
0x12f1   :  { %968 = vrot.lane.b32.xlu2 %v2517_v45, %s2768_s26 }
0x12f2   :  { %2518 = vtanh.f32 %v1225_v49  ;;  %v2383_v4 = vmul.f32 -1.442695, %v1225_v49 }
0x12f3   :  { %2520 = vpow2.f32 %v2375_v63 }
0x12f8   :  { %v2519_v48 = vpop.eup %2518 }
0x12f9   :  { %1249 = vrot.lane.b32.xlu0 %v2519_v48, %s2768_s26  ;;  %v2521_v43 = vpop.eup %2520 }
0x12fa   :  { %v949_v59 = vadd.f32 1.0, %v2521_v43 }
0x12fc   :  { %2522 = vrcp.f32 %v949_v59  ;;  %v961_v6 = vand.u32 2147483648, %v949_v59  ;;  %vm955_vm10 = vweird.f32 %v949_v59  ;;  %v959_v7 = vand.u32 2147483647, %v949_v59 }
0x12fd   :  { %2524 = vpow2.f32 %v2383_v4 }
0x12fe   :  { %v962_v51 = vor.u32 1.1754944e-38, %v961_v6  ;;  %vm960_vm12 = vcmp.eq.f32.partialorder %v959_v7, 8.507059e+37 }
0x1302   :  { %v2523_v23 = vpop.eup %2522 }
0x1303   :  { %v951_v47 = vmul.f32 %v2523_v23, %v949_v59  ;;  %vm956_vm9 = vweird.f32 %v2523_v23  ;;  %v2525_v9 = vpop.eup %2524 }
0x1304   :  { %vm957_vm11 = vmor %vm955_vm10, %vm956_vm9  ;;  %v1230_v52 = vadd.f32 1.0, %v2525_v9 }
0x1305   :  { %v952_v46 = vsub.f32 1.0, %v951_v47 }
0x1306   :  { %2526 = vrcp.f32 %v1230_v52  ;;  %v1242_v14 = vand.u32 2147483648, %v1230_v52  ;;  %vm1236_vm14 = vweird.f32 %v1230_v52  ;;  %v1240_v15 = vand.u32 2147483647, %v1230_v52 }
0x1307   :  { %v953_v53 = vmul.f32 %v2523_v23, %v952_v46 }
0x1308   :  { %v1243_v17 = vor.u32 1.1754944e-38, %v1242_v14  ;;  %vm1241_vm0 = vcmp.eq.f32.partialorder %v1240_v15, 8.507059e+37 }
0x1309   :  { %v954_v62 = vadd.f32 %v2523_v23, %v953_v53 }
0x130b   :  { %v958_v10 = vsel %vm957_vm11, %v2523_v23, %v954_v62 }
0x130c   :  { %v963_v55 = vsel %vm960_vm12, %v962_v51, %v958_v10  ;;  %v2527_v57 = vpop.eup %2526 }
0x130d   :  { %v1232_v58 = vmul.f32 %v2527_v57, %v1230_v52  ;;  %vm1237_vm13 = vweird.f32 %v2527_v57  ;;  %v966_v8 = vmul.f32 %v963_v55, %v3122_v22 }
0x130e   :  { %vm1238_vm15 = vmor %vm1236_vm14, %vm1237_vm13 }
0x130f   :  { %v1233_v11 = vsub.f32 1.0, %v1232_v58 }
0x1311   :  { %v1234_v12 = vmul.f32 %v2527_v57, %v1233_v11 }
0x1313   :  { %v1235_v13 = vadd.f32 %v2527_v57, %v1234_v12 }
0x1315   :  { %v1239_v16 = vsel %vm1238_vm15, %v2527_v57, %v1235_v13 }
0x1316   :  { %v1244_v19 = vsel %vm1241_vm0, %v1243_v17, %v1239_v16 }
0x1317   :  { %v1247_v24 = vmul.f32 0.0, %v1244_v19 }
0x134b   :  { %v969_v54 = vpop.permute.xlu2 %968 }
0x134c   :  { %v971_v56 = vmul.f32 %v969_v54, %v963_v55 }
0x134e   :  { %973 = vrot.lane.b32.xlu1 %v971_v56, %s2769_s27 }
0x136b   :  { %v1250_v18 = vpop.permute.xlu0 %1249 }
0x136c   :  { %v1252_v32 = vmul.f32 %v1250_v18, %v1244_v19 }
0x136e   :  { %1254 = vrot.lane.b32.xlu2 %v1252_v32, %s2769_s27 }
0x1376   :  { %983 = vrot.lane.b32.xlu2 %v3054_v0, %s2769_s27 }
0x13c0   :  { %v974_v20 = vpop.permute.xlu1 %973 }
0x13c1   :  { %v3206_v21 = vadd.f32 %v974_v20, %v966_v8 }
0x13c3   :  { %2528 = vtanh.f32 %v3206_v21 }
0x13c8   :  { %v1255_v61 = vpop.permute.xlu2 %1254 }
0x13c9   :  { %v2529_v35 = vpop.eup %2528  ;;  %v3209_v36 = vadd.f32 %v1255_v61, %v1247_v24 }
0x13ca   :  { %979 = vrot.lane.b32.xlu0 %v2529_v35, %s2768_s26 }
0x13cb   :  { %2530 = vtanh.f32 %v3209_v36 }
0x13d0   :  { %v984_v40 = vpop.permute.xlu2 %983 }
0x13d1   :  { %v2531_v37 = vpop.eup %2530 }
0x13d2   :  { %1260 = vrot.lane.b32.xlu1 %v2531_v37, %s2768_s26 }
0x13da   :  { %1264 = vrot.lane.b32.xlu1 %v3058_v1, %s2769_s27 }
0x143c   :  { %v980_v0 = vpop.permute.xlu0 %979 }
0x143d   :  { %v3216_v22 = vmul.f32 %v980_v0, %v963_v55 }
0x143f   :  { %987 = vrot.lane.b32.xlu0 %v3216_v22, %s2768_s26 }
0x1444   :  { %v1261_v38 = vpop.permute.xlu1 %1260 }
0x1445   :  { %v3220_v39 = vmul.f32 %v1261_v38, %v1244_v19 }
0x1447   :  { %1268 = vrot.lane.b32.xlu2 %v3220_v39, %s2768_s26 }
0x144c   :  { %v1265_v45 = vpop.permute.xlu1 %1264 }
0x14a1   :  { %v1269_v1 = vpop.permute.xlu2 %1268 }
0x14a2   :  { %v1271_v49 = vsel %vm645_vm5, %v1265_v45, %v1269_v1 }
0x14b1   :  { %v988_v41 = vpop.permute.xlu0 %987 }
0x14b2   :  { %v990_v44 = vsel %vm645_vm5, %v984_v40, %v988_v41 }
0x14b3   :  { %2376 = vmatmul.msk.f32.vlgmr.msrb.gmra.mxu1 %vm650_vm6, %v990_v44 }
0x14b4   :  { %1555 = vmatpush.msrb.mxu1 %v3128_v25 }
0x14b6   :  { %1556 = vmatpush.msrb.mxu1 %v3130_v26 }
0x14b8   :  { %1557 = vmatpush.msrb.mxu1 %v3134_v27 }
0x14ba   :  { %1558 = vmatpush.msrb.mxu1 %v3150_v29 }
0x14bb   :  { %2384 = vmatmul.msk.f32.vlgmr.msra.gmra.mxu1 %vm650_vm6, %v1271_v49 }
0x14bc   :  { %1559 = vmatpush.msrb.mxu1 %v3154_v30 }
0x14be   :  { %1560 = vmatpush.msrb.mxu1 %v3156_v31 }
0x14c0   :  { %1561 = vmatpush.msrb.mxu1 %v3162_v33 }
0x14c2   :  { %1562 = vmatpush.msrb.mxu1 %v3168_v34 }
0x1530   :  { %v1011_v48 = vpop.f32.mrf.mxu1 }
0x1531   :  { %v1012_v63 = vadd.f32 %v2995_v3, %v1011_v48 }
0x1533   :  { %2532 = vtanh.f32 %v1012_v63  ;;  %v2377_v46 = vmul.f32 -1.442695, %v1012_v63 }
0x1538   :  { %v1292_v43 = vpop.f32.mrf.mxu1 }
0x1539   :  { %v2533_v59 = vpop.eup %2532  ;;  %v1293_v23 = vadd.f32 %v3196_v42, %v1292_v43 }
0x153a   :  { %1036 = vrot.lane.b32.xlu0 %v2533_v59, %s2768_s26 }
0x153b   :  { %2534 = vtanh.f32 %v1293_v23  ;;  %v2385_v4 = vmul.f32 -1.442695, %v1293_v23 }
0x153c   :  { %2536 = vpow2.f32 %v2377_v46 }
0x153d   :  { %2538 = vpow2.f32 %v2385_v4 }
0x1541   :  { %v2535_v47 = vpop.eup %2534 }
0x1542   :  { %1317 = vrot.lane.b32.xlu1 %v2535_v47, %s2768_s26  ;;  %v2537_v53 = vpop.eup %2536 }
0x1543   :  { %v1017_v62 = vadd.f32 1.0, %v2537_v53  ;;  %v2539_v6 = vpop.eup %2538 }
0x1544   :  { %v1298_v3 = vadd.f32 1.0, %v2539_v6 }
0x1545   :  { %2540 = vrcp.f32 %v1017_v62  ;;  %v1029_v57 = vand.u32 2147483648, %v1017_v62  ;;  %vm1023_vm4 = vweird.f32 %v1017_v62  ;;  %v1027_v58 = vand.u32 2147483647, %v1017_v62 }
0x1546   :  { %2542 = vrcp.f32 %v1298_v3  ;;  %v1310_v18 = vand.u32 2147483648, %v1298_v3  ;;  %vm1304_vm8 = vweird.f32 %v1298_v3  ;;  %v1308_v19 = vand.u32 2147483647, %v1298_v3 }
0x1547   :  { %v1030_v13 = vor.u32 1.1754944e-38, %v1029_v57  ;;  %vm1028_vm2 = vcmp.eq.f32.partialorder %v1027_v58, 8.507059e+37 }
0x1548   :  { %v1311_v8 = vor.u32 1.1754944e-38, %v1310_v18  ;;  %vm1309_vm10 = vcmp.eq.f32.partialorder %v1308_v19, 8.507059e+37 }
0x154b   :  { %v2541_v7 = vpop.eup %2540 }
0x154c   :  { %v1019_v9 = vmul.f32 %v2541_v7, %v1017_v62  ;;  %v2543_v51 = vpop.eup %2542  ;;  %vm1024_vm3 = vweird.f32 %v2541_v7 }
0x154d   :  { %v1300_v54 = vmul.f32 %v2543_v51, %v1298_v3  ;;  %vm1025_vm1 = vmor %vm1023_vm4, %vm1024_vm3  ;;  %vm1305_vm7 = vweird.f32 %v2543_v51 }
0x154e   :  { %v1020_v10 = vsub.f32 1.0, %v1019_v9  ;;  %vm1306_vm9 = vmor %vm1304_vm8, %vm1305_vm7 }
0x154f   :  { %v1301_v56 = vsub.f32 1.0, %v1300_v54 }
0x1550   :  { %v1021_v52 = vmul.f32 %v2541_v7, %v1020_v10 }
0x1551   :  { %v1302_v12 = vmul.f32 %v2543_v51, %v1301_v56 }
0x1552   :  { %v1022_v55 = vadd.f32 %v2541_v7, %v1021_v52 }
0x1553   :  { %v1303_v17 = vadd.f32 %v2543_v51, %v1302_v12 }
0x1554   :  { %v1026_v11 = vsel %vm1025_vm1, %v2541_v7, %v1022_v55 }
0x1555   :  { %v1031_v15 = vsel %vm1028_vm2, %v1030_v13, %v1026_v11  ;;  %v1307_v32 = vsel %vm1306_vm9, %v2543_v51, %v1303_v17 }
0x1556   :  { %v1312_v24 = vsel %vm1309_vm10, %v1311_v8, %v1307_v32  ;;  %v1034_v35 = vmul.f32 %v1031_v15, %v3206_v21 }
0x1557   :  { %v1315_v40 = vmul.f32 %v1312_v24, %v3209_v36 }
0x15ac   :  { %v1037_v14 = vpop.permute.xlu0 %1036 }
0x15ad   :  { %v1039_v16 = vmul.f32 %v1037_v14, %v1031_v15 }
0x15af   :  { %1041 = vrot.lane.b32.xlu2 %v1039_v16, %s2769_s27 }
0x15b4   :  { %v1318_v20 = vpop.permute.xlu1 %1317 }
0x15b5   :  { %v1320_v61 = vmul.f32 %v1318_v20, %v1312_v24 }
0x15b7   :  { %1322 = vrot.lane.b32.xlu0 %v1320_v61, %s2769_s27 }
0x15bf   :  { %1051 = vrot.lane.b32.xlu0 %v3092_v2, %s2769_s27  ;;  %v2684_v2 = vld [vmem:[%s3594_s2] ss:$0 sm:$0xff] }
0x15c0   :  { %v594_v21 = vadd.f32 %v2684_v2, %v3115_v50 }
0x1609   :  { %v1042_v37 = vpop.permute.xlu2 %1041 }
0x160a   :  { %v3245_v0 = vadd.f32 %v1042_v37, %v1034_v35 }
0x160c   :  { %2544 = vtanh.f32 %v3245_v0 }
0x1612   :  { %v2545_v38 = vpop.eup %2544 }
0x1613   :  { %1047 = vrot.lane.b32.xlu1 %v2545_v38, %s2768_s26 }
0x1629   :  { %v1323_v41 = vpop.permute.xlu0 %1322 }
0x162a   :  { %v3250_v44 = vadd.f32 %v1323_v41, %v1315_v40 }
0x162c   :  { %2546 = vtanh.f32 %v3250_v44 }
0x162d   :  { %2548 = vtanh.f32 %v594_v21 }
0x1631   :  { %v1052_v4 = vpop.permute.xlu0 %1051 }
0x1632   :  { %v2547_v1 = vpop.eup %2546 }
0x1633   :  { %1328 = vrot.lane.b32.xlu2 %v2547_v1, %s2768_s26  ;;  %v2549_v63 = vpop.eup %2548 }
0x163b   :  { %1332 = vrot.lane.b32.xlu2 %v3096_v5, %s2769_s27  ;;  %v2365_v5 = vmul.f32 -1.442695, %v594_v21 }
0x163d   :  { %2550 = vpow2.f32 %v2365_v5 }
0x1643   :  { %v2551_v43 = vpop.eup %2550 }
0x1644   :  { %v599_v50 = vadd.f32 1.0, %v2551_v43 }
0x1646   :  { %2552 = vrcp.f32 %v599_v50  ;;  %v611_v3 = vand.u32 2147483648, %v599_v50  ;;  %vm605_vm12 = vweird.f32 %v599_v50  ;;  %v609_v7 = vand.u32 2147483647, %v599_v50 }
0x1648   :  { %v612_v10 = vor.u32 1.1754944e-38, %v611_v3  ;;  %vm610_vm14 = vcmp.eq.f32.partialorder %v609_v7, 8.507059e+37 }
0x164c   :  { %v2553_v59 = vpop.eup %2552 }
0x164d   :  { %v601_v23 = vmul.f32 %v2553_v59, %v599_v50  ;;  %vm606_vm11 = vweird.f32 %v2553_v59 }
0x164e   :  { %vm607_vm13 = vmor %vm605_vm12, %vm606_vm11 }
0x164f   :  { %v602_v47 = vsub.f32 1.0, %v601_v23 }
0x1651   :  { %v603_v46 = vmul.f32 %v2553_v59, %v602_v47 }
0x1653   :  { %v604_v6 = vadd.f32 %v2553_v59, %v603_v46 }
0x1655   :  { %v608_v9 = vsel %vm607_vm13, %v2553_v59, %v604_v6 }
0x1656   :  { %v613_v52 = vsel %vm610_vm14, %v612_v10, %v608_v9 }
0x1657   :  { %v616_v58 = vmul.f32 %v613_v52, %v3084_v60 }
0x1685   :  { %v1048_v45 = vpop.permute.xlu1 %1047 }
0x1686   :  { %v3260_v49 = vmul.f32 %v1048_v45, %v1031_v15  ;;  %v3286_v15 = vld [vmem:[%s3596_s4] ss:$0 sm:$0xff] }
0x1688   :  { %1055 = vrot.lane.b32.xlu1 %v3260_v49, %s2768_s26 }
0x168d   :  { %v1329_v36 = vpop.permute.xlu2 %1328 }
0x168e   :  { %v3264_v48 = vmul.f32 %v1329_v36, %v1312_v24 }
0x1690   :  { %618 = vrot.lane.b32.xlu1 %v2549_v63, %s2768_s26  ;;  %1336 = vrot.lane.b32.xlu0 %v3264_v48, %s2768_s26 }
0x1695   :  { %v1333_v51 = vpop.permute.xlu2 %1332 }
0x16fa   :  { %v1056_v53 = vpop.permute.xlu1 %1055 }
0x16fb   :  { %v1058_v62 = vsel %vm645_vm5, %v1052_v4, %v1056_v53 }
0x16fc   :  { %2378 = vmatmul.msk.f32.vlgmr.msrb.gmra.mxu2 %vm650_vm6, %v1058_v62 }
0x16fd   :  { %1623 = vmatpush.msrb.mxu2 %v3128_v25 }
0x16ff   :  { %1624 = vmatpush.msrb.mxu2 %v3130_v26 }
0x1701   :  { %1625 = vmatpush.msrb.mxu2 %v3134_v27 }
0x1702   :  { %v619_v54 = vpop.permute.xlu1 %618  ;;  %v1337_v55 = vpop.permute.xlu0 %1336 }
0x1703   :  { %v621_v56 = vmul.f32 %v619_v54, %v613_v52  ;;  %v1339_v57 = vsel %vm645_vm5, %v1333_v51, %v1337_v55  ;;  %1626 = vmatpush.msrb.mxu2 %v3150_v29 }
0x1704   :  { %2386 = vmatmul.msk.f32.vlgmr.msra.gmra.mxu2 %vm650_vm6, %v1339_v57 }
0x1705   :  { %623 = vrot.lane.b32.xlu1 %v621_v56, %s2769_s27  ;;  %1627 = vmatpush.msrb.mxu2 %v3154_v30 }
0x1707   :  { %1628 = vmatpush.msrb.mxu2 %v3156_v31 }
0x1709   :  { %1629 = vmatpush.msrb.mxu2 %v3162_v33 }
0x170b   :  { %1630 = vmatpush.msrb.mxu2 %v3168_v34 }
0x1777   :  { %v624_v11 = vpop.permute.xlu1 %623 }
0x1778   :  { %v626_v12 = vadd.f32 %v624_v11, %v616_v58 }
0x177a   :  { %2554 = vtanh.f32 %v626_v12 }
0x177f   :  { %v1079_v13 = vpop.f32.mrf.mxu2 }
0x1780   :  { %v2555_v14 = vpop.eup %2554  ;;  %v1080_v16 = vadd.f32 %v3286_v15, %v1079_v13 }
0x1781   :  { %629 = vrot.lane.b32.xlu1 %v2555_v14, %s2768_s26 }
0x1782   :  { %2556 = vtanh.f32 %v1080_v16  ;;  %v2379_v32 = vmul.f32 -1.442695, %v1080_v16 }
0x1787   :  { %v1360_v17 = vpop.f32.mrf.mxu2 }
0x1788   :  { %v2557_v18 = vpop.eup %2556  ;;  %v1361_v19 = vadd.f32 %v3196_v42, %v1360_v17 }
0x1789   :  { %1104 = vrot.lane.b32.xlu2 %v2557_v18, %s2768_s26 }
0x178a   :  { %2558 = vtanh.f32 %v1361_v19  ;;  %v2387_v37 = vmul.f32 -1.442695, %v1361_v19 }
0x178b   :  { %2560 = vpow2.f32 %v2379_v32 }
0x1790   :  { %v2559_v60 = vpop.eup %2558 }
0x1791   :  { %1385 = vrot.lane.b32.xlu0 %v2559_v60, %s2768_s26  ;;  %v2561_v8 = vpop.eup %2560 }
0x1792   :  { %v1085_v20 = vadd.f32 1.0, %v2561_v8 }
0x1794   :  { %2562 = vrcp.f32 %v1085_v20  ;;  %v1097_v41 = vand.u32 2147483648, %v1085_v20  ;;  %vm1091_vm0 = vweird.f32 %v1085_v20  ;;  %v1095_v1 = vand.u32 2147483647, %v1085_v20 }
0x1795   :  { %2564 = vpow2.f32 %v2387_v37 }
0x1796   :  { %v1098_v45 = vor.u32 1.1754944e-38, %v1097_v41  ;;  %vm1096_vm4 = vcmp.eq.f32.partialorder %v1095_v1, 8.507059e+37 }
0x179a   :  { %v2563_v24 = vpop.eup %2562 }
0x179b   :  { %v1087_v61 = vmul.f32 %v2563_v24, %v1085_v20  ;;  %vm1092_vm15 = vweird.f32 %v2563_v24  ;;  %v2565_v2 = vpop.eup %2564 }
0x179c   :  { %vm1093_vm3 = vmor %vm1091_vm0, %vm1092_vm15  ;;  %v1366_v36 = vadd.f32 1.0, %v2565_v2 }
0x179d   :  { %v1088_v35 = vsub.f32 1.0, %v1087_v61 }
0x179e   :  { %2566 = vrcp.f32 %v1366_v36  ;;  %v1378_v62 = vand.u32 2147483648, %v1366_v36  ;;  %vm1372_vm2 = vweird.f32 %v1366_v36  ;;  %v1376_v6 = vand.u32 2147483647, %v1366_v36 }
0x179f   :  { %v1089_v38 = vmul.f32 %v2563_v24, %v1088_v35 }
0x17a0   :  { %v1379_v7 = vor.u32 1.1754944e-38, %v1378_v62  ;;  %vm1377_vm8 = vcmp.eq.f32.partialorder %v1376_v6, 8.507059e+37 }
0x17a1   :  { %v1090_v40 = vadd.f32 %v2563_v24, %v1089_v38 }
0x17a3   :  { %v1094_v21 = vsel %vm1093_vm3, %v2563_v24, %v1090_v40 }
0x17a4   :  { %v1099_v63 = vsel %vm1096_vm4, %v1098_v45, %v1094_v21  ;;  %v2567_v50 = vpop.eup %2566 }
0x17a5   :  { %v1368_v59 = vmul.f32 %v2567_v50, %v1366_v36  ;;  %vm1373_vm1 = vweird.f32 %v2567_v50  ;;  %v3338_v36 = vld [vmem:[#allocation7 + $0x38] sm:$0xff] }
0x17a6   :  { %vm1374_vm7 = vmor %vm1372_vm2, %vm1373_vm1  ;;  %1768 = vmatpush.msra.mxu0 %v3338_v36  ;;  %1836 = vmatpush.msra.mxu1 %v3338_v36 }
0x17a7   :  { %v1369_v46 = vsub.f32 1.0, %v1368_v59  ;;  %1904 = vmatpush.msra.mxu2 %v3338_v36  ;;  %v3364_v59 = vld [vmem:[#allocation7 + $0x18] sm:$0xff] }
0x17a9   :  { %v1370_v4 = vmul.f32 %v2567_v50, %v1369_v46  ;;  %v3378_v46 = vld [vmem:[#allocation7] sm:$0xff] }
0x17ab   :  { %v1371_v53 = vadd.f32 %v2567_v50, %v1370_v4 }
0x17ad   :  { %v1375_v3 = vsel %vm1374_vm7, %v2567_v50, %v1371_v53  ;;  %v3360_v50 = vld [vmem:[#allocation7 + $0x20] sm:$0xff] }
0x17ae   :  { %v1380_v10 = vsel %vm1377_vm8, %v1379_v7, %v1375_v3 }
0x17af   :  { %v1383_v57 = vmul.f32 %v1380_v10, %v3250_v44 }
0x17e3   :  { %v1105_v5 = vpop.permute.xlu2 %1104 }
0x17e4   :  { %v1107_v43 = vmul.f32 %v1105_v5, %v1099_v63  ;;  %v3344_v5 = vld [vmem:[#allocation7 + $0x28] sm:$0xff] }
0x17e6   :  { %1109 = vrot.lane.b32.xlu2 %v1107_v43, %s2769_s27 }
0x17f3   :  { %v630_v23 = vpop.permute.xlu1 %629 }
0x17f4   :  { %v632_v47 = vmul.f32 %v630_v23, %v613_v52  ;;  %v1102_v52 = vmul.f32 %v1099_v63, %v3245_v0  ;;  %v3366_v23 = vld [vmem:[#allocation7 + $0x10] sm:$0xff] }
0x17f6   :  { %1120 = vrot.lane.b32.xlu1 %v632_v47, %s2769_s27  ;;  %v3372_v47 = vld [vmem:[#allocation7 + $0x8] sm:$0xff] }
0x1803   :  { %v1386_v9 = vpop.permute.xlu0 %1385 }
0x1804   :  { %v1388_v51 = vmul.f32 %v1386_v9, %v1380_v10 }
0x1806   :  { %1390 = vrot.lane.b32.xlu0 %v1388_v51, %s2769_s27 }
0x1840   :  { %v1110_v54 = vpop.permute.xlu2 %1109 }
0x1841   :  { %v3297_v55 = vadd.f32 %v1110_v54, %v1102_v52 }
0x1843   :  { %2568 = vtanh.f32 %v3297_v55 }
0x1849   :  { %v2569_v56 = vpop.eup %2568 }
0x184a   :  { %1115 = vrot.lane.b32.xlu2 %v2569_v56, %s2768_s26 }
0x1868   :  { %v1121_v44 = vpop.permute.xlu1 %1120 }
0x1878   :  { %v1391_v58 = vpop.permute.xlu0 %1390 }
0x1879   :  { %v1393_v11 = vadd.f32 %v1391_v58, %v1383_v57 }
0x187b   :  { %2570 = vtanh.f32 %v1393_v11 }
0x1881   :  { %v2571_v12 = vpop.eup %2570 }
0x1882   :  { %1396 = vrot.lane.b32.xlu0 %v2571_v12, %s2768_s26 }
0x188a   :  { %1400 = vrot.lane.b32.xlu0 %v3146_v28, %s2769_s27 }
0x18a4   :  { %v1116_v0 = vpop.permute.xlu2 %1115 }
0x18a5   :  { %v3305_v13 = vmul.f32 %v1116_v0, %v1099_v63  ;;  %v3340_v63 = vld [vmem:[#allocation7 + $0x30] sm:$0xff] }
0x18a6   :  { %1769 = vmatpush.msra.mxu0 %v3340_v63  ;;  %1837 = vmatpush.msra.mxu1 %v3340_v63 }
0x18a7   :  { %1124 = vrot.lane.b32.xlu2 %v3305_v13, %s2768_s26  ;;  %1905 = vmatpush.msra.mxu2 %v3340_v63 }
0x18a8   :  { %1770 = vmatpush.msra.mxu0 %v3344_v5  ;;  %1838 = vmatpush.msra.mxu1 %v3344_v5 }
0x18a9   :  { %1906 = vmatpush.msra.mxu2 %v3344_v5 }
0x18aa   :  { %1771 = vmatpush.msra.mxu0 %v3360_v50  ;;  %1839 = vmatpush.msra.mxu1 %v3360_v50 }
0x18ab   :  { %1907 = vmatpush.msra.mxu2 %v3360_v50 }
0x18ac   :  { %1772 = vmatpush.msra.mxu0 %v3364_v59  ;;  %1840 = vmatpush.msra.mxu1 %v3364_v59 }
0x18ad   :  { %1908 = vmatpush.msra.mxu2 %v3364_v59 }
0x18ae   :  { %1773 = vmatpush.msra.mxu0 %v3366_v23  ;;  %1841 = vmatpush.msra.mxu1 %v3366_v23 }
0x18af   :  { %1909 = vmatpush.msra.mxu2 %v3366_v23 }
0x18b0   :  { %1774 = vmatpush.msra.mxu0 %v3372_v47  ;;  %1842 = vmatpush.msra.mxu1 %v3372_v47 }
0x18b1   :  { %1910 = vmatpush.msra.mxu2 %v3372_v47 }
0x18b2   :  { %1775 = vmatpush.msra.mxu0 %v3378_v46  ;;  %1843 = vmatpush.msra.mxu1 %v3378_v46 }
0x18b3   :  { %1911 = vmatpush.msra.mxu2 %v3378_v46 }
0x18f4   :  { %v1397_v14 = vpop.permute.xlu0 %1396 }
0x18f5   :  { %v3309_v16 = vmul.f32 %v1397_v14, %v1380_v10  ;;  %v3406_v10 = vld [vmem:[%s3600_s8] ss:$0 sm:$0xff] }
0x18f7   :  { %1404 = vrot.lane.b32.xlu1 %v3309_v16, %s2768_s26 }
0x18fc   :  { %v1401_v28 = vpop.permute.xlu0 %1400 }
0x1901   :  { %v1125_v17 = vpop.permute.xlu2 %1124 }
0x1902   :  { %v1127_v18 = vsel %vm645_vm5, %v1121_v44, %v1125_v17 }
0x1903   :  { %2380 = vmatmul.msk.f32.vlgmr.msrb.gmra.mxu3 %vm650_vm6, %v1127_v18 }
0x1904   :  { %1692 = vmatpush.msrb.mxu3 %v3128_v25 }
0x1906   :  { %1693 = vmatpush.msrb.mxu3 %v3130_v26 }
0x1908   :  { %1694 = vmatpush.msrb.mxu3 %v3134_v27 }
0x190a   :  { %1695 = vmatpush.msrb.mxu3 %v3150_v29 }
0x190c   :  { %1696 = vmatpush.msrb.mxu3 %v3154_v30 }
0x190e   :  { %1697 = vmatpush.msrb.mxu3 %v3156_v31 }
0x1910   :  { %1698 = vmatpush.msrb.mxu3 %v3162_v33 }
0x1912   :  { %1699 = vmatpush.msrb.mxu3 %v3168_v34 }
0x1969   :  { %v1405_v19 = vpop.permute.xlu1 %1404 }
0x196a   :  { %v1407_v60 = vsel %vm645_vm5, %v1401_v28, %v1405_v19 }
0x196b   :  { %2388 = vmatmul.msk.f32.vlgmr.msra.gmra.mxu3 %vm650_vm6, %v1407_v60 }
0x196c   :  { %1972 = vmatpush.msra.mxu3 %v3338_v36 }
0x196e   :  { %1973 = vmatpush.msra.mxu3 %v3340_v63 }
0x1970   :  { %1974 = vmatpush.msra.mxu3 %v3344_v5 }
0x1972   :  { %1975 = vmatpush.msra.mxu3 %v3360_v50 }
0x1974   :  { %1976 = vmatpush.msra.mxu3 %v3364_v59 }
0x1976   :  { %1977 = vmatpush.msra.mxu3 %v3366_v23 }
0x1978   :  { %1978 = vmatpush.msra.mxu3 %v3372_v47 }
0x197a   :  { %1979 = vmatpush.msra.mxu3 %v3378_v46 }
0x1986   :  { %v3325_v25 = vpop.f32.mrf.mxu3 }
0x19ee   :  { %v1428_v26 = vpop.f32.mrf.mxu3 }
0x19ef   :  { %v1429_v27 = vadd.f32 %v3196_v42, %v1428_v26 }
0x19f1   :  { %2572 = vtanh.f32 %v1429_v27  ;;  %v2389_v30 = vmul.f32 -1.442695, %v1429_v27 }
0x19f3   :  { %2574 = vpow2.f32 %v2389_v30 }
0x19f7   :  { %v2573_v29 = vpop.eup %2572 }
0x19f8   :  { %1453 = vrot.lane.b32.xlu2 %v2573_v29, %s2768_s26 }
0x19f9   :  { %v2575_v31 = vpop.eup %2574 }
0x19fa   :  { %v1434_v33 = vadd.f32 1.0, %v2575_v31 }
0x19fc   :  { %2576 = vrcp.f32 %v1434_v33  ;;  %v1446_v61 = vand.u32 2147483648, %v1434_v33  ;;  %vm1440_vm10 = vweird.f32 %v1434_v33  ;;  %v1444_v35 = vand.u32 2147483647, %v1434_v33 }
0x19fe   :  { %v1447_v38 = vor.u32 1.1754944e-38, %v1446_v61  ;;  %vm1445_vm12 = vcmp.eq.f32.partialorder %v1444_v35, 8.507059e+37 }
0x1a00   :  { %1468 = vrot.lane.b32.xlu2 %v3216_v22, %s2769_s27 }
0x1a02   :  { %v2577_v34 = vpop.eup %2576 }
0x1a03   :  { %v1436_v32 = vmul.f32 %v2577_v34, %v1434_v33  ;;  %vm1441_vm9 = vweird.f32 %v2577_v34 }
0x1a04   :  { %vm1442_vm11 = vmor %vm1440_vm10, %vm1441_vm9 }
0x1a05   :  { %v1437_v8 = vsub.f32 1.0, %v1436_v32 }
0x1a07   :  { %v1438_v20 = vmul.f32 %v2577_v34, %v1437_v8 }
0x1a09   :  { %v1439_v24 = vadd.f32 %v2577_v34, %v1438_v20 }
0x1a0b   :  { %v1443_v37 = vsel %vm1442_vm11, %v2577_v34, %v1439_v24 }
0x1a0c   :  { %v1448_v22 = vsel %vm1445_vm12, %v1447_v38, %v1443_v37 }
0x1a0d   :  { %v1451_v1 = vmul.f32 %v1448_v22, %v1393_v11 }
0x1a52   :  { %v1454_v40 = vpop.permute.xlu2 %1453 }
0x1a53   :  { %v1456_v41 = vmul.f32 %v1454_v40, %v1448_v22 }
0x1a55   :  { %1458 = vrot.lane.b32.xlu0 %v1456_v41, %s2769_s27 }
0x1a5a   :  { %v1469_v4 = vpop.permute.xlu2 %1468 }
0x1ac7   :  { %v1459_v2 = vpop.permute.xlu0 %1458 }
0x1ac8   :  { %v3332_v21 = vadd.f32 %v1459_v2, %v1451_v1 }
0x1aca   :  { %2578 = vtanh.f32 %v3332_v21 }
0x1ad0   :  { %v2579_v45 = vpop.eup %2578 }
0x1ad1   :  { %1464 = vrot.lane.b32.xlu1 %v2579_v45, %s2768_s26 }
0x1ad9   :  { %1750 = vrot.lane.b32.xlu1 %v3220_v39, %s2769_s27 }
0x1b43   :  { %v1465_v39 = vpop.permute.xlu1 %1464 }
0x1b44   :  { %v3356_v43 = vmul.f32 %v1465_v39, %v1448_v22 }
0x1b46   :  { %1472 = vrot.lane.b32.xlu0 %v3356_v43, %s2768_s26 }
0x1b4b   :  { %v1751_v6 = vpop.permute.xlu1 %1750 }
0x1b4c   :  { %v1753_v3 = vsel %vm645_vm5, %v1751_v6, 0.0 }
0x1bb8   :  { %v1473_v53 = vpop.permute.xlu0 %1472 }
0x1bb9   :  { %v1475_v62 = vsel %vm645_vm5, %v1469_v4, %v1473_v53 }
0x1bba   :  { %2390 = vmatmul.msk.f32.vlgmr.msrb.gmra.mxu0 %vm650_vm6, %v1475_v62 }
0x1bbb   :  { %2040 = vmatpush.msrb.mxu0 %v3338_v36 }
0x1bbd   :  { %2041 = vmatpush.msrb.mxu0 %v3340_v63 }
0x1bbf   :  { %2042 = vmatpush.msrb.mxu0 %v3344_v5 }
0x1bc1   :  { %2043 = vmatpush.msrb.mxu0 %v3360_v50 }
0x1bc2   :  { %2398 = vmatmul.msk.f32.vlgmr.msra.gmra.mxu0 %vm650_vm6, %v1753_v3 }
0x1bc3   :  { %2044 = vmatpush.msrb.mxu0 %v3364_v59 }
0x1bc5   :  { %2045 = vmatpush.msrb.mxu0 %v3366_v23 }
0x1bc7   :  { %2046 = vmatpush.msrb.mxu0 %v3372_v47 }
0x1bc9   :  { %2047 = vmatpush.msrb.mxu0 %v3378_v46 }
0x1c37   :  { %v1496_v7 = vpop.f32.mrf.mxu0 }
0x1c38   :  { %v1497_v9 = vadd.f32 %v3196_v42, %v1496_v7 }
0x1c3a   :  { %2580 = vtanh.f32 %v1497_v9  ;;  %v2391_v57 = vmul.f32 -1.442695, %v1497_v9 }
0x1c3f   :  { %v1777_v51 = vpop.f32.mrf.mxu0 }
0x1c40   :  { %v2581_v52 = vpop.eup %2580  ;;  %v1778_v54 = vadd.f32 %v3406_v10, %v1777_v51 }
0x1c41   :  { %1521 = vrot.lane.b32.xlu2 %v2581_v52, %s2768_s26 }
0x1c42   :  { %2582 = vtanh.f32 %v1778_v54  ;;  %v2399_v44 = vmul.f32 -1.442695, %v1778_v54 }
0x1c43   :  { %2584 = vpow2.f32 %v2391_v57 }
0x1c48   :  { %v2583_v56 = vpop.eup %2582 }
0x1c49   :  { %1802 = vrot.lane.b32.xlu0 %v2583_v56, %s2768_s26  ;;  %v2585_v58 = vpop.eup %2584 }
0x1c4a   :  { %v1502_v11 = vadd.f32 1.0, %v2585_v58 }
0x1c4c   :  { %2586 = vrcp.f32 %v1502_v11  ;;  %v1514_v28 = vand.u32 2147483648, %v1502_v11  ;;  %vm1508_vm14 = vweird.f32 %v1502_v11  ;;  %v1512_v19 = vand.u32 2147483647, %v1502_v11 }
0x1c4d   :  { %2588 = vpow2.f32 %v2399_v44 }
0x1c4e   :  { %v1515_v27 = vor.u32 1.1754944e-38, %v1514_v28  ;;  %vm1513_vm0 = vcmp.eq.f32.partialorder %v1512_v19, 8.507059e+37 }
0x1c52   :  { %v2587_v12 = vpop.eup %2586 }
0x1c53   :  { %v1504_v0 = vmul.f32 %v2587_v12, %v1502_v11  ;;  %vm1509_vm13 = vweird.f32 %v2587_v12  ;;  %v2589_v60 = vpop.eup %2588 }
0x1c54   :  { %vm1510_vm15 = vmor %vm1508_vm14, %vm1509_vm13  ;;  %v1783_v29 = vadd.f32 1.0, %v2589_v60 }
0x1c55   :  { %v1505_v14 = vsub.f32 1.0, %v1504_v0 }
0x1c56   :  { %2590 = vrcp.f32 %v1783_v29  ;;  %v1795_v61 = vand.u32 2147483648, %v1783_v29  ;;  %vm1789_vm4 = vweird.f32 %v1783_v29  ;;  %v1793_v35 = vand.u32 2147483647, %v1783_v29 }
0x1c57   :  { %v1506_v17 = vmul.f32 %v2587_v12, %v1505_v14 }
0x1c58   :  { %v1796_v38 = vor.u32 1.1754944e-38, %v1795_v61  ;;  %vm1794_vm2 = vcmp.eq.f32.partialorder %v1793_v35, 8.507059e+37 }
0x1c59   :  { %v1507_v18 = vadd.f32 %v2587_v12, %v1506_v17 }
0x1c5b   :  { %v1511_v26 = vsel %vm1510_vm15, %v2587_v12, %v1507_v18 }
0x1c5c   :  { %v1516_v31 = vsel %vm1513_vm0, %v1515_v27, %v1511_v26  ;;  %v2591_v34 = vpop.eup %2590 }
0x1c5d   :  { %v1785_v32 = vmul.f32 %v2591_v34, %v1783_v29  ;;  %vm1790_vm3 = vweird.f32 %v2591_v34  ;;  %v1519_v1 = vmul.f32 %v1516_v31, %v3332_v21 }
0x1c5e   :  { %vm1791_vm1 = vmor %vm1789_vm4, %vm1790_vm3 }
0x1c5f   :  { %v1786_v8 = vsub.f32 1.0, %v1785_v32 }
0x1c61   :  { %v1787_v20 = vmul.f32 %v2591_v34, %v1786_v8 }
0x1c63   :  { %v1788_v24 = vadd.f32 %v2591_v34, %v1787_v20 }
0x1c65   :  { %v1792_v37 = vsel %vm1791_vm1, %v2591_v34, %v1788_v24 }
0x1c66   :  { %v1797_v22 = vsel %vm1794_vm2, %v1796_v38, %v1792_v37 }
0x1c67   :  { %v1800_v39 = vmul.f32 0.0, %v1797_v22 }
0x1c9b   :  { %v1522_v30 = vpop.permute.xlu2 %1521 }
0x1c9c   :  { %v1524_v33 = vmul.f32 %v1522_v30, %v1516_v31 }
0x1c9e   :  { %1526 = vrot.lane.b32.xlu1 %v1524_v33, %s2769_s27 }
0x1cbb   :  { %v1803_v40 = vpop.permute.xlu0 %1802 }
0x1cbc   :  { %v1805_v41 = vmul.f32 %v1803_v40, %v1797_v22 }
0x1cbe   :  { %1807 = vrot.lane.b32.xlu2 %v1805_v41, %s2769_s27 }
0x1cc6   :  { %1536 = vrot.lane.b32.xlu2 %v3260_v49, %s2769_s27 }
0x1d10   :  { %v1527_v2 = vpop.permute.xlu1 %1526 }
0x1d11   :  { %v3416_v45 = vadd.f32 %v1527_v2, %v1519_v1 }
0x1d13   :  { %2592 = vtanh.f32 %v3416_v45 }
0x1d18   :  { %v1808_v4 = vpop.permute.xlu2 %1807 }
0x1d19   :  { %v2593_v53 = vpop.eup %2592  ;;  %v3419_v62 = vadd.f32 %v1808_v4, %v1800_v39 }
0x1d1a   :  { %1532 = vrot.lane.b32.xlu0 %v2593_v53, %s2768_s26 }
0x1d1b   :  { %2594 = vtanh.f32 %v3419_v62 }
0x1d20   :  { %v1537_v9 = vpop.permute.xlu2 %1536 }
0x1d21   :  { %v2595_v6 = vpop.eup %2594 }
0x1d22   :  { %1813 = vrot.lane.b32.xlu1 %v2595_v6, %s2768_s26 }
0x1d2a   :  { %1817 = vrot.lane.b32.xlu1 %v3264_v48, %s2769_s27 }
0x1d8c   :  { %v1533_v49 = vpop.permute.xlu0 %1532 }
0x1d8d   :  { %v3426_v21 = vmul.f32 %v1533_v49, %v1516_v31 }
0x1d8f   :  { %1540 = vrot.lane.b32.xlu0 %v3426_v21, %s2768_s26 }
0x1d94   :  { %v1814_v3 = vpop.permute.xlu1 %1813 }
0x1d95   :  { %v1816_v7 = vmul.f32 %v1814_v3, %v1797_v22 }
0x1d97   :  { %1821 = vrot.lane.b32.xlu2 %v1816_v7, %s2768_s26 }
0x1d9c   :  { %v1818_v54 = vpop.permute.xlu1 %1817 }
0x1df1   :  { %v1822_v48 = vpop.permute.xlu2 %1821 }
0x1df2   :  { %v1824_v56 = vsel %vm645_vm5, %v1818_v54, %v1822_v48 }
0x1e01   :  { %v1541_v51 = vpop.permute.xlu0 %1540 }
0x1e02   :  { %v1543_v52 = vsel %vm645_vm5, %v1537_v9, %v1541_v51 }
0x1e03   :  { %2392 = vmatmul.msk.f32.vlgmr.msrb.gmra.mxu1 %vm650_vm6, %v1543_v52 }
0x1e04   :  { %2108 = vmatpush.msrb.mxu1 %v3338_v36 }
0x1e06   :  { %2109 = vmatpush.msrb.mxu1 %v3340_v63 }
0x1e08   :  { %2110 = vmatpush.msrb.mxu1 %v3344_v5 }
0x1e0a   :  { %2111 = vmatpush.msrb.mxu1 %v3360_v50 }
0x1e0b   :  { %2400 = vmatmul.msk.f32.vlgmr.msra.gmra.mxu1 %vm650_vm6, %v1824_v56 }
0x1e0c   :  { %2112 = vmatpush.msrb.mxu1 %v3364_v59 }
0x1e0e   :  { %2113 = vmatpush.msrb.mxu1 %v3366_v23 }
0x1e10   :  { %2114 = vmatpush.msrb.mxu1 %v3372_v47 }
0x1e12   :  { %2115 = vmatpush.msrb.mxu1 %v3378_v46 }
0x1e80   :  { %v1564_v57 = vpop.f32.mrf.mxu1 }
0x1e81   :  { %v1565_v58 = vadd.f32 %v3196_v42, %v1564_v57 }
0x1e83   :  { %2596 = vtanh.f32 %v1565_v58  ;;  %v2393_v44 = vmul.f32 -1.442695, %v1565_v58 }
0x1e88   :  { %v1845_v11 = vpop.f32.mrf.mxu1 }
0x1e89   :  { %v2597_v12 = vpop.eup %2596  ;;  %v1846_v0 = vadd.f32 %v3406_v10, %v1845_v11 }
0x1e8a   :  { %1589 = vrot.lane.b32.xlu0 %v2597_v12, %s2768_s26 }
0x1e8b   :  { %2598 = vtanh.f32 %v1846_v0  ;;  %v2401_v17 = vmul.f32 -1.442695, %v1846_v0 }
0x1e8c   :  { %2600 = vpow2.f32 %v2393_v44 }
0x1e8d   :  { %2602 = vpow2.f32 %v2401_v17 }
0x1e91   :  { %v2599_v14 = vpop.eup %2598 }
0x1e92   :  { %1870 = vrot.lane.b32.xlu1 %v2599_v14, %s2768_s26  ;;  %v2601_v18 = vpop.eup %2600 }
0x1e93   :  { %v1570_v28 = vadd.f32 1.0, %v2601_v18  ;;  %v2603_v19 = vpop.eup %2602 }
0x1e94   :  { %v1851_v42 = vadd.f32 1.0, %v2603_v19 }
0x1e95   :  { %2604 = vrcp.f32 %v1570_v28  ;;  %v1582_v32 = vand.u32 2147483648, %v1570_v28  ;;  %vm1576_vm8 = vweird.f32 %v1570_v28  ;;  %v1580_v8 = vand.u32 2147483647, %v1570_v28 }
0x1e96   :  { %2606 = vrcp.f32 %v1851_v42  ;;  %v1863_v22 = vand.u32 2147483648, %v1851_v42  ;;  %vm1857_vm12 = vweird.f32 %v1851_v42  ;;  %v1861_v41 = vand.u32 2147483647, %v1851_v42 }
0x1e97   :  { %v1583_v61 = vor.u32 1.1754944e-38, %v1582_v32  ;;  %vm1581_vm10 = vcmp.eq.f32.partialorder %v1580_v8, 8.507059e+37 }
0x1e98   :  { %v1864_v2 = vor.u32 1.1754944e-38, %v1863_v22  ;;  %vm1862_vm14 = vcmp.eq.f32.partialorder %v1861_v41, 8.507059e+37 }
0x1e9b   :  { %v2605_v60 = vpop.eup %2604 }
0x1e9c   :  { %v1572_v26 = vmul.f32 %v2605_v60, %v1570_v28  ;;  %v2607_v29 = vpop.eup %2606  ;;  %vm1577_vm7 = vweird.f32 %v2605_v60 }
0x1e9d   :  { %v1853_v31 = vmul.f32 %v2607_v29, %v1851_v42  ;;  %vm1578_vm9 = vmor %vm1576_vm8, %vm1577_vm7  ;;  %vm1858_vm11 = vweird.f32 %v2607_v29 }
0x1e9e   :  { %v1573_v27 = vsub.f32 1.0, %v1572_v26  ;;  %vm1859_vm13 = vmor %vm1857_vm12, %vm1858_vm11 }
0x1e9f   :  { %v1854_v34 = vsub.f32 1.0, %v1853_v31 }
0x1ea0   :  { %v1574_v30 = vmul.f32 %v2605_v60, %v1573_v27 }
0x1ea1   :  { %v1855_v24 = vmul.f32 %v2607_v29, %v1854_v34 }
0x1ea2   :  { %v1575_v33 = vadd.f32 %v2605_v60, %v1574_v30 }
0x1ea3   :  { %v1856_v40 = vadd.f32 %v2607_v29, %v1855_v24 }
0x1ea4   :  { %v1579_v20 = vsel %vm1578_vm9, %v2605_v60, %v1575_v33 }
0x1ea5   :  { %v1584_v37 = vsel %vm1581_vm10, %v1583_v61, %v1579_v20  ;;  %v1860_v1 = vsel %vm1859_vm13, %v2607_v29, %v1856_v40  ;;  %v3488_v61 = vld [vmem:[%s3598_s6] ss:$0 sm:$0xff] }
0x1ea6   :  { %v1865_v4 = vsel %vm1862_vm14, %v1864_v2, %v1860_v1  ;;  %v1587_v6 = vmul.f32 %v1584_v37, %v3416_v45 }
0x1ea7   :  { %v1868_v9 = vmul.f32 %v1865_v4, %v3419_v62 }
0x1efc   :  { %v1590_v35 = vpop.permute.xlu0 %1589 }
0x1efd   :  { %v1592_v38 = vmul.f32 %v1590_v35, %v1584_v37 }
0x1eff   :  { %1594 = vrot.lane.b32.xlu2 %v1592_v38, %s2769_s27 }
0x1f04   :  { %v1871_v39 = vpop.permute.xlu1 %1870 }
0x1f05   :  { %v1873_v53 = vmul.f32 %v1871_v39, %v1865_v4 }
0x1f07   :  { %1875 = vrot.lane.b32.xlu0 %v1873_v53, %s2769_s27 }
0x1f0f   :  { %1604 = vrot.lane.b32.xlu0 %v3305_v13, %s2769_s27  ;;  %v1149_v13 = vadd.f32 %v3286_v15, %v3325_v25 }
0x1f11   :  { %v2381_v58 = vmul.f32 -1.442695, %v1149_v13 }
0x1f59   :  { %v1595_v49 = vpop.permute.xlu2 %1594 }
0x1f5a   :  { %v3452_v3 = vadd.f32 %v1595_v49, %v1587_v6 }
0x1f5c   :  { %2608 = vtanh.f32 %v3452_v3 }
0x1f62   :  { %v2609_v7 = vpop.eup %2608 }
0x1f63   :  { %1600 = vrot.lane.b32.xlu1 %v2609_v7, %s2768_s26 }
0x1f79   :  { %v1876_v51 = vpop.permute.xlu0 %1875 }
0x1f7a   :  { %v3457_v52 = vadd.f32 %v1876_v51, %v1868_v9 }
0x1f7c   :  { %2610 = vtanh.f32 %v3457_v52 }
0x1f7d   :  { %2612 = vtanh.f32 %v1149_v13 }
0x1f7e   :  { %2614 = vpow2.f32 %v2381_v58 }
0x1f81   :  { %v1605_v14 = vpop.permute.xlu0 %1604 }
0x1f82   :  { %v2611_v48 = vpop.eup %2610 }
0x1f83   :  { %1881 = vrot.lane.b32.xlu2 %v2611_v48, %s2768_s26  ;;  %v2613_v57 = vpop.eup %2612 }
0x1f8b   :  { %1885 = vrot.lane.b32.xlu2 %v3309_v16, %s2769_s27  ;;  %v2615_v16 = vpop.eup %2614 }
0x1f8c   :  { %v1154_v11 = vadd.f32 1.0, %v2615_v16 }
0x1f8e   :  { %2616 = vrcp.f32 %v1154_v11  ;;  %v1166_v28 = vand.u32 2147483648, %v1154_v11  ;;  %vm1160_vm0 = vweird.f32 %v1154_v11  ;;  %v1164_v19 = vand.u32 2147483647, %v1154_v11 }
0x1f90   :  { %v1167_v60 = vor.u32 1.1754944e-38, %v1166_v28  ;;  %vm1165_vm4 = vcmp.eq.f32.partialorder %v1164_v19, 8.507059e+37 }
0x1f94   :  { %v2617_v15 = vpop.eup %2616 }
0x1f95   :  { %v1156_v25 = vmul.f32 %v2617_v15, %v1154_v11  ;;  %vm1161_vm15 = vweird.f32 %v2617_v15 }
0x1f96   :  { %vm1162_vm3 = vmor %vm1160_vm0, %vm1161_vm15 }
0x1f97   :  { %v1157_v12 = vsub.f32 1.0, %v1156_v25 }
0x1f99   :  { %v1158_v0 = vmul.f32 %v2617_v15, %v1157_v12 }
0x1f9b   :  { %v1159_v18 = vadd.f32 %v2617_v15, %v1158_v0 }
0x1f9d   :  { %v1163_v42 = vsel %vm1162_vm3, %v2617_v15, %v1159_v18 }
0x1f9e   :  { %v1168_v30 = vsel %vm1165_vm4, %v1167_v60, %v1163_v42 }
0x1f9f   :  { %v1171_v34 = vmul.f32 %v1168_v30, %v3297_v55 }
0x1fd5   :  { %v1601_v45 = vpop.permute.xlu1 %1600 }
0x1fd6   :  { %v3465_v54 = vmul.f32 %v1601_v45, %v1584_v37 }
0x1fd8   :  { %1608 = vrot.lane.b32.xlu1 %v3465_v54, %s2768_s26 }
0x1fdd   :  { %v1882_v62 = vpop.permute.xlu2 %1881 }
0x1fde   :  { %v1884_v56 = vmul.f32 %v1882_v62, %v1865_v4 }
0x1fe0   :  { %1889 = vrot.lane.b32.xlu0 %v1884_v56, %s2768_s26  ;;  %1173 = vrot.lane.b32.xlu1 %v2613_v57, %s2768_s26 }
0x1fe5   :  { %v1886_v26 = vpop.permute.xlu2 %1885 }
0x204a   :  { %v1609_v44 = vpop.permute.xlu1 %1608 }
0x204b   :  { %v1611_v17 = vsel %vm645_vm5, %v1605_v14, %v1609_v44 }
0x204c   :  { %2394 = vmatmul.msk.f32.vlgmr.msrb.gmra.mxu2 %vm650_vm6, %v1611_v17 }
0x204d   :  { %2176 = vmatpush.msrb.mxu2 %v3338_v36 }
0x204f   :  { %2177 = vmatpush.msrb.mxu2 %v3340_v63 }
0x2051   :  { %2178 = vmatpush.msrb.mxu2 %v3344_v5 }
0x2052   :  { %v1890_v27 = vpop.permute.xlu0 %1889  ;;  %v1174_v29 = vpop.permute.xlu1 %1173 }
0x2053   :  { %v1892_v31 = vsel %vm645_vm5, %v1886_v26, %v1890_v27  ;;  %v1176_v33 = vmul.f32 %v1174_v29, %v1168_v30  ;;  %2179 = vmatpush.msrb.mxu2 %v3360_v50 }
0x2054   :  { %2402 = vmatmul.msk.f32.vlgmr.msra.gmra.mxu2 %vm650_vm6, %v1892_v31 }
0x2055   :  { %1178 = vrot.lane.b32.xlu1 %v1176_v33, %s2769_s27  ;;  %2180 = vmatpush.msrb.mxu2 %v3364_v59 }
0x2057   :  { %2181 = vmatpush.msrb.mxu2 %v3366_v23 }
0x2059   :  { %2182 = vmatpush.msrb.mxu2 %v3372_v47 }
0x205b   :  { %2183 = vmatpush.msrb.mxu2 %v3378_v46 }
0x20c7   :  { %v1179_v32 = vpop.permute.xlu1 %1178 }
0x20c8   :  { %v1181_v8 = vadd.f32 %v1179_v32, %v1171_v34 }
0x20ca   :  { %2618 = vtanh.f32 %v1181_v8 }
0x20cf   :  { %v1632_v20 = vpop.f32.mrf.mxu2 }
0x20d0   :  { %v2619_v24 = vpop.eup %2618  ;;  %v1633_v35 = vadd.f32 %v3488_v61, %v1632_v20 }
0x20d1   :  { %1184 = vrot.lane.b32.xlu1 %v2619_v24, %s2768_s26 }
0x20d2   :  { %2620 = vtanh.f32 %v1633_v35  ;;  %v2395_v22 = vmul.f32 -1.442695, %v1633_v35 }
0x20d7   :  { %v1913_v37 = vpop.f32.mrf.mxu2 }
0x20d8   :  { %v2621_v38 = vpop.eup %2620  ;;  %v1914_v40 = vadd.f32 %v3406_v10, %v1913_v37 }
0x20d9   :  { %1657 = vrot.lane.b32.xlu2 %v2621_v38, %s2768_s26 }
0x20da   :  { %2622 = vtanh.f32 %v1914_v40  ;;  %v2403_v53 = vmul.f32 -1.442695, %v1914_v40 }
0x20db   :  { %2624 = vpow2.f32 %v2395_v22 }
0x20e0   :  { %v2623_v55 = vpop.eup %2622 }
0x20e1   :  { %1938 = vrot.lane.b32.xlu0 %v2623_v55, %s2768_s26  ;;  %v2625_v41 = vpop.eup %2624 }
0x20e2   :  { %v1638_v1 = vadd.f32 1.0, %v2625_v41 }
0x20e4   :  { %2626 = vrcp.f32 %v1638_v1  ;;  %v1650_v7 = vand.u32 2147483648, %v1638_v1  ;;  %vm1644_vm2 = vweird.f32 %v1638_v1  ;;  %v1648_v9 = vand.u32 2147483647, %v1638_v1 }
0x20e5   :  { %2628 = vpow2.f32 %v2403_v53 }
0x20e6   :  { %v1651_v13 = vor.u32 1.1754944e-38, %v1650_v7  ;;  %vm1649_vm8 = vcmp.eq.f32.partialorder %v1648_v9, 8.507059e+37 }
0x20ea   :  { %v2627_v2 = vpop.eup %2626 }
0x20eb   :  { %v1640_v39 = vmul.f32 %v2627_v2, %v1638_v1  ;;  %vm1645_vm1 = vweird.f32 %v2627_v2  ;;  %v2629_v51 = vpop.eup %2628 }
0x20ec   :  { %vm1646_vm7 = vmor %vm1644_vm2, %vm1645_vm1  ;;  %v1919_v45 = vadd.f32 1.0, %v2629_v51 }
0x20ed   :  { %v1641_v4 = vsub.f32 1.0, %v1640_v39 }
0x20ee   :  { %2630 = vrcp.f32 %v1919_v45  ;;  %v1931_v14 = vand.u32 2147483648, %v1919_v45  ;;  %vm1925_vm10 = vweird.f32 %v1919_v45  ;;  %v1929_v44 = vand.u32 2147483647, %v1919_v45 }
0x20ef   :  { %v1642_v6 = vmul.f32 %v2627_v2, %v1641_v4 }
0x20f0   :  { %v1932_v18 = vor.u32 1.1754944e-38, %v1931_v14  ;;  %vm1930_vm12 = vcmp.eq.f32.partialorder %v1929_v44, 8.507059e+37 }
0x20f1   :  { %v1643_v49 = vadd.f32 %v2627_v2, %v1642_v6 }
0x20f3   :  { %v1647_v48 = vsel %vm1646_vm7, %v2627_v2, %v1643_v49 }
0x20f4   :  { %v1652_v62 = vsel %vm1649_vm8, %v1651_v13, %v1647_v48  ;;  %v2631_v58 = vpop.eup %2630 }
0x20f5   :  { %v1921_v16 = vmul.f32 %v2631_v58, %v1919_v45  ;;  %vm1926_vm9 = vweird.f32 %v2631_v58  ;;  %v1655_v60 = vmul.f32 %v1652_v62, %v3452_v3 }
0x20f6   :  { %vm1927_vm11 = vmor %vm1925_vm10, %vm1926_vm9 }
0x20f7   :  { %v1922_v25 = vsub.f32 1.0, %v1921_v16 }
0x20f9   :  { %v1923_v12 = vmul.f32 %v2631_v58, %v1922_v25 }
0x20fb   :  { %v1924_v0 = vadd.f32 %v2631_v58, %v1923_v12 }
0x20fd   :  { %v1928_v17 = vsel %vm1927_vm11, %v2631_v58, %v1924_v0 }
0x20fe   :  { %v1933_v19 = vsel %vm1930_vm12, %v1932_v18, %v1928_v17 }
0x2133   :  { %v1658_v56 = vpop.permute.xlu2 %1657 }
0x2134   :  { %v1660_v57 = vmul.f32 %v1658_v56, %v1652_v62 }
0x2136   :  { %1662 = vrot.lane.b32.xlu2 %v1660_v57, %s2769_s27 }
0x2143   :  { %v1185_v11 = vpop.permute.xlu1 %1184 }
0x2144   :  { %v1187_v15 = vmul.f32 %v1185_v11, %v1168_v30  ;;  %v1936_v30 = vmul.f32 %v1933_v19, %v3457_v52 }
0x2146   :  { %1673 = vrot.lane.b32.xlu1 %v1187_v15, %s2769_s27 }
0x2153   :  { %v1939_v28 = vpop.permute.xlu0 %1938 }
0x2154   :  { %v1941_v42 = vmul.f32 %v1939_v28, %v1933_v19 }
0x2156   :  { %1943 = vrot.lane.b32.xlu0 %v1941_v42, %s2769_s27 }
0x2190   :  { %v1663_v26 = vpop.permute.xlu2 %1662 }
0x2191   :  { %v3499_v27 = vadd.f32 %v1663_v26, %v1655_v60 }
0x2193   :  { %2632 = vtanh.f32 %v3499_v27 }
0x2199   :  { %v2633_v29 = vpop.eup %2632 }
0x219a   :  { %1668 = vrot.lane.b32.xlu2 %v2633_v29, %s2768_s26 }
0x21b8   :  { %v1674_v52 = vpop.permute.xlu1 %1673 }
0x21c8   :  { %v1944_v31 = vpop.permute.xlu0 %1943 }
0x21c9   :  { %v1946_v33 = vadd.f32 %v1944_v31, %v1936_v30 }
0x21cb   :  { %2634 = vtanh.f32 %v1946_v33 }
0x21d1   :  { %v2635_v34 = vpop.eup %2634 }
0x21d2   :  { %1949 = vrot.lane.b32.xlu0 %v2635_v34, %s2768_s26 }
0x21da   :  { %1953 = vrot.lane.b32.xlu0 %v3356_v43, %s2769_s27 }
0x21f4   :  { %v1669_v3 = vpop.permute.xlu2 %1668 }
0x21f5   :  { %v3507_v32 = vmul.f32 %v1669_v3, %v1652_v62 }
0x21f7   :  { %1677 = vrot.lane.b32.xlu2 %v3507_v32, %s2768_s26 }
0x2244   :  { %v1950_v8 = vpop.permute.xlu0 %1949 }
0x2245   :  { %v1952_v20 = vmul.f32 %v1950_v8, %v1933_v19 }
0x2247   :  { %1957 = vrot.lane.b32.xlu1 %v1952_v20, %s2768_s26 }
0x224c   :  { %v1954_v43 = vpop.permute.xlu0 %1953 }
0x2251   :  { %v1678_v24 = vpop.permute.xlu2 %1677 }
0x2252   :  { %v1680_v35 = vsel %vm645_vm5, %v1674_v52, %v1678_v24 }
0x2253   :  { %2396 = vmatmul.msk.f32.vlgmr.msrb.gmra.mxu3 %vm650_vm6, %v1680_v35 }
0x2254   :  { %2245 = vmatpush.msrb.mxu3 %v3338_v36 }
0x2256   :  { %2246 = vmatpush.msrb.mxu3 %v3340_v63 }
0x2258   :  { %2247 = vmatpush.msrb.mxu3 %v3344_v5 }
0x225a   :  { %2248 = vmatpush.msrb.mxu3 %v3360_v50 }
0x225c   :  { %2249 = vmatpush.msrb.mxu3 %v3364_v59 }
0x225e   :  { %2250 = vmatpush.msrb.mxu3 %v3366_v23 }
0x2260   :  { %2251 = vmatpush.msrb.mxu3 %v3372_v47 }
0x2262   :  { %2252 = vmatpush.msrb.mxu3 %v3378_v46 }
0x22b9   :  { %v1958_v37 = vpop.permute.xlu1 %1957 }
0x22ba   :  { %v1960_v38 = vsel %vm645_vm5, %v1954_v43, %v1958_v37 }
0x22bb   :  { %2404 = vmatmul.msk.f32.vlgmr.msra.gmra.mxu3 %vm650_vm6, %v1960_v38 }
0x22d6   :  { %v3524_v36 = vpop.f32.mrf.mxu3 }
0x233e   :  { %v1981_v63 = vpop.f32.mrf.mxu3 }
0x233f   :  { %v1982_v5 = vadd.f32 %v3406_v10, %v1981_v63 }
0x2341   :  { %2636 = vtanh.f32 %v1982_v5  ;;  %v2405_v59 = vmul.f32 -1.442695, %v1982_v5 }
0x2343   :  { %2638 = vpow2.f32 %v2405_v59 }
0x2347   :  { %v2637_v50 = vpop.eup %2636 }
0x2348   :  { %2006 = vrot.lane.b32.xlu2 %v2637_v50, %s2768_s26 }
0x2349   :  { %v2639_v23 = vpop.eup %2638 }
0x234a   :  { %v1987_v47 = vadd.f32 1.0, %v2639_v23 }
0x234c   :  { %2640 = vrcp.f32 %v1987_v47  ;;  %v1999_v1 = vand.u32 2147483648, %v1987_v47  ;;  %vm1993_vm14 = vweird.f32 %v1987_v47  ;;  %v1997_v2 = vand.u32 2147483647, %v1987_v47 }
0x234e   :  { %v2000_v4 = vor.u32 1.1754944e-38, %v1999_v1  ;;  %vm1998_vm0 = vcmp.eq.f32.partialorder %v1997_v2, 8.507059e+37 }
0x2350   :  { %2021 = vrot.lane.b32.xlu2 %v3426_v21, %s2769_s27 }
0x2352   :  { %v2641_v46 = vpop.eup %2640 }
0x2353   :  { %v1989_v40 = vmul.f32 %v2641_v46, %v1987_v47  ;;  %vm1994_vm13 = vweird.f32 %v2641_v46 }
0x2354   :  { %vm1995_vm15 = vmor %vm1993_vm14, %vm1994_vm13 }
0x2355   :  { %v1990_v55 = vsub.f32 1.0, %v1989_v40 }
0x2357   :  { %v1991_v22 = vmul.f32 %v2641_v46, %v1990_v55 }
0x2359   :  { %v1992_v41 = vadd.f32 %v2641_v46, %v1991_v22 }
0x235b   :  { %v1996_v39 = vsel %vm1995_vm15, %v2641_v46, %v1992_v41 }
0x235c   :  { %v2001_v21 = vsel %vm1998_vm0, %v2000_v4, %v1996_v39 }
0x235d   :  { %v2004_v49 = vmul.f32 %v2001_v21, %v1946_v33 }
0x23a2   :  { %v2007_v53 = vpop.permute.xlu2 %2006 }
0x23a3   :  { %v2009_v6 = vmul.f32 %v2007_v53, %v2001_v21  ;;  %v1702_v53 = vadd.f32 %v3488_v61, %v3524_v36 }
0x23a5   :  { %2011 = vrot.lane.b32.xlu0 %v2009_v6, %s2769_s27 }
0x23aa   :  { %v2022_v45 = vpop.permute.xlu2 %2021 }
0x2417   :  { %v2012_v7 = vpop.permute.xlu0 %2011 }
0x2418   :  { %v2014_v9 = vadd.f32 %v2012_v7, %v2004_v49  ;;  %v2397_v49 = vmul.f32 -1.442695, %v1702_v53 }
0x241a   :  { %2642 = vtanh.f32 %v2014_v9 }
0x2420   :  { %v2643_v51 = vpop.eup %2642 }
0x2421   :  { %2017 = vrot.lane.b32.xlu1 %v2643_v51, %s2768_s26 }
0x2493   :  { %v2018_v48 = vpop.permute.xlu1 %2017 }
0x2494   :  { %v2020_v13 = vmul.f32 %v2018_v48, %v2001_v21 }
0x2496   :  { %2025 = vrot.lane.b32.xlu0 %v2020_v13, %s2768_s26 }
0x2508   :  { %v2026_v62 = vpop.permute.xlu0 %2025 }
0x2509   :  { %v2028_v56 = vsel %vm645_vm5, %v2022_v45, %v2026_v62 }
0x250a   :  { %2406 = vmatmul.msk.f32.vlgmr.msrb.gmra.mxu0 %vm650_vm6, %v2028_v56 }
0x2587   :  { %v2049_v57 = vpop.f32.mrf.mxu0 }
0x2588   :  { %v2050_v58 = vadd.f32 %v3406_v10, %v2049_v57 }
0x258a   :  { %2644 = vtanh.f32 %v2050_v58  ;;  %v2407_v11 = vmul.f32 -1.442695, %v2050_v58 }
0x258c   :  { %2646 = vpow2.f32 %v2407_v11 }
0x2590   :  { %v2645_v16 = vpop.eup %2644 }
0x2591   :  { %2074 = vrot.lane.b32.xlu1 %v2645_v16, %s2768_s26 }
0x2592   :  { %v2647_v15 = vpop.eup %2646 }
0x2593   :  { %v2055_v25 = vadd.f32 1.0, %v2647_v15 }
0x2595   :  { %2648 = vrcp.f32 %v2055_v25  ;;  %v2067_v18 = vand.u32 2147483648, %v2055_v25  ;;  %vm2061_vm4 = vweird.f32 %v2055_v25  ;;  %v2065_v28 = vand.u32 2147483647, %v2055_v25 }
0x2597   :  { %v2068_v42 = vor.u32 1.1754944e-38, %v2067_v18  ;;  %vm2066_vm2 = vcmp.eq.f32.partialorder %v2065_v28, 8.507059e+37 }
0x2599   :  { %2089 = vrot.lane.b32.xlu1 %v3465_v54, %s2769_s27 }
0x259b   :  { %v2649_v12 = vpop.eup %2648 }
0x259c   :  { %v2057_v0 = vmul.f32 %v2649_v12, %v2055_v25  ;;  %vm2062_vm3 = vweird.f32 %v2649_v12 }
0x259d   :  { %vm2063_vm1 = vmor %vm2061_vm4, %vm2062_vm3 }
0x259e   :  { %v2058_v14 = vsub.f32 1.0, %v2057_v0 }
0x25a0   :  { %v2059_v44 = vmul.f32 %v2649_v12, %v2058_v14 }
0x25a2   :  { %v2060_v17 = vadd.f32 %v2649_v12, %v2059_v44 }
0x25a4   :  { %v2064_v19 = vsel %vm2063_vm1, %v2649_v12, %v2060_v17 }
0x25a5   :  { %v2069_v54 = vsel %vm2066_vm2, %v2068_v42, %v2064_v19 }
0x25a6   :  { %v2072_v29 = vmul.f32 %v2069_v54, %v2014_v9 }
0x2603   :  { %v2075_v60 = vpop.permute.xlu1 %2074 }
0x2604   :  { %v2077_v26 = vmul.f32 %v2075_v60, %v2069_v54 }
0x2606   :  { %2079 = vrot.lane.b32.xlu2 %v2077_v26, %s2769_s27 }
0x260b   :  { %v2090_v8 = vpop.permute.xlu1 %2089 }
0x2660   :  { %v2080_v30 = vpop.permute.xlu2 %2079 }
0x2661   :  { %v2082_v31 = vadd.f32 %v2080_v30, %v2072_v29 }
0x2663   :  { %2650 = vtanh.f32 %v2082_v31 }
0x2669   :  { %v2651_v33 = vpop.eup %2650 }
0x266a   :  { %2085 = vrot.lane.b32.xlu0 %v2651_v33, %s2768_s26 }
0x26dc   :  { %v2086_v34 = vpop.permute.xlu0 %2085 }
0x26dd   :  { %v2088_v3 = vmul.f32 %v2086_v34, %v2069_v54 }
0x26df   :  { %2093 = vrot.lane.b32.xlu2 %v2088_v3, %s2768_s26 }
0x2739   :  { %v2094_v20 = vpop.permute.xlu2 %2093 }
0x273a   :  { %v2096_v52 = vsel %vm645_vm5, %v2090_v8, %v2094_v20 }
0x273b   :  { %2408 = vmatmul.msk.f32.vlgmr.msrb.gmra.mxu1 %vm650_vm6, %v2096_v52 }
0x27b8   :  { %v2117_v24 = vpop.f32.mrf.mxu1 }
0x27b9   :  { %v2118_v35 = vadd.f32 %v3406_v10, %v2117_v24 }
0x27bb   :  { %2652 = vtanh.f32 %v2118_v35  ;;  %v2409_v37 = vmul.f32 -1.442695, %v2118_v35 }
0x27bd   :  { %2654 = vpow2.f32 %v2409_v37 }
0x27c1   :  { %v2653_v43 = vpop.eup %2652 }
0x27c2   :  { %2142 = vrot.lane.b32.xlu0 %v2653_v43, %s2768_s26 }
0x27c3   :  { %v2655_v38 = vpop.eup %2654 }
0x27c4   :  { %v2123_v63 = vadd.f32 1.0, %v2655_v38 }
0x27c6   :  { %2656 = vrcp.f32 %v2123_v63  ;;  %v2135_v46 = vand.u32 2147483648, %v2123_v63  ;;  %vm2129_vm8 = vweird.f32 %v2123_v63  ;;  %v2133_v40 = vand.u32 2147483647, %v2123_v63 }
0x27c8   :  { %v2136_v22 = vor.u32 1.1754944e-38, %v2135_v46  ;;  %vm2134_vm10 = vcmp.eq.f32.partialorder %v2133_v40, 8.507059e+37 }
0x27ca   :  { %2157 = vrot.lane.b32.xlu0 %v3507_v32, %s2769_s27 }
0x27cc   :  { %v2657_v5 = vpop.eup %2656 }
0x27cd   :  { %v2125_v50 = vmul.f32 %v2657_v5, %v2123_v63  ;;  %vm2130_vm7 = vweird.f32 %v2657_v5 }
0x27ce   :  { %vm2131_vm9 = vmor %vm2129_vm8, %vm2130_vm7  ;;  %vm2327_vm8 = vcmask 1024  }
0x27cf   :  { %v2126_v59 = vsub.f32 1.0, %v2125_v50 }
0x27d1   :  { %v2127_v23 = vmul.f32 %v2657_v5, %v2126_v59 }
0x27d3   :  { %v2128_v47 = vadd.f32 %v2657_v5, %v2127_v23 }
0x27d5   :  { %v2132_v55 = vsel %vm2131_vm9, %v2657_v5, %v2128_v47 }
0x27d6   :  { %v2137_v32 = vsel %vm2134_vm10, %v2136_v22, %v2132_v55 }
0x27d7   :  { %v2140_v2 = vmul.f32 %v2137_v32, %v2082_v31 }
0x2834   :  { %v2143_v41 = vpop.permute.xlu0 %2142 }
0x2835   :  { %v2145_v1 = vmul.f32 %v2143_v41, %v2137_v32 }
0x2837   :  { %2147 = vrot.lane.b32.xlu1 %v2145_v1, %s2769_s27 }
0x283c   :  { %v2158_v12 = vpop.permute.xlu0 %2157 }
0x28a9   :  { %v2148_v39 = vpop.permute.xlu1 %2147 }
0x28aa   :  { %v3549_v4 = vadd.f32 %v2148_v39, %v2140_v2 }
0x28ac   :  { %2658 = vtanh.f32 %v3549_v4 }
0x28ad   :  { %2660 = vtanh.f32 %v1702_v53 }
0x28ae   :  { %2662 = vpow2.f32 %v2397_v49 }
0x28b2   :  { %v2659_v21 = vpop.eup %2658 }
0x28b3   :  { %2153 = vrot.lane.b32.xlu2 %v2659_v21, %s2768_s26  ;;  %v2661_v6 = vpop.eup %2660 }
0x28b4   :  { %v2663_v7 = vpop.eup %2662 }
0x28b5   :  { %v1707_v9 = vadd.f32 1.0, %v2663_v7 }
0x28b7   :  { %2664 = vrcp.f32 %v1707_v9  ;;  %v1719_v61 = vand.u32 2147483648, %v1707_v9  ;;  %vm1713_vm12 = vweird.f32 %v1707_v9  ;;  %v1717_v36 = vand.u32 2147483647, %v1707_v9 }
0x28b9   :  { %v1720_v16 = vor.u32 1.1754944e-38, %v1719_v61  ;;  %vm1718_vm14 = vcmp.eq.f32.partialorder %v1717_v36, 8.507059e+37  ;;  %v2297_v36 = vld [vmem:[%s3601_s9 + $0x18] sm:$0xff] }
0x28ba   :  { %2319 = vmatpush.msra.mxu0 %v2297_v36 }
0x28bb   :  { %1726 = vrot.lane.b32.xlu2 %v2661_v6, %s2768_s26 }
0x28bd   :  { %v2665_v51 = vpop.eup %2664 }
0x28be   :  { %v1709_v48 = vmul.f32 %v2665_v51, %v1707_v9  ;;  %vm1714_vm11 = vweird.f32 %v2665_v51 }
0x28bf   :  { %vm1715_vm13 = vmor %vm1713_vm12, %vm1714_vm11 }
0x28c0   :  { %v1710_v13 = vsub.f32 1.0, %v1709_v48 }
0x28c2   :  { %v1711_v45 = vmul.f32 %v2665_v51, %v1710_v13 }
0x28c4   :  { %v1712_v57 = vadd.f32 %v2665_v51, %v1711_v45 }
0x28c6   :  { %v1716_v58 = vsel %vm1715_vm13, %v2665_v51, %v1712_v57 }
0x28c7   :  { %v1721_v11 = vsel %vm1718_vm14, %v1720_v16, %v1716_v58  ;;  %v2296_v58 = vld [vmem:[%s3601_s9 + $0x10] sm:$0xff]  ;;  %v2295_v16 = vld [vmem:[%s3601_s9 + $0x8] sm:$0xff] }
0x28c8   :  { %v1724_v28 = vmul.f32 %v1721_v11, %v3499_v27  ;;  %2320 = vmatpush.msra.mxu0 %v2296_v58 }
0x28ca   :  { %2321 = vmatpush.msra.mxu0 %v2295_v16 }
0x290d   :  { %v2154_v62 = vpop.permute.xlu2 %2153 }
0x290e   :  { %v2156_v56 = vmul.f32 %v2154_v62, %v2137_v32 }
0x2910   :  { %2161 = vrot.lane.b32.xlu1 %v2156_v56, %s2768_s26 }
0x2915   :  { %v1727_v15 = vpop.permute.xlu2 %1726 }
0x2916   :  { %v1729_v25 = vmul.f32 %v1727_v15, %v1721_v11 }
0x2918   :  { %1731 = vrot.lane.b32.xlu1 %v1729_v25, %s2769_s27 }
0x2982   :  { %v2162_v0 = vpop.permute.xlu1 %2161 }
0x2983   :  { %v2164_v14 = vsel %vm645_vm5, %v2158_v12, %v2162_v0  ;;  %v2427_v0 = vld [vmem:[#allocation2] ss:$0 sm:$0xff] }
0x2984   :  { %2410 = vmatmul.msk.f32.vlgmr.msrb.gmra.mxu2 %vm650_vm6, %v2164_v14 }
0x298a   :  { %v1732_v18 = vpop.permute.xlu1 %1731 }
0x298b   :  { %v1734_v19 = vadd.f32 %v1732_v18, %v1724_v28 }
0x2a07   :  { %v2185_v44 = vpop.f32.mrf.mxu2 }
0x2a08   :  { %v2186_v17 = vadd.f32 %v3406_v10, %v2185_v44 }
0x2a0a   :  { %2666 = vtanh.f32 %v2186_v17  ;;  %v2411_v54 = vmul.f32 -1.442695, %v2186_v17 }
0x2a0b   :  { %2668 = vtanh.f32 %v1734_v19 }
0x2a0c   :  { %2670 = vpow2.f32 %v2411_v54 }
0x2a10   :  { %v2667_v42 = vpop.eup %2666 }
0x2a11   :  { %2210 = vrot.lane.b32.xlu0 %v2667_v42, %s2768_s26  ;;  %v2669_v60 = vpop.eup %2668 }
0x2a12   :  { %v2671_v26 = vpop.eup %2670 }
0x2a13   :  { %v2191_v29 = vadd.f32 1.0, %v2671_v26 }
0x2a15   :  { %2672 = vrcp.f32 %v2191_v29  ;;  %v2203_v27 = vand.u32 2147483648, %v2191_v29  ;;  %vm2197_vm0 = vweird.f32 %v2191_v29  ;;  %v2201_v8 = vand.u32 2147483647, %v2191_v29 }
0x2a17   :  { %v2204_v52 = vor.u32 1.1754944e-38, %v2203_v27  ;;  %vm2202_vm4 = vcmp.eq.f32.partialorder %v2201_v8, 8.507059e+37 }
0x2a19   :  { %1737 = vrot.lane.b32.xlu0 %v2669_v60, %s2768_s26 }
0x2a1b   :  { %v2673_v30 = vpop.eup %2672 }
0x2a1c   :  { %v2193_v31 = vmul.f32 %v2673_v30, %v2191_v29  ;;  %vm2198_vm15 = vweird.f32 %v2673_v30 }
0x2a1d   :  { %vm2199_vm3 = vmor %vm2197_vm0, %vm2198_vm15 }
0x2a1e   :  { %v2194_v33 = vsub.f32 1.0, %v2193_v31 }
0x2a20   :  { %v2195_v34 = vmul.f32 %v2673_v30, %v2194_v33 }
0x2a22   :  { %v2196_v3 = vadd.f32 %v2673_v30, %v2195_v34 }
0x2a24   :  { %v2200_v20 = vsel %vm2199_vm3, %v2673_v30, %v2196_v3 }
0x2a25   :  { %v2205_v35 = vsel %vm2202_vm4, %v2204_v52, %v2200_v20 }
0x2a26   :  { %v2208_v63 = vmul.f32 %v2205_v35, %v3549_v4 }
0x2a83   :  { %v2211_v24 = vpop.permute.xlu0 %2210 }
0x2a84   :  { %v2213_v43 = vmul.f32 %v2211_v24, %v2205_v35 }
0x2a86   :  { %2215 = vrot.lane.b32.xlu2 %v2213_v43, %s2769_s27 }
0x2a8b   :  { %v1738_v37 = vpop.permute.xlu0 %1737 }
0x2a8c   :  { %v1740_v38 = vmul.f32 %v1738_v37, %v1721_v11  ;;  %v2294_v11 = vld [vmem:[%s3601_s9] sm:$0xff] }
0x2a8d   :  { %2322 = vmatpush.msra.mxu0 %v2294_v11 }
0x2a8e   :  { %2226 = vrot.lane.b32.xlu2 %v1740_v38, %s2769_s27 }
0x2ae0   :  { %v2216_v5 = vpop.permute.xlu2 %2215 }
0x2ae1   :  { %v2218_v50 = vadd.f32 %v2216_v5, %v2208_v63 }
0x2ae3   :  { %2674 = vtanh.f32 %v2218_v50 }
0x2ae8   :  { %v2227_v46 = vpop.permute.xlu2 %2226 }
0x2ae9   :  { %v2675_v59 = vpop.eup %2674 }
0x2aea   :  { %2221 = vrot.lane.b32.xlu1 %v2675_v59, %s2768_s26 }
0x2b5c   :  { %v2222_v23 = vpop.permute.xlu1 %2221 }
0x2b5d   :  { %v2224_v47 = vmul.f32 %v2222_v23, %v2205_v35 }
0x2b5f   :  { %2230 = vrot.lane.b32.xlu0 %v2224_v47, %s2768_s26 }
0x2bd1   :  { %v2231_v40 = vpop.permute.xlu0 %2230 }
0x2bd2   :  { %v2233_v55 = vsel %vm645_vm5, %v2227_v46, %v2231_v40 }
0x2bd3   :  { %2412 = vmatmul.msk.f32.vlgmr.msrb.gmra.mxu3 %vm650_vm6, %v2233_v55 }
0x2c56   :  { %v2254_v22 = vpop.f32.mrf.mxu3 }
0x2c57   :  { %v2255_v41 = vadd.f32 %v3406_v10, %v2254_v22 }
0x2c59   :  { %2676 = vtanh.f32 %v2255_v41  ;;  %v2413_v1 = vmul.f32 -1.442695, %v2255_v41 }
0x2c5b   :  { %2678 = vpow2.f32 %v2413_v1 }
0x2c5f   :  { %v2677_v32 = vpop.eup %2676 }
0x2c60   :  { %2279 = vrot.lane.b32.xlu1 %v2677_v32, %s2768_s26 }
0x2c61   :  { %v2679_v2 = vpop.eup %2678 }
0x2c62   :  { %v2260_v39 = vadd.f32 1.0, %v2679_v2 }
0x2c64   :  { %2680 = vrcp.f32 %v2260_v39  ;;  %v2272_v7 = vand.u32 2147483648, %v2260_v39  ;;  %vm2266_vm6 = vweird.f32 %v2260_v39  ;;  %v2270_v9 = vand.u32 2147483647, %v2260_v39 }
0x2c66   :  { %v2273_v51 = vor.u32 1.1754944e-38, %v2272_v7  ;;  %vm2271_vm7 = vcmp.eq.f32.partialorder %v2270_v9, 8.507059e+37 }
0x2c6a   :  { %v2681_v4 = vpop.eup %2680 }
0x2c6b   :  { %v2262_v53 = vmul.f32 %v2681_v4, %v2260_v39  ;;  %vm2267_vm1 = vweird.f32 %v2681_v4 }
0x2c6c   :  { %vm2268_vm2 = vmor %vm2266_vm6, %vm2267_vm1 }
0x2c6d   :  { %v2263_v21 = vsub.f32 1.0, %v2262_v53 }
0x2c6f   :  { %v2264_v6 = vmul.f32 %v2681_v4, %v2263_v21 }
0x2c71   :  { %v2265_v49 = vadd.f32 %v2681_v4, %v2264_v6 }
0x2c73   :  { %v2269_v10 = vsel %vm2268_vm2, %v2681_v4, %v2265_v49 }
0x2c74   :  { %v2274_v13 = vsel %vm2271_vm7, %v2273_v51, %v2269_v10 }
0x2c75   :  { %v2277_v62 = vmul.f32 %v2274_v13, %v2218_v50 }
0x2cd2   :  { %v2280_v48 = vpop.permute.xlu1 %2279 }
0x2cd3   :  { %v2282_v45 = vmul.f32 %v2280_v48, %v2274_v13 }
0x2cd5   :  { %2284 = vrot.lane.b32.xlu2 %v2282_v45, %s2769_s27 }
0x2d2f   :  { %v2285_v56 = vpop.permute.xlu2 %2284 }
0x2d30   :  { %v2287_v57 = vadd.f32 %v2285_v56, %v2277_v62 }
0x2d32   :  { %2682 = vtanh.f32 %v2287_v57 }
0x2d38   :  { %v2683_v61 = vpop.eup %2682 }
0x2d39   :  { %2290 = vrot.lane.b32.xlu0 %v2683_v61, %s2768_s26 }
0x2dab   :  { %v2291_v15 = vpop.permute.xlu0 %2290 }
0x2dac   :  { %v2293_v25 = vmul.f32 %v2291_v15, %v2274_v13 }
0x2dae   :  { %2303 = vrot.lane.b32.xlu1 %v2293_v25, %s2769_s27 }
0x2e20   :  { %v2304_v12 = vpop.permute.xlu1 %2303 }
0x2e21   :  { %2414 = vmatmul.msk.f32.vlgmr.msra.gmra.mxu0 %vm645_vm5, %v2304_v12 }
0x2e9e   :  { %v2324_v14 = vpop.f32.mrf.mxu0 }
0x2e9f   :  { %v2325_v44 = vadd.f32 %v2427_v0, %v2324_v14 }
0x2ea1   :  { %2328 = vst.msk [vmem:[%s3603_s11] sm:$0x3] %vm2327_vm8, %v2325_v44 }
0x2ea2   :  { %2333 = vsyncpa [#allocation4], 1 }
0x2ea3   :  { %2334 = vsyncpa [#allocation6], 1 }

</bundles_post_ra>
